<compile_context>
chip_gen: v7x
topology: tpu7x:2x2x1
jax: 0.10.0
libtpu: 0.0.40
codegen_flags: <defaults>
</compile_context>

<pallas_src>
import functools

import jax
import jax.numpy as jnp
from jax import lax
from jax.experimental import pallas as pl
from jax.experimental.pallas import tpu as pltpu


def _conv_bn_act_kernel(*refs, khs, kws, stride, c_in, cw, tr, lo_rows, has_halo):
    """One (batch, row-tile, cout-tile) grid step.

    refs (has_halo=True):  x_lo, x_hi, w, bias, out, patches
    refs (has_halo=False): x_lo,       w, bias, out, patches

    x_lo:    (1, C_in, lo_rows, Wp)   main row block of the zero-padded input
    x_hi:    (1, C_in, rh, Wp)        halo rows just below the main block
    w:       (Ct, KH*KW*C_in)         scale-folded weights (contraction on lanes)
    bias:    (Ct, 1)                  folded norm bias (f32)
    out:     (1, Ct, tr, cw)          tr output rows, stride-1 columns
    patches: (KH*KW*C_in, tr, cw)     im2col scratch (compute dtype)
    """
    if has_halo:
        x_lo_ref, x_hi_ref, w_ref, b_ref, o_ref, p_ref = refs
    else:
        x_lo_ref, w_ref, b_ref, o_ref, p_ref = refs
        x_hi_ref = None

    # ---- im2col build:  patches[(kh*KW+kw)*C_in + ci, ty, ox]
    #                        = x[ci, ty*stride + kh, ox + kw]   (stride-1 cols) ----
    for ikh in range(khs):
        for ikw in range(kws):
            t = ikh * kws + ikw
            r0, r1 = t * c_in, (t + 1) * c_in
            if stride == 1:
                # One contiguous (C_in, tr, cw) chunk per tap (static slices only).
                lo_n = min(tr, max(lo_rows - ikh, 0))
                if lo_n > 0:
                    p_ref[r0:r1, 0:lo_n, :] = x_lo_ref[0, :, ikh:ikh + lo_n,
                                                       ikw:ikw + cw]
                if lo_n < tr:
                    hs = ikh + lo_n - lo_rows      # halo-local start row
                    p_ref[r0:r1, lo_n:tr, :] = x_hi_ref[0, :, hs:hs + (tr - lo_n),
                                                        ikw:ikw + cw]
            else:
                # Exact strided rows (only the rows we actually need).
                for ty in range(tr):
                    src = ty * stride + ikh
                    if src < lo_rows:
                        p_ref[r0:r1, ty, :] = x_lo_ref[0, :, src, ikw:ikw + cw]
                    else:
                        p_ref[r0:r1, ty, :] = x_hi_ref[0, :, src - lo_rows,
                                                       ikw:ikw + cw]

    w_mat = w_ref[...]                 # (Ct, KH*KW*C_in), norm scale folded in
    b_vec = b_ref[...]                 # (Ct, 1) f32

    # ---- one big-contraction MXU dot per output row, fused bias + ReLU ----
    for ty in range(tr):
        rhs = p_ref[:, ty, :]          # (KH*KW*C_in, cw)
        acc = jnp.dot(w_mat, rhs, preferred_element_type=jnp.float32)
        y = jnp.maximum(acc + b_vec, 0.0)
        o_ref[0, :, ty, :] = y.astype(o_ref.dtype)


def conv_bn_act_2d(x, weight, *, stride=1, padding=0,
                   norm_scale=None, norm_bias=None,
                   compute_dtype=None, row_tile=None):
    """ReLU(norm(conv2d(x, weight)))  --  NCHW in, NCHW out.

    x:       (B, C_in, H, W)           weight: (C_out, C_in, KH, KW), bias=False
    norm_scale / norm_bias: optional (C_out,) folded affine (None => Identity).
    compute_dtype: optional MXU operand dtype (e.g. jnp.bfloat16); accumulation
                   is always f32 and the output keeps x.dtype.
    row_tile: optional override of the output-row tile size.
    """
    b, c_in, h, w = x.shape
    c_out, c_in_w, khs, kws = weight.shape
    assert c_in == c_in_w, "weight / input channel mismatch"
    out_dtype = x.dtype
    cdt = jnp.dtype(compute_dtype) if compute_dtype is not None else jnp.dtype(x.dtype)

    if norm_scale is None:
        norm_scale = jnp.ones((c_out,), jnp.float32)
    if norm_bias is None:
        norm_bias = jnp.zeros((c_out,), jnp.float32)

    hp, wp = h + 2 * padding, w + 2 * padding
    assert hp >= khs and wp >= kws, "kernel larger than padded input"
    oh = (hp - khs) // stride + 1
    ow = (wp - kws) // stride + 1
    cw = wp - kws + 1                    # stride-1 columns computed per row
    kk = khs * kws
    kkc = kk * c_in

    halo = max(khs - stride, 0)          # extra rows needed below a row block
    rh = 8 * pl.cdiv(halo, 8) if halo > 0 else 0
    quant = max(rh, 8)                   # row-tile quantum (sublane + halo index)

    # ---- output-row tile selection (aim ~1-2K output lanes per tile) ----
    if row_tile is None:
        t = max(1, 2048 // max(cw, 1))
        row_tile = min(t, 16 if stride > 1 else 32)
    if row_tile >= oh:
        tr, single = oh, True
    else:
        tr = max(quant, (row_tile // quant) * quant)
        single = tr >= oh
        if single:
            tr = oh

    if single:
        n_r = 1
        lo_rows = hp                     # whole (padded) row extent in one block
        r_total = hp
        has_halo = False
    else:
        n_r = pl.cdiv(oh, tr)
        rb = tr * stride                 # input rows per main block
        lo_rows = rb
        has_halo = halo > 0
        r_total = max(n_r * rb + (rh if has_halo else 0), hp)
        if has_halo:
            assert rb % rh == 0          # halo block index must be integral

    # Zero-pad once in the wrapper (rows padded up to r_total so every block
    # read stays in bounds).  TODO(synk): fold this padding into the kernel.
    x_p = jnp.pad(x, ((0, 0), (0, 0),
                      (padding, r_total - h - padding),
                      (padding, padding))).astype(cdt)

    # Fold the norm scale into the weights; reorder contraction as (kh, kw, ci).
    w_sc = weight.astype(jnp.float32) * norm_scale.astype(jnp.float32)[:, None, None, None]
    w2 = jnp.transpose(w_sc, (0, 2, 3, 1)).reshape(c_out, kkc).astype(cdt)
    bias2 = norm_bias.reshape(c_out, 1).astype(jnp.float32)

    # C_out tiling (only when large and evenly divisible).
    if c_out % 256 == 0 and c_out > 256:
        ct = 256
    elif c_out % 128 == 0 and c_out > 128:
        ct = 128
    else:
        ct = c_out
    n_ct = c_out // ct

    # ---- BlockSpecs ----
    if single:
        x_lo_spec = pl.BlockSpec((1, c_in, lo_rows, wp),
                                 lambda bi, ri, ji: (bi, 0, 0, 0))
    else:
        x_lo_spec = pl.BlockSpec((1, c_in, lo_rows, wp),
                                 lambda bi, ri, ji: (bi, 0, ri, 0))
    in_specs = [x_lo_spec]
    operands = [x_p]
    if has_halo:
        hi_per_lo = lo_rows // rh
        in_specs.append(pl.BlockSpec(
            (1, c_in, rh, wp),
            lambda bi, ri, ji: (bi, 0, (ri + 1) * hi_per_lo, 0)))
        operands.append(x_p)             # same array, halo rows only
    in_specs += [
        pl.BlockSpec((ct, kkc), lambda bi, ri, ji: (ji, 0)),
        pl.BlockSpec((ct, 1), lambda bi, ri, ji: (ji, 0)),
    ]
    operands += [w2, bias2]
    out_spec = pl.BlockSpec((1, ct, tr, cw), lambda bi, ri, ji: (bi, ji, ri, 0))

    kernel = functools.partial(
        _conv_bn_act_kernel, khs=khs, kws=kws, stride=stride, c_in=c_in,
        cw=cw, tr=tr, lo_rows=lo_rows, has_halo=has_halo)

    # ---- VMEM budget (double-buffered blocks + im2col scratch) ----
    cbytes = jnp.dtype(cdt).itemsize
    obytes = jnp.dtype(out_dtype).itemsize
    est_vmem = 2 * (c_in * lo_rows * wp * cbytes
                    + (c_in * rh * wp * cbytes if has_halo else 0)
                    + ct * kkc * cbytes + ct * 4
                    + ct * tr * cw * obytes) + kkc * tr * cw * cbytes
    vmem_limit = int(min(max(2 * est_vmem, 32 * 1024 * 1024), 100 * 1024 * 1024))

    flops = 2 * b * c_out * kkc * oh * cw
    bytes_accessed = (x_p.size + (b * c_in * rh * wp * n_r if has_halo else 0)) * cbytes \
        + w2.size * cbytes + b * c_out * oh * cw * obytes

    out = pl.pallas_call(
        kernel,
        out_shape=jax.ShapeDtypeStruct((b, c_out, oh, cw), out_dtype),
        grid_spec=pltpu.PrefetchScalarGridSpec(
            num_scalar_prefetch=0,
            grid=(b, n_r, n_ct),
            in_specs=in_specs,
            out_specs=out_spec,
            scratch_shapes=[pltpu.VMEM((kkc, tr, cw), cdt)],
        ),
        compiler_params=pltpu.CompilerParams(
            dimension_semantics=("parallel", "parallel", "parallel"),
            vmem_limit_bytes=vmem_limit,
        ),
        cost_estimate=pl.CostEstimate(flops=flops, transcendentals=0,
                                      bytes_accessed=int(bytes_accessed)),
    )(*operands)

    if stride > 1:
        # Rows are already exact; only the stride-1 columns are decimated here.
        # TODO(synk): a dedicated strided-column kernel would avoid computing
        #             and writing the skipped columns entirely.
        out = out[:, :, :, ::stride]
    return out


def _reference_conv_bn_act(x, weight, stride, padding, norm_scale, norm_bias):
    """Pure-JAX reference mirroring ConvBnAct2d.forward (Identity/BN-eval + ReLU)."""
    out = lax.conv_general_dilated(
        x, weight, window_strides=(stride, stride),
        padding=[(padding, padding), (padding, padding)],
        dimension_numbers=("NCHW", "OIHW", "NCHW"))
    out = out * norm_scale[None, :, None, None] + norm_bias[None, :, None, None]
    return jnp.maximum(out, 0.0)


if __name__ == "__main__":
    key = jax.random.PRNGKey(0)

    def uinit(k, shape, fan_in):
        bound = 1.0 / jnp.sqrt(float(fan_in))
        return jax.random.uniform(k, shape, jnp.float32, -bound, bound)

    # (B, C_in, C_out, H, W, K, pad, stride, affine, compute_dtype, row_tile, tol)
    configs = [
        (2, 4, 8, 16, 16, 3, 1, 1, False, None, None, 1e-3),   # 3x3 "same", Identity
        (2, 4, 8, 16, 16, 1, 0, 1, True,  None, None, 1e-3),   # 1x1, folded BN affine
        (2, 4, 8, 16, 16, 3, 1, 2, False, None, None, 1e-3),   # strided 3x3
        (1, 8, 16, 32, 32, 3, 1, 1, True, None, 8,    1e-3),   # multi row-tile + halo
        (2, 4, 8, 16, 16, 3, 1, 1, True,  jnp.bfloat16, None, 1e-1),  # bf16 MXU ops
    ]
    for idx, (B, Cin, Cout, H, W, K, P, S, affine, cdt, rtile, tol) in enumerate(configs):
        kx, kwt, ks, kb = jax.random.split(jax.random.fold_in(key, idx), 4)
        x = jax.random.normal(kx, (B, Cin, H, W), dtype=jnp.float32)
        wgt = uinit(kwt, (Cout, Cin, K, K), Cin * K * K)
        if affine:   # eval-mode BatchNorm folded to per-channel scale/bias
            scale = 0.5 + jax.random.uniform(ks, (Cout,), jnp.float32)
            bias = 0.1 * jax.random.normal(kb, (Cout,), jnp.float32)
        else:        # norm_layer = nn.Identity (module default)
            scale = jnp.ones((Cout,), jnp.float32)
            bias = jnp.zeros((Cout,), jnp.float32)

        out = conv_bn_act_2d(x, wgt, stride=S, padding=P, norm_scale=scale,
                             norm_bias=bias, compute_dtype=cdt, row_tile=rtile)
        out = jax.block_until_ready(out)

        ref = _reference_conv_bn_act(x, wgt, S, P, scale, bias)
        oh = (H + 2 * P - K) // S + 1
        ow = (W + 2 * P - K) // S + 1
        assert out.shape == (B, Cout, oh, ow), (out.shape, (B, Cout, oh, ow))
        err = float(jnp.max(jnp.abs(out.astype(jnp.float32) - ref)))
        assert err <= tol, (idx, err)

    print("KERNEL_OK")
</pallas_src>

<mosaic_0001>
module attributes {stable_mosaic.version = 11 : i64} {
  func.func @_conv_bn_act_kernel(%arg0: i32, %arg1: i32, %arg2: i32, %arg3: memref<1x4x18x18xf32, #tpu.memory_space<vmem>>, %arg4: memref<8x36xf32, #tpu.memory_space<vmem>>, %arg5: memref<8x1xf32, #tpu.memory_space<vmem>>, %arg6: memref<1x8x16x16xf32, #tpu.memory_space<vmem>>, %arg7: memref<36x16x16xf32, #tpu.memory_space<vmem>>) attributes {dimension_semantics = [#tpu.dimension_semantics<parallel>, #tpu.dimension_semantics<parallel>, #tpu.dimension_semantics<parallel>], iteration_bounds = array<i64: 2, 1, 1>, scalar_prefetch = 0 : i64, scratch_operands = 1 : i64, tpu.core_type = #tpu.core_type<tc>, window_params = [{transform_indices = @transform_0, window_bounds = array<i64: 1, 4, 18, 18>}, {transform_indices = @transform_1, window_bounds = array<i64: 8, 36>}, {transform_indices = @transform_2, window_bounds = array<i64: 8, 1>}, {transform_indices = @transform_3, window_bounds = array<i64: 1, 8, 16, 16>}]} {
    %c0 = arith.constant 0 : index
    %c0_0 = arith.constant 0 : index
    %c0_1 = arith.constant 0 : index
    %c0_2 = arith.constant 0 : index
    %0 = vector.load %arg3[%c0, %c0_0, %c0_1, %c0_2] : memref<1x4x18x18xf32, #tpu.memory_space<vmem>>, vector<1x4x16x16xf32>
    %1 = vector.shape_cast %0 : vector<1x4x16x16xf32> to vector<4x16x16xf32>
    %c0_3 = arith.constant 0 : index
    %c0_4 = arith.constant 0 : index
    %c0_5 = arith.constant 0 : index
    %2 = vector.load %arg7[%c0_3, %c0_4, %c0_5] : memref<36x16x16xf32, #tpu.memory_space<vmem>>, vector<4x16x16xf32>
    tpu.vector_store %arg7[%c0_3, %c0_4, %c0_5], %1 {strides = array<i32>} : memref<36x16x16xf32, #tpu.memory_space<vmem>>, vector<4x16x16xf32>,
    %c0_6 = arith.constant 0 : index
    %c0_7 = arith.constant 0 : index
    %c0_8 = arith.constant 0 : index
    %c1 = arith.constant 1 : index
    %3 = vector.load %arg3[%c0_6, %c0_7, %c0_8, %c1] : memref<1x4x18x18xf32, #tpu.memory_space<vmem>>, vector<1x4x16x16xf32>
    %4 = vector.shape_cast %3 : vector<1x4x16x16xf32> to vector<4x16x16xf32>
    %c4 = arith.constant 4 : index
    %c0_9 = arith.constant 0 : index
    %c0_10 = arith.constant 0 : index
    %5 = vector.load %arg7[%c4, %c0_9, %c0_10] : memref<36x16x16xf32, #tpu.memory_space<vmem>>, vector<4x16x16xf32>
    tpu.vector_store %arg7[%c4, %c0_9, %c0_10], %4 {strides = array<i32>} : memref<36x16x16xf32, #tpu.memory_space<vmem>>, vector<4x16x16xf32>,
    %c0_11 = arith.constant 0 : index
    %c0_12 = arith.constant 0 : index
    %c0_13 = arith.constant 0 : index
    %c2 = arith.constant 2 : index
    %6 = vector.load %arg3[%c0_11, %c0_12, %c0_13, %c2] : memref<1x4x18x18xf32, #tpu.memory_space<vmem>>, vector<1x4x16x16xf32>
    %7 = vector.shape_cast %6 : vector<1x4x16x16xf32> to vector<4x16x16xf32>
    %c8 = arith.constant 8 : index
    %c0_14 = arith.constant 0 : index
    %c0_15 = arith.constant 0 : index
    %8 = vector.load %arg7[%c8, %c0_14, %c0_15] : memref<36x16x16xf32, #tpu.memory_space<vmem>>, vector<4x16x16xf32>
    tpu.vector_store %arg7[%c8, %c0_14, %c0_15], %7 {strides = array<i32>} : memref<36x16x16xf32, #tpu.memory_space<vmem>>, vector<4x16x16xf32>,
    %c0_16 = arith.constant 0 : index
    %c0_17 = arith.constant 0 : index
    %c1_18 = arith.constant 1 : index
    %c0_19 = arith.constant 0 : index
    %9 = vector.load %arg3[%c0_16, %c0_17, %c1_18, %c0_19] : memref<1x4x18x18xf32, #tpu.memory_space<vmem>>, vector<1x4x16x16xf32>
    %10 = vector.shape_cast %9 : vector<1x4x16x16xf32> to vector<4x16x16xf32>
    %c12 = arith.constant 12 : index
    %c0_20 = arith.constant 0 : index
    %c0_21 = arith.constant 0 : index
    %11 = vector.load %arg7[%c12, %c0_20, %c0_21] : memref<36x16x16xf32, #tpu.memory_space<vmem>>, vector<4x16x16xf32>
    tpu.vector_store %arg7[%c12, %c0_20, %c0_21], %10 {strides = array<i32>} : memref<36x16x16xf32, #tpu.memory_space<vmem>>, vector<4x16x16xf32>,
    %c0_22 = arith.constant 0 : index
    %c0_23 = arith.constant 0 : index
    %c1_24 = arith.constant 1 : index
    %c1_25 = arith.constant 1 : index
    %12 = vector.load %arg3[%c0_22, %c0_23, %c1_24, %c1_25] : memref<1x4x18x18xf32, #tpu.memory_space<vmem>>, vector<1x4x16x16xf32>
    %13 = vector.shape_cast %12 : vector<1x4x16x16xf32> to vector<4x16x16xf32>
    %c16 = arith.constant 16 : index
    %c0_26 = arith.constant 0 : index
    %c0_27 = arith.constant 0 : index
    %14 = vector.load %arg7[%c16, %c0_26, %c0_27] : memref<36x16x16xf32, #tpu.memory_space<vmem>>, vector<4x16x16xf32>
    tpu.vector_store %arg7[%c16, %c0_26, %c0_27], %13 {strides = array<i32>} : memref<36x16x16xf32, #tpu.memory_space<vmem>>, vector<4x16x16xf32>,
    %c0_28 = arith.constant 0 : index
    %c0_29 = arith.constant 0 : index
    %c1_30 = arith.constant 1 : index
    %c2_31 = arith.constant 2 : index
    %15 = vector.load %arg3[%c0_28, %c0_29, %c1_30, %c2_31] : memref<1x4x18x18xf32, #tpu.memory_space<vmem>>, vector<1x4x16x16xf32>
    %16 = vector.shape_cast %15 : vector<1x4x16x16xf32> to vector<4x16x16xf32>
    %c20 = arith.constant 20 : index
    %c0_32 = arith.constant 0 : index
    %c0_33 = arith.constant 0 : index
    %17 = vector.load %arg7[%c20, %c0_32, %c0_33] : memref<36x16x16xf32, #tpu.memory_space<vmem>>, vector<4x16x16xf32>
    tpu.vector_store %arg7[%c20, %c0_32, %c0_33], %16 {strides = array<i32>} : memref<36x16x16xf32, #tpu.memory_space<vmem>>, vector<4x16x16xf32>,
    %c0_34 = arith.constant 0 : index
    %c0_35 = arith.constant 0 : index
    %c2_36 = arith.constant 2 : index
    %c0_37 = arith.constant 0 : index
    %18 = vector.load %arg3[%c0_34, %c0_35, %c2_36, %c0_37] : memref<1x4x18x18xf32, #tpu.memory_space<vmem>>, vector<1x4x16x16xf32>
    %19 = vector.shape_cast %18 : vector<1x4x16x16xf32> to vector<4x16x16xf32>
    %c24 = arith.constant 24 : index
    %c0_38 = arith.constant 0 : index
    %c0_39 = arith.constant 0 : index
    %20 = vector.load %arg7[%c24, %c0_38, %c0_39] : memref<36x16x16xf32, #tpu.memory_space<vmem>>, vector<4x16x16xf32>
    tpu.vector_store %arg7[%c24, %c0_38, %c0_39], %19 {strides = array<i32>} : memref<36x16x16xf32, #tpu.memory_space<vmem>>, vector<4x16x16xf32>,
    %c0_40 = arith.constant 0 : index
    %c0_41 = arith.constant 0 : index
    %c2_42 = arith.constant 2 : index
    %c1_43 = arith.constant 1 : index
    %21 = vector.load %arg3[%c0_40, %c0_41, %c2_42, %c1_43] : memref<1x4x18x18xf32, #tpu.memory_space<vmem>>, vector<1x4x16x16xf32>
    %22 = vector.shape_cast %21 : vector<1x4x16x16xf32> to vector<4x16x16xf32>
    %c28 = arith.constant 28 : index
    %c0_44 = arith.constant 0 : index
    %c0_45 = arith.constant 0 : index
    %23 = vector.load %arg7[%c28, %c0_44, %c0_45] : memref<36x16x16xf32, #tpu.memory_space<vmem>>, vector<4x16x16xf32>
    tpu.vector_store %arg7[%c28, %c0_44, %c0_45], %22 {strides = array<i32>} : memref<36x16x16xf32, #tpu.memory_space<vmem>>, vector<4x16x16xf32>,
    %c0_46 = arith.constant 0 : index
    %c0_47 = arith.constant 0 : index
    %c2_48 = arith.constant 2 : index
    %c2_49 = arith.constant 2 : index
    %24 = vector.load %arg3[%c0_46, %c0_47, %c2_48, %c2_49] : memref<1x4x18x18xf32, #tpu.memory_space<vmem>>, vector<1x4x16x16xf32>
    %25 = vector.shape_cast %24 : vector<1x4x16x16xf32> to vector<4x16x16xf32>
    %c32 = arith.constant 32 : index
    %c0_50 = arith.constant 0 : index
    %c0_51 = arith.constant 0 : index
    %26 = vector.load %arg7[%c32, %c0_50, %c0_51] : memref<36x16x16xf32, #tpu.memory_space<vmem>>, vector<4x16x16xf32>
    tpu.vector_store %arg7[%c32, %c0_50, %c0_51], %25 {strides = array<i32>} : memref<36x16x16xf32, #tpu.memory_space<vmem>>, vector<4x16x16xf32>,
    %c0_52 = arith.constant 0 : index
    %c0_53 = arith.constant 0 : index
    %27 = vector.load %arg4[%c0_52, %c0_53] : memref<8x36xf32, #tpu.memory_space<vmem>>, vector<8x36xf32>
    %c0_54 = arith.constant 0 : index
    %c0_55 = arith.constant 0 : index
    %28 = vector.load %arg5[%c0_54, %c0_55] : memref<8x1xf32, #tpu.memory_space<vmem>>, vector<8x1xf32>
    %c0_56 = arith.constant 0 : index
    %c0_57 = arith.constant 0 : index
    %c0_58 = arith.constant 0 : index
    %29 = vector.load %arg7[%c0_56, %c0_57, %c0_58] : memref<36x16x16xf32, #tpu.memory_space<vmem>>, vector<36x1x16xf32>
    %30 = vector.shape_cast %29 : vector<36x1x16xf32> to vector<36x16xf32>
    %cst = arith.constant dense<0.000000e+00> : vector<8x16xf32>
    %31 = tpu.matmul %27, %30, %cst {dimension_numbers = #tpu.dot_dimension_numbers<[1], [0], [0], [1], [0, 0, 1, 1], [], []>} : vector<8x36xf32>, vector<36x16xf32>, vector<8x16xf32> -> vector<8x16xf32>
    %32 = vector.broadcast %28 : vector<8x1xf32> to vector<8x16xf32>
    %33 = arith.addf %31, %32 : vector<8x16xf32>
    %cst_59 = arith.constant 0.000000e+00 : f32
    %34 = vector.broadcast %cst_59 : f32 to vector<8x16xf32>
    %35 = arith.maximumf %33, %34 : vector<8x16xf32>
    %c0_60 = arith.constant 0 : index
    %c0_61 = arith.constant 0 : index
    %c0_62 = arith.constant 0 : index
    %c0_63 = arith.constant 0 : index
    %36 = vector.load %arg6[%c0_60, %c0_61, %c0_62, %c0_63] : memref<1x8x16x16xf32, #tpu.memory_space<vmem>>, vector<1x8x1x16xf32>
    %37 = vector.shape_cast %36 : vector<1x8x1x16xf32> to vector<8x16xf32>
    %38 = vector.shape_cast %35 : vector<8x16xf32> to vector<1x8x1x16xf32>
    tpu.vector_store %arg6[%c0_60, %c0_61, %c0_62, %c0_63], %38 {strides = array<i32>} : memref<1x8x16x16xf32, #tpu.memory_space<vmem>>, vector<1x8x1x16xf32>,
    %c0_64 = arith.constant 0 : index
    %c1_65 = arith.constant 1 : index
    %c0_66 = arith.constant 0 : index
    %39 = vector.load %arg7[%c0_64, %c1_65, %c0_66] : memref<36x16x16xf32, #tpu.memory_space<vmem>>, vector<36x1x16xf32>
    %40 = vector.shape_cast %39 : vector<36x1x16xf32> to vector<36x16xf32>
    %cst_67 = arith.constant dense<0.000000e+00> : vector<8x16xf32>
    %41 = tpu.matmul %27, %40, %cst_67 {dimension_numbers = #tpu.dot_dimension_numbers<[1], [0], [0], [1], [0, 0, 1, 1], [], []>} : vector<8x36xf32>, vector<36x16xf32>, vector<8x16xf32> -> vector<8x16xf32>
    %42 = vector.broadcast %28 : vector<8x1xf32> to vector<8x16xf32>
    %43 = arith.addf %41, %42 : vector<8x16xf32>
    %cst_68 = arith.constant 0.000000e+00 : f32
    %44 = vector.broadcast %cst_68 : f32 to vector<8x16xf32>
    %45 = arith.maximumf %43, %44 : vector<8x16xf32>
    %c0_69 = arith.constant 0 : index
    %c0_70 = arith.constant 0 : index
    %c1_71 = arith.constant 1 : index
    %c0_72 = arith.constant 0 : index
    %46 = vector.load %arg6[%c0_69, %c0_70, %c1_71, %c0_72] : memref<1x8x16x16xf32, #tpu.memory_space<vmem>>, vector<1x8x1x16xf32>
    %47 = vector.shape_cast %46 : vector<1x8x1x16xf32> to vector<8x16xf32>
    %48 = vector.shape_cast %45 : vector<8x16xf32> to vector<1x8x1x16xf32>
    tpu.vector_store %arg6[%c0_69, %c0_70, %c1_71, %c0_72], %48 {strides = array<i32>} : memref<1x8x16x16xf32, #tpu.memory_space<vmem>>, vector<1x8x1x16xf32>,
    %c0_73 = arith.constant 0 : index
    %c2_74 = arith.constant 2 : index
    %c0_75 = arith.constant 0 : index
    %49 = vector.load %arg7[%c0_73, %c2_74, %c0_75] : memref<36x16x16xf32, #tpu.memory_space<vmem>>, vector<36x1x16xf32>
    %50 = vector.shape_cast %49 : vector<36x1x16xf32> to vector<36x16xf32>
    %cst_76 = arith.constant dense<0.000000e+00> : vector<8x16xf32>
    %51 = tpu.matmul %27, %50, %cst_76 {dimension_numbers = #tpu.dot_dimension_numbers<[1], [0], [0], [1], [0, 0, 1, 1], [], []>} : vector<8x36xf32>, vector<36x16xf32>, vector<8x16xf32> -> vector<8x16xf32>
    %52 = vector.broadcast %28 : vector<8x1xf32> to vector<8x16xf32>
    %53 = arith.addf %51, %52 : vector<8x16xf32>
    %cst_77 = arith.constant 0.000000e+00 : f32
    %54 = vector.broadcast %cst_77 : f32 to vector<8x16xf32>
    %55 = arith.maximumf %53, %54 : vector<8x16xf32>
    %c0_78 = arith.constant 0 : index
    %c0_79 = arith.constant 0 : index
    %c2_80 = arith.constant 2 : index
    %c0_81 = arith.constant 0 : index
    %56 = vector.load %arg6[%c0_78, %c0_79, %c2_80, %c0_81] : memref<1x8x16x16xf32, #tpu.memory_space<vmem>>, vector<1x8x1x16xf32>
    %57 = vector.shape_cast %56 : vector<1x8x1x16xf32> to vector<8x16xf32>
    %58 = vector.shape_cast %55 : vector<8x16xf32> to vector<1x8x1x16xf32>
    tpu.vector_store %arg6[%c0_78, %c0_79, %c2_80, %c0_81], %58 {strides = array<i32>} : memref<1x8x16x16xf32, #tpu.memory_space<vmem>>, vector<1x8x1x16xf32>,
    %c0_82 = arith.constant 0 : index
    %c3 = arith.constant 3 : index
    %c0_83 = arith.constant 0 : index
    %59 = vector.load %arg7[%c0_82, %c3, %c0_83] : memref<36x16x16xf32, #tpu.memory_space<vmem>>, vector<36x1x16xf32>
    %60 = vector.shape_cast %59 : vector<36x1x16xf32> to vector<36x16xf32>
    %cst_84 = arith.constant dense<0.000000e+00> : vector<8x16xf32>
    %61 = tpu.matmul %27, %60, %cst_84 {dimension_numbers = #tpu.dot_dimension_numbers<[1], [0], [0], [1], [0, 0, 1, 1], [], []>} : vector<8x36xf32>, vector<36x16xf32>, vector<8x16xf32> -> vector<8x16xf32>
    %62 = vector.broadcast %28 : vector<8x1xf32> to vector<8x16xf32>
    %63 = arith.addf %61, %62 : vector<8x16xf32>
    %cst_85 = arith.constant 0.000000e+00 : f32
    %64 = vector.broadcast %cst_85 : f32 to vector<8x16xf32>
    %65 = arith.maximumf %63, %64 : vector<8x16xf32>
    %c0_86 = arith.constant 0 : index
    %c0_87 = arith.constant 0 : index
    %c3_88 = arith.constant 3 : index
    %c0_89 = arith.constant 0 : index
    %66 = vector.load %arg6[%c0_86, %c0_87, %c3_88, %c0_89] : memref<1x8x16x16xf32, #tpu.memory_space<vmem>>, vector<1x8x1x16xf32>
    %67 = vector.shape_cast %66 : vector<1x8x1x16xf32> to vector<8x16xf32>
    %68 = vector.shape_cast %65 : vector<8x16xf32> to vector<1x8x1x16xf32>
    tpu.vector_store %arg6[%c0_86, %c0_87, %c3_88, %c0_89], %68 {strides = array<i32>} : memref<1x8x16x16xf32, #tpu.memory_space<vmem>>, vector<1x8x1x16xf32>,
    %c0_90 = arith.constant 0 : index
    %c4_91 = arith.constant 4 : index
    %c0_92 = arith.constant 0 : index
    %69 = vector.load %arg7[%c0_90, %c4_91, %c0_92] : memref<36x16x16xf32, #tpu.memory_space<vmem>>, vector<36x1x16xf32>
    %70 = vector.shape_cast %69 : vector<36x1x16xf32> to vector<36x16xf32>
    %cst_93 = arith.constant dense<0.000000e+00> : vector<8x16xf32>
    %71 = tpu.matmul %27, %70, %cst_93 {dimension_numbers = #tpu.dot_dimension_numbers<[1], [0], [0], [1], [0, 0, 1, 1], [], []>} : vector<8x36xf32>, vector<36x16xf32>, vector<8x16xf32> -> vector<8x16xf32>
    %72 = vector.broadcast %28 : vector<8x1xf32> to vector<8x16xf32>
    %73 = arith.addf %71, %72 : vector<8x16xf32>
    %cst_94 = arith.constant 0.000000e+00 : f32
    %74 = vector.broadcast %cst_94 : f32 to vector<8x16xf32>
    %75 = arith.maximumf %73, %74 : vector<8x16xf32>
    %c0_95 = arith.constant 0 : index
    %c0_96 = arith.constant 0 : index
    %c4_97 = arith.constant 4 : index
    %c0_98 = arith.constant 0 : index
    %76 = vector.load %arg6[%c0_95, %c0_96, %c4_97, %c0_98] : memref<1x8x16x16xf32, #tpu.memory_space<vmem>>, vector<1x8x1x16xf32>
    %77 = vector.shape_cast %76 : vector<1x8x1x16xf32> to vector<8x16xf32>
    %78 = vector.shape_cast %75 : vector<8x16xf32> to vector<1x8x1x16xf32>
    tpu.vector_store %arg6[%c0_95, %c0_96, %c4_97, %c0_98], %78 {strides = array<i32>} : memref<1x8x16x16xf32, #tpu.memory_space<vmem>>, vector<1x8x1x16xf32>,
    %c0_99 = arith.constant 0 : index
    %c5 = arith.constant 5 : index
    %c0_100 = arith.constant 0 : index
    %79 = vector.load %arg7[%c0_99, %c5, %c0_100] : memref<36x16x16xf32, #tpu.memory_space<vmem>>, vector<36x1x16xf32>
    %80 = vector.shape_cast %79 : vector<36x1x16xf32> to vector<36x16xf32>
    %cst_101 = arith.constant dense<0.000000e+00> : vector<8x16xf32>
    %81 = tpu.matmul %27, %80, %cst_101 {dimension_numbers = #tpu.dot_dimension_numbers<[1], [0], [0], [1], [0, 0, 1, 1], [], []>} : vector<8x36xf32>, vector<36x16xf32>, vector<8x16xf32> -> vector<8x16xf32>
    %82 = vector.broadcast %28 : vector<8x1xf32> to vector<8x16xf32>
    %83 = arith.addf %81, %82 : vector<8x16xf32>
    %cst_102 = arith.constant 0.000000e+00 : f32
    %84 = vector.broadcast %cst_102 : f32 to vector<8x16xf32>
    %85 = arith.maximumf %83, %84 : vector<8x16xf32>
    %c0_103 = arith.constant 0 : index
    %c0_104 = arith.constant 0 : index
    %c5_105 = arith.constant 5 : index
    %c0_106 = arith.constant 0 : index
    %86 = vector.load %arg6[%c0_103, %c0_104, %c5_105, %c0_106] : memref<1x8x16x16xf32, #tpu.memory_space<vmem>>, vector<1x8x1x16xf32>
    %87 = vector.shape_cast %86 : vector<1x8x1x16xf32> to vector<8x16xf32>
    %88 = vector.shape_cast %85 : vector<8x16xf32> to vector<1x8x1x16xf32>
    tpu.vector_store %arg6[%c0_103, %c0_104, %c5_105, %c0_106], %88 {strides = array<i32>} : memref<1x8x16x16xf32, #tpu.memory_space<vmem>>, vector<1x8x1x16xf32>,
    %c0_107 = arith.constant 0 : index
    %c6 = arith.constant 6 : index
    %c0_108 = arith.constant 0 : index
    %89 = vector.load %arg7[%c0_107, %c6, %c0_108] : memref<36x16x16xf32, #tpu.memory_space<vmem>>, vector<36x1x16xf32>
    %90 = vector.shape_cast %89 : vector<36x1x16xf32> to vector<36x16xf32>
    %cst_109 = arith.constant dense<0.000000e+00> : vector<8x16xf32>
    %91 = tpu.matmul %27, %90, %cst_109 {dimension_numbers = #tpu.dot_dimension_numbers<[1], [0], [0], [1], [0, 0, 1, 1], [], []>} : vector<8x36xf32>, vector<36x16xf32>, vector<8x16xf32> -> vector<8x16xf32>
    %92 = vector.broadcast %28 : vector<8x1xf32> to vector<8x16xf32>
    %93 = arith.addf %91, %92 : vector<8x16xf32>
    %cst_110 = arith.constant 0.000000e+00 : f32
    %94 = vector.broadcast %cst_110 : f32 to vector<8x16xf32>
    %95 = arith.maximumf %93, %94 : vector<8x16xf32>
    %c0_111 = arith.constant 0 : index
    %c0_112 = arith.constant 0 : index
    %c6_113 = arith.constant 6 : index
    %c0_114 = arith.constant 0 : index
    %96 = vector.load %arg6[%c0_111, %c0_112, %c6_113, %c0_114] : memref<1x8x16x16xf32, #tpu.memory_space<vmem>>, vector<1x8x1x16xf32>
    %97 = vector.shape_cast %96 : vector<1x8x1x16xf32> to vector<8x16xf32>
    %98 = vector.shape_cast %95 : vector<8x16xf32> to vector<1x8x1x16xf32>
    tpu.vector_store %arg6[%c0_111, %c0_112, %c6_113, %c0_114], %98 {strides = array<i32>} : memref<1x8x16x16xf32, #tpu.memory_space<vmem>>, vector<1x8x1x16xf32>,
    %c0_115 = arith.constant 0 : index
    %c7 = arith.constant 7 : index
    %c0_116 = arith.constant 0 : index
    %99 = vector.load %arg7[%c0_115, %c7, %c0_116] : memref<36x16x16xf32, #tpu.memory_space<vmem>>, vector<36x1x16xf32>
    %100 = vector.shape_cast %99 : vector<36x1x16xf32> to vector<36x16xf32>
    %cst_117 = arith.constant dense<0.000000e+00> : vector<8x16xf32>
    %101 = tpu.matmul %27, %100, %cst_117 {dimension_numbers = #tpu.dot_dimension_numbers<[1], [0], [0], [1], [0, 0, 1, 1], [], []>} : vector<8x36xf32>, vector<36x16xf32>, vector<8x16xf32> -> vector<8x16xf32>
    %102 = vector.broadcast %28 : vector<8x1xf32> to vector<8x16xf32>
    %103 = arith.addf %101, %102 : vector<8x16xf32>
    %cst_118 = arith.constant 0.000000e+00 : f32
    %104 = vector.broadcast %cst_118 : f32 to vector<8x16xf32>
    %105 = arith.maximumf %103, %104 : vector<8x16xf32>
    %c0_119 = arith.constant 0 : index
    %c0_120 = arith.constant 0 : index
    %c7_121 = arith.constant 7 : index
    %c0_122 = arith.constant 0 : index
    %106 = vector.load %arg6[%c0_119, %c0_120, %c7_121, %c0_122] : memref<1x8x16x16xf32, #tpu.memory_space<vmem>>, vector<1x8x1x16xf32>
    %107 = vector.shape_cast %106 : vector<1x8x1x16xf32> to vector<8x16xf32>
    %108 = vector.shape_cast %105 : vector<8x16xf32> to vector<1x8x1x16xf32>
    tpu.vector_store %arg6[%c0_119, %c0_120, %c7_121, %c0_122], %108 {strides = array<i32>} : memref<1x8x16x16xf32, #tpu.memory_space<vmem>>, vector<1x8x1x16xf32>,
    %c0_123 = arith.constant 0 : index
    %c8_124 = arith.constant 8 : index
    %c0_125 = arith.constant 0 : index
    %109 = vector.load %arg7[%c0_123, %c8_124, %c0_125] : memref<36x16x16xf32, #tpu.memory_space<vmem>>, vector<36x1x16xf32>
    %110 = vector.shape_cast %109 : vector<36x1x16xf32> to vector<36x16xf32>
    %cst_126 = arith.constant dense<0.000000e+00> : vector<8x16xf32>
    %111 = tpu.matmul %27, %110, %cst_126 {dimension_numbers = #tpu.dot_dimension_numbers<[1], [0], [0], [1], [0, 0, 1, 1], [], []>} : vector<8x36xf32>, vector<36x16xf32>, vector<8x16xf32> -> vector<8x16xf32>
    %112 = vector.broadcast %28 : vector<8x1xf32> to vector<8x16xf32>
    %113 = arith.addf %111, %112 : vector<8x16xf32>
    %cst_127 = arith.constant 0.000000e+00 : f32
    %114 = vector.broadcast %cst_127 : f32 to vector<8x16xf32>
    %115 = arith.maximumf %113, %114 : vector<8x16xf32>
    %c0_128 = arith.constant 0 : index
    %c0_129 = arith.constant 0 : index
    %c8_130 = arith.constant 8 : index
    %c0_131 = arith.constant 0 : index
    %116 = vector.load %arg6[%c0_128, %c0_129, %c8_130, %c0_131] : memref<1x8x16x16xf32, #tpu.memory_space<vmem>>, vector<1x8x1x16xf32>
    %117 = vector.shape_cast %116 : vector<1x8x1x16xf32> to vector<8x16xf32>
    %118 = vector.shape_cast %115 : vector<8x16xf32> to vector<1x8x1x16xf32>
    tpu.vector_store %arg6[%c0_128, %c0_129, %c8_130, %c0_131], %118 {strides = array<i32>} : memref<1x8x16x16xf32, #tpu.memory_space<vmem>>, vector<1x8x1x16xf32>,
    %c0_132 = arith.constant 0 : index
    %c9 = arith.constant 9 : index
    %c0_133 = arith.constant 0 : index
    %119 = vector.load %arg7[%c0_132, %c9, %c0_133] : memref<36x16x16xf32, #tpu.memory_space<vmem>>, vector<36x1x16xf32>
    %120 = vector.shape_cast %119 : vector<36x1x16xf32> to vector<36x16xf32>
    %cst_134 = arith.constant dense<0.000000e+00> : vector<8x16xf32>
    %121 = tpu.matmul %27, %120, %cst_134 {dimension_numbers = #tpu.dot_dimension_numbers<[1], [0], [0], [1], [0, 0, 1, 1], [], []>} : vector<8x36xf32>, vector<36x16xf32>, vector<8x16xf32> -> vector<8x16xf32>
    %122 = vector.broadcast %28 : vector<8x1xf32> to vector<8x16xf32>
    %123 = arith.addf %121, %122 : vector<8x16xf32>
    %cst_135 = arith.constant 0.000000e+00 : f32
    %124 = vector.broadcast %cst_135 : f32 to vector<8x16xf32>
    %125 = arith.maximumf %123, %124 : vector<8x16xf32>
    %c0_136 = arith.constant 0 : index
    %c0_137 = arith.constant 0 : index
    %c9_138 = arith.constant 9 : index
    %c0_139 = arith.constant 0 : index
    %126 = vector.load %arg6[%c0_136, %c0_137, %c9_138, %c0_139] : memref<1x8x16x16xf32, #tpu.memory_space<vmem>>, vector<1x8x1x16xf32>
    %127 = vector.shape_cast %126 : vector<1x8x1x16xf32> to vector<8x16xf32>
    %128 = vector.shape_cast %125 : vector<8x16xf32> to vector<1x8x1x16xf32>
    tpu.vector_store %arg6[%c0_136, %c0_137, %c9_138, %c0_139], %128 {strides = array<i32>} : memref<1x8x16x16xf32, #tpu.memory_space<vmem>>, vector<1x8x1x16xf32>,
    %c0_140 = arith.constant 0 : index
    %c10 = arith.constant 10 : index
    %c0_141 = arith.constant 0 : index
    %129 = vector.load %arg7[%c0_140, %c10, %c0_141] : memref<36x16x16xf32, #tpu.memory_space<vmem>>, vector<36x1x16xf32>
    %130 = vector.shape_cast %129 : vector<36x1x16xf32> to vector<36x16xf32>
    %cst_142 = arith.constant dense<0.000000e+00> : vector<8x16xf32>
    %131 = tpu.matmul %27, %130, %cst_142 {dimension_numbers = #tpu.dot_dimension_numbers<[1], [0], [0], [1], [0, 0, 1, 1], [], []>} : vector<8x36xf32>, vector<36x16xf32>, vector<8x16xf32> -> vector<8x16xf32>
    %132 = vector.broadcast %28 : vector<8x1xf32> to vector<8x16xf32>
    %133 = arith.addf %131, %132 : vector<8x16xf32>
    %cst_143 = arith.constant 0.000000e+00 : f32
    %134 = vector.broadcast %cst_143 : f32 to vector<8x16xf32>
    %135 = arith.maximumf %133, %134 : vector<8x16xf32>
    %c0_144 = arith.constant 0 : index
    %c0_145 = arith.constant 0 : index
    %c10_146 = arith.constant 10 : index
    %c0_147 = arith.constant 0 : index
    %136 = vector.load %arg6[%c0_144, %c0_145, %c10_146, %c0_147] : memref<1x8x16x16xf32, #tpu.memory_space<vmem>>, vector<1x8x1x16xf32>
    %137 = vector.shape_cast %136 : vector<1x8x1x16xf32> to vector<8x16xf32>
    %138 = vector.shape_cast %135 : vector<8x16xf32> to vector<1x8x1x16xf32>
    tpu.vector_store %arg6[%c0_144, %c0_145, %c10_146, %c0_147], %138 {strides = array<i32>} : memref<1x8x16x16xf32, #tpu.memory_space<vmem>>, vector<1x8x1x16xf32>,
    %c0_148 = arith.constant 0 : index
    %c11 = arith.constant 11 : index
    %c0_149 = arith.constant 0 : index
    %139 = vector.load %arg7[%c0_148, %c11, %c0_149] : memref<36x16x16xf32, #tpu.memory_space<vmem>>, vector<36x1x16xf32>
    %140 = vector.shape_cast %139 : vector<36x1x16xf32> to vector<36x16xf32>
    %cst_150 = arith.constant dense<0.000000e+00> : vector<8x16xf32>
    %141 = tpu.matmul %27, %140, %cst_150 {dimension_numbers = #tpu.dot_dimension_numbers<[1], [0], [0], [1], [0, 0, 1, 1], [], []>} : vector<8x36xf32>, vector<36x16xf32>, vector<8x16xf32> -> vector<8x16xf32>
    %142 = vector.broadcast %28 : vector<8x1xf32> to vector<8x16xf32>
    %143 = arith.addf %141, %142 : vector<8x16xf32>
    %cst_151 = arith.constant 0.000000e+00 : f32
    %144 = vector.broadcast %cst_151 : f32 to vector<8x16xf32>
    %145 = arith.maximumf %143, %144 : vector<8x16xf32>
    %c0_152 = arith.constant 0 : index
    %c0_153 = arith.constant 0 : index
    %c11_154 = arith.constant 11 : index
    %c0_155 = arith.constant 0 : index
    %146 = vector.load %arg6[%c0_152, %c0_153, %c11_154, %c0_155] : memref<1x8x16x16xf32, #tpu.memory_space<vmem>>, vector<1x8x1x16xf32>
    %147 = vector.shape_cast %146 : vector<1x8x1x16xf32> to vector<8x16xf32>
    %148 = vector.shape_cast %145 : vector<8x16xf32> to vector<1x8x1x16xf32>
    tpu.vector_store %arg6[%c0_152, %c0_153, %c11_154, %c0_155], %148 {strides = array<i32>} : memref<1x8x16x16xf32, #tpu.memory_space<vmem>>, vector<1x8x1x16xf32>,
    %c0_156 = arith.constant 0 : index
    %c12_157 = arith.constant 12 : index
    %c0_158 = arith.constant 0 : index
    %149 = vector.load %arg7[%c0_156, %c12_157, %c0_158] : memref<36x16x16xf32, #tpu.memory_space<vmem>>, vector<36x1x16xf32>
    %150 = vector.shape_cast %149 : vector<36x1x16xf32> to vector<36x16xf32>
    %cst_159 = arith.constant dense<0.000000e+00> : vector<8x16xf32>
    %151 = tpu.matmul %27, %150, %cst_159 {dimension_numbers = #tpu.dot_dimension_numbers<[1], [0], [0], [1], [0, 0, 1, 1], [], []>} : vector<8x36xf32>, vector<36x16xf32>, vector<8x16xf32> -> vector<8x16xf32>
    %152 = vector.broadcast %28 : vector<8x1xf32> to vector<8x16xf32>
    %153 = arith.addf %151, %152 : vector<8x16xf32>
    %cst_160 = arith.constant 0.000000e+00 : f32
    %154 = vector.broadcast %cst_160 : f32 to vector<8x16xf32>
    %155 = arith.maximumf %153, %154 : vector<8x16xf32>
    %c0_161 = arith.constant 0 : index
    %c0_162 = arith.constant 0 : index
    %c12_163 = arith.constant 12 : index
    %c0_164 = arith.constant 0 : index
    %156 = vector.load %arg6[%c0_161, %c0_162, %c12_163, %c0_164] : memref<1x8x16x16xf32, #tpu.memory_space<vmem>>, vector<1x8x1x16xf32>
    %157 = vector.shape_cast %156 : vector<1x8x1x16xf32> to vector<8x16xf32>
    %158 = vector.shape_cast %155 : vector<8x16xf32> to vector<1x8x1x16xf32>
    tpu.vector_store %arg6[%c0_161, %c0_162, %c12_163, %c0_164], %158 {strides = array<i32>} : memref<1x8x16x16xf32, #tpu.memory_space<vmem>>, vector<1x8x1x16xf32>,
    %c0_165 = arith.constant 0 : index
    %c13 = arith.constant 13 : index
    %c0_166 = arith.constant 0 : index
    %159 = vector.load %arg7[%c0_165, %c13, %c0_166] : memref<36x16x16xf32, #tpu.memory_space<vmem>>, vector<36x1x16xf32>
    %160 = vector.shape_cast %159 : vector<36x1x16xf32> to vector<36x16xf32>
    %cst_167 = arith.constant dense<0.000000e+00> : vector<8x16xf32>
    %161 = tpu.matmul %27, %160, %cst_167 {dimension_numbers = #tpu.dot_dimension_numbers<[1], [0], [0], [1], [0, 0, 1, 1], [], []>} : vector<8x36xf32>, vector<36x16xf32>, vector<8x16xf32> -> vector<8x16xf32>
    %162 = vector.broadcast %28 : vector<8x1xf32> to vector<8x16xf32>
    %163 = arith.addf %161, %162 : vector<8x16xf32>
    %cst_168 = arith.constant 0.000000e+00 : f32
    %164 = vector.broadcast %cst_168 : f32 to vector<8x16xf32>
    %165 = arith.maximumf %163, %164 : vector<8x16xf32>
    %c0_169 = arith.constant 0 : index
    %c0_170 = arith.constant 0 : index
    %c13_171 = arith.constant 13 : index
    %c0_172 = arith.constant 0 : index
    %166 = vector.load %arg6[%c0_169, %c0_170, %c13_171, %c0_172] : memref<1x8x16x16xf32, #tpu.memory_space<vmem>>, vector<1x8x1x16xf32>
    %167 = vector.shape_cast %166 : vector<1x8x1x16xf32> to vector<8x16xf32>
    %168 = vector.shape_cast %165 : vector<8x16xf32> to vector<1x8x1x16xf32>
    tpu.vector_store %arg6[%c0_169, %c0_170, %c13_171, %c0_172], %168 {strides = array<i32>} : memref<1x8x16x16xf32, #tpu.memory_space<vmem>>, vector<1x8x1x16xf32>,
    %c0_173 = arith.constant 0 : index
    %c14 = arith.constant 14 : index
    %c0_174 = arith.constant 0 : index
    %169 = vector.load %arg7[%c0_173, %c14, %c0_174] : memref<36x16x16xf32, #tpu.memory_space<vmem>>, vector<36x1x16xf32>
    %170 = vector.shape_cast %169 : vector<36x1x16xf32> to vector<36x16xf32>
    %cst_175 = arith.constant dense<0.000000e+00> : vector<8x16xf32>
    %171 = tpu.matmul %27, %170, %cst_175 {dimension_numbers = #tpu.dot_dimension_numbers<[1], [0], [0], [1], [0, 0, 1, 1], [], []>} : vector<8x36xf32>, vector<36x16xf32>, vector<8x16xf32> -> vector<8x16xf32>
    %172 = vector.broadcast %28 : vector<8x1xf32> to vector<8x16xf32>
    %173 = arith.addf %171, %172 : vector<8x16xf32>
    %cst_176 = arith.constant 0.000000e+00 : f32
    %174 = vector.broadcast %cst_176 : f32 to vector<8x16xf32>
    %175 = arith.maximumf %173, %174 : vector<8x16xf32>
    %c0_177 = arith.constant 0 : index
    %c0_178 = arith.constant 0 : index
    %c14_179 = arith.constant 14 : index
    %c0_180 = arith.constant 0 : index
    %176 = vector.load %arg6[%c0_177, %c0_178, %c14_179, %c0_180] : memref<1x8x16x16xf32, #tpu.memory_space<vmem>>, vector<1x8x1x16xf32>
    %177 = vector.shape_cast %176 : vector<1x8x1x16xf32> to vector<8x16xf32>
    %178 = vector.shape_cast %175 : vector<8x16xf32> to vector<1x8x1x16xf32>
    tpu.vector_store %arg6[%c0_177, %c0_178, %c14_179, %c0_180], %178 {strides = array<i32>} : memref<1x8x16x16xf32, #tpu.memory_space<vmem>>, vector<1x8x1x16xf32>,
    %c0_181 = arith.constant 0 : index
    %c15 = arith.constant 15 : index
    %c0_182 = arith.constant 0 : index
    %179 = vector.load %arg7[%c0_181, %c15, %c0_182] : memref<36x16x16xf32, #tpu.memory_space<vmem>>, vector<36x1x16xf32>
    %180 = vector.shape_cast %179 : vector<36x1x16xf32> to vector<36x16xf32>
    %cst_183 = arith.constant dense<0.000000e+00> : vector<8x16xf32>
    %181 = tpu.matmul %27, %180, %cst_183 {dimension_numbers = #tpu.dot_dimension_numbers<[1], [0], [0], [1], [0, 0, 1, 1], [], []>} : vector<8x36xf32>, vector<36x16xf32>, vector<8x16xf32> -> vector<8x16xf32>
    %182 = vector.broadcast %28 : vector<8x1xf32> to vector<8x16xf32>
    %183 = arith.addf %181, %182 : vector<8x16xf32>
    %cst_184 = arith.constant 0.000000e+00 : f32
    %184 = vector.broadcast %cst_184 : f32 to vector<8x16xf32>
    %185 = arith.maximumf %183, %184 : vector<8x16xf32>
    %c0_185 = arith.constant 0 : index
    %c0_186 = arith.constant 0 : index
    %c15_187 = arith.constant 15 : index
    %c0_188 = arith.constant 0 : index
    %186 = vector.load %arg6[%c0_185, %c0_186, %c15_187, %c0_188] : memref<1x8x16x16xf32, #tpu.memory_space<vmem>>, vector<1x8x1x16xf32>
    %187 = vector.shape_cast %186 : vector<1x8x1x16xf32> to vector<8x16xf32>
    %188 = vector.shape_cast %185 : vector<8x16xf32> to vector<1x8x1x16xf32>
    tpu.vector_store %arg6[%c0_185, %c0_186, %c15_187, %c0_188], %188 {strides = array<i32>} : memref<1x8x16x16xf32, #tpu.memory_space<vmem>>, vector<1x8x1x16xf32>,
    return
  }
  func.func @transform_0(%arg0: i32, %arg1: i32, %arg2: i32) -> (i32, i32, i32, i32) {
    %c0_i32 = arith.constant 0 : i32
    %c0_i32_0 = arith.constant 0 : i32
    %c0_i32_1 = arith.constant 0 : i32
    %c0_i32_2 = arith.constant 0 : i32
    return %arg0, %c0_i32, %c0_i32_0, %c0_i32_1 : i32, i32, i32, i32
  }
  func.func @transform_1(%arg0: i32, %arg1: i32, %arg2: i32) -> (i32, i32) {
    %c0_i32 = arith.constant 0 : i32
    %c0_i32_0 = arith.constant 0 : i32
    return %arg2, %c0_i32 : i32, i32
  }
  func.func @transform_2(%arg0: i32, %arg1: i32, %arg2: i32) -> (i32, i32) {
    %c0_i32 = arith.constant 0 : i32
    %c0_i32_0 = arith.constant 0 : i32
    return %arg2, %c0_i32 : i32, i32
  }
  func.func @transform_3(%arg0: i32, %arg1: i32, %arg2: i32) -> (i32, i32, i32, i32) {
    %c0_i32 = arith.constant 0 : i32
    %c0_i32_0 = arith.constant 0 : i32
    return %arg0, %arg2, %arg1, %c0_i32 : i32, i32, i32, i32
  }
}

</mosaic_0001>

<bundles_post_ra>
// kernel: tpu_custom_call.1
= control target key start
LH: loop header
LB: loop body
LE: loop exit
PB: predicated region body
PF: predicated region fallthrough
CT: control target
= control target key end

     0   :  { %8 = vsyncpa [#allocation4], 0  ;;  %s7702_s0 = inlined_call_operand.vmem [shape: f32[2,4,18,18], index: 0, kind: input, shape index: {}]   ;;  %s7703_s1 = inlined_call_operand.vmem [shape: f32[8,36], index: 1, kind: input, shape index: {}]   ;;  %s7704_s2 = inlined_call_operand.vmem [shape: f32[8,1], index: 2, kind: input, shape index: {}]   ;;  %s7705_s3 = inlined_call_operand.hbm [shape: f32[2,8,16,16], index: 3, kind: output, shape index: {}]  }
   0x1   :  { %10 = vsyncpa [#allocation4 + $0x1], 0  ;;  %s5777_s12 = smov 0   ;;  %s5779_s13 = smov 0  }
   0x2   :  { %s5781_s14 = smov 0   ;;  %s5783_s15 = smov 0  }
   0x3   :  { %s5785_s16 = smov 0   ;;  %s5787_s17 = smov 0  }
   0x4 LB: > { %s5152_s18 = sadd.s32 4294967295, %s5745_s17   ;;  %s5153_s19 = sadd.s32 4294967294, %s5745_s17   ;;  %s5745_s17 = sphi %s5787_s17, %s16_s17   ;;  %s5741_s16 = sphi %s5785_s16, %s7866_s16   ;;  %s5737_s15 = sphi %s5783_s15, %s7865_s15   ;;  %s5733_s14 = sphi %s5781_s14, %s7864_s14   ;;  %s5729_s13 = sphi %s5779_s13, %s7863_s13   ;;  %s5725_s12 = sphi %s5777_s12, %s7862_s12  }
   0x5   : > { %s35_s20 = sadd.s32 1, %s5741_s16  ;;  %s124_s21 = sadd.s32 1, %s5733_s14 }
   0x6   : > { %p37_p0 = scmp.ge.s32.totalorder %s35_s20, 2  ;;  %p134_p1 = scmp.ne.s32.totalorder %s5733_s14, %s5729_s13 }
   0x7   : > { %p135_p2 = scmp.eq.s32.totalorder %s5152_s18, 1  ;;  %p140_p3 = scmp.ne.s32.totalorder %s5729_s13, %s5725_s12 }
   0x8   : > { %s7868_s20 = smov (%p37_p0, %s35_s20), 0  ;;  %p141_p5 = scmp.eq.s32.totalorder %s5153_s19, 1 }
   0x9   : > { %p5817_p4 = por %p135_p2, %p134_p1  ;;  %s117_s23 = ssub.s32 %s5741_s16, %s7868_s20 }
   0xa   : > { %p5158_p6 = scmp.ge.s32.totalorder %s5745_s17, 1  ;;  %p122_p7 = scmp.eq.s32.totalorder %s117_s23, 0 }
   0xb   : > { %p5824_p8 = por %p141_p5, %p140_p3  ;;  %p181_p9 = scmp.lt.s32.totalorder %s5745_s17, 3 }
   0xc   : > { %s5830_s25 = scalar_select %p122_p7, %s5733_s14, %s124_s21  }
   0xd   : > { %p182_p10 = pnand %p5158_p6, %p181_p9 }
   0xf   : > { %185 = sbr.rel (%p182_p10) target bundleno = 656 (0x290), region = 32 }
  0x16   : > { %p213_p11 = scmp.lt.s32.totalorder %s5737_s15, 1  ;;  %vm236_vm0 = vcmask 130048   ;;  %s5747_s4 = smov 126   ;;  %v7708_v12 = vmov 0.0|0.0   ;;  %vm5750_vm1 = vmmov 0   ;;  %v7706_v15 = vmov 0.0  }
  0x17   : > { %s5748_s5 = smov 127   ;;  %5503 = vmatprep.subr.bf16.mxu0 %v7708_v12  ;;  %5509 = vmatprep.subr.bf16.mxu1 %v7708_v12  ;;  %vm653_vm2 = vcmask 1041409   ;;  %vm656_vm3 = vcmask 1042434   ;;  %vm659_vm4 = vcmask 1043459   ;;  %vm662_vm5 = vcmask 1044484   ;;  %s210_s21 = sand.u32 1, %s5729_s13  }
  0x18   : > { %s214_s26 = scalar_select %p213_p11, %s5737_s15, 1  ;;  %5305 = vmatprep.mubr.msk.f32.mxu0 %vm5750_vm1, %v7706_v15  ;;  %5318 = vmatprep.mubr.msk.f32.mxu1 %vm5750_vm1, %v7706_v15  ;;  %vm665_vm6 = vcmask 1045509   ;;  %vm668_vm7 = vcmask 1046534   ;;  %vm671_vm8 = vcmask 1047559   ;;  %vm729_vm9 = vcmask 1043456  }
  0x19   : > { %vm725_vm10 = vcmask 293888   ;;  %vm861_vm11 = vcmask 122880   ;;  %s5159_s23 = sshll.u32 %s210_s21, 7  ;;  %s5754_s6 = smov [#allocation3]  }
  0x1a   : > { %s5599_s27 = smul.u32 96, %s214_s26  ;;  %s7271_s26 = scalar_lea.vmem [#allocation3], %s5159_s23 }
  0x1b   : > { %s5044_s28 = sshll.u32 %s7271_s26, 4  ;;  %s5671_s7 = sshll.u32 %s5754_s6, 4  ;;  %s7644_s28 = int_to_ptr.vmem [resolvable:$true] %s5044_s28  ;;  %s5672_s7 = int_to_ptr.vmem [resolvable:$false] %s5671_s7 }
  0x1c   : > { %s5837_s30 = scalar_lea.vmem %s7702_s0, %s5599_s27  ;;  %s5198_s27 = sshll.u32 %s5737_s15, 11 }
  0x1d   : > { %v296_v0 = vld [vmem:[%s5837_s30 + $0x18] sm:$0xff]  ;;  %v294_v1 = vld [vmem:[%s5837_s30] sm:$0xff]  ;;  %v298_v2 = vld [vmem:[%s5837_s30 + $0x30] sm:$0xff]  ;;  %s7656_s15 = scalar_lea.sflag [#allocation4], %s210_s21  ;;  %s5673_s8 = scalar_lea.vmem %s5672_s7, 4096 }
  0x1e   : > { %314 = vrot.lane.b32.xlu0 %v296_v0, %s5747_s4  ;;  %310 = vrot.lane.b32.xlu1 %v294_v1, %s5747_s4  ;;  %v300_v3 = vld [vmem:[%s5837_s30 + $0x48] sm:$0xff]  ;;  %v362_v4 = vld [vmem:[%s5837_s30 + $0x19] sm:$0xff]  ;;  %237 = vst.msk [vmem:[#allocation2] sm:$0xff] %vm236_vm0, %v294_v1  ;;  %239 = vst.msk [vmem:[#allocation2 + $0x10] sm:$0xff] %vm236_vm0, %v296_v0  ;;  %p5674_p1 = scmp.lt.s32.totalorder %s7644_s28, %s5672_s7 }
  0x1f   : > { %241 = vst.msk [vmem:[#allocation2 + $0x20] sm:$0xff] %vm236_vm0, %v298_v2  ;;  %v364_v5 = vld [vmem:[%s5837_s30 + $0x31] sm:$0xff]  ;;  %v366_v6 = vld [vmem:[%s5837_s30 + $0x49] sm:$0xff]  ;;  %v360_v7 = vld [vmem:[%s5837_s30 + $0x1] sm:$0xff] }
  0x20   : > { %243 = vst.msk [vmem:[#allocation2 + $0x30] sm:$0xff] %vm236_vm0, %v300_v3  ;;  %354 = vst.msk [vmem:[#allocation2 + $0xd0] sm:$0xff] %vm236_vm0, %v362_v4  ;;  %v475_v8 = vld [vmem:[%s5837_s30 + $0x2] sm:$0xff]  ;;  %v477_v9 = vld [vmem:[%s5837_s30 + $0x1a] sm:$0xff] }
  0x21   : > { %v479_v10 = vld [vmem:[%s5837_s30 + $0x32] sm:$0xff]  ;;  %352 = vst.msk [vmem:[#allocation2 + $0xc0] sm:$0xff] %vm236_vm0, %v360_v7  ;;  %356 = vst.msk [vmem:[#allocation2 + $0xe0] sm:$0xff] %vm236_vm0, %v364_v5  ;;  %v481_v11 = vld [vmem:[%s5837_s30 + $0x4a] sm:$0xff] }
  0x22   : > { %358 = vst.msk [vmem:[#allocation2 + $0xf0] sm:$0xff] %vm236_vm0, %v366_v6  ;;  %467 = vst.msk [vmem:[#allocation2 + $0x180] sm:$0xff] %vm236_vm0, %v475_v8  ;;  %318 = vrot.lane.b32.xlu0 %v298_v2, %s5747_s4  ;;  %322 = vrot.lane.b32.xlu1 %v300_v3, %s5747_s4  ;;  %v299_v13 = vld [vmem:[%s5837_s30 + $0x38] sm:$0xff]  ;;  %v297_v14 = vld [vmem:[%s5837_s30 + $0x20] sm:$0xff] }
  0x23   : > { %469 = vst.msk [vmem:[#allocation2 + $0x190] sm:$0xff] %vm236_vm0, %v477_v9  ;;  %471 = vst.msk [vmem:[#allocation2 + $0x1a0] sm:$0xff] %vm236_vm0, %v479_v10  ;;  %v301_v16 = vld [vmem:[%s5837_s30 + $0x50] sm:$0xff]  ;;  %v295_v17 = vld [vmem:[%s5837_s30 + $0x8] sm:$0xff] }
  0x24   : > { %473 = vst.msk [vmem:[#allocation2 + $0x1b0] sm:$0xff] %vm236_vm0, %v481_v11  ;;  %v363_v18 = vld [vmem:[%s5837_s30 + $0x21] sm:$0xff]  ;;  %v365_v19 = vld [vmem:[%s5837_s30 + $0x39] sm:$0xff]  ;;  %v367_v20 = vld [vmem:[%s5837_s30 + $0x51] sm:$0xff] }
  0x25   : > { %v361_v21 = vld [vmem:[%s5837_s30 + $0x9] sm:$0xff]  ;;  %v480_v24 = vld [vmem:[%s5837_s30 + $0x3a] sm:$0xff]  ;;  %v482_v31 = vld [vmem:[%s5837_s30 + $0x52] sm:$0xff] }
  0x26   : > { %265 = vrot.lane.b32.xlu1 %v296_v0, %s5748_s5  ;;  %261 = vrot.lane.b32.xlu0 %v294_v1, %s5748_s5  ;;  %v476_v22 = vld [vmem:[%s5837_s30 + $0xa] sm:$0xff]  ;;  %v478_v23 = vld [vmem:[%s5837_s30 + $0x22] sm:$0xff]  ;;  %v5922_v26 = vld [vmem:[#allocation2 + $0x20] sm:$0x1] }
  0x27   : > { %v5920_v25 = vld [vmem:[#allocation2 + $0x10] sm:$0x1]  ;;  %v655_v34 = vrot.slane %v5922_v26, 6  ;;  %v5940_v36 = vld [vmem:[#allocation2 + $0x11] sm:$0x1] }
  0x28   : > { %v5924_v27 = vld [vmem:[#allocation2 + $0x30] sm:$0x1]  ;;  %v5928_v28 = vld [vmem:[#allocation2 + $0xc0] sm:$0x1]  ;;  %v652_v33 = vrot.slane %v5920_v25, 7  ;;  %v942_v48 = vrot.slane %v5940_v36, 7 }
  0x29   : > { %v5930_v29 = vld [vmem:[#allocation2 + $0xd0] sm:$0x1]  ;;  %v5932_v30 = vld [vmem:[#allocation2 + $0xe0] sm:$0x1]  ;;  %v5942_v37 = vld [vmem:[#allocation2 + $0x21] sm:$0x1] }
  0x2a   : > { %269 = vrot.lane.b32.xlu1 %v298_v2, %s5748_s5  ;;  %380 = vrot.lane.b32.xlu0 %v362_v4, %s5748_s5  ;;  %v5935_v32 = vld [vmem:[#allocation2 + $0xf0] sm:$0x1]  ;;  %v5944_v38 = vld [vmem:[#allocation2 + $0x31] sm:$0x1]  ;;  %v5946_v39 = vld [vmem:[#allocation2 + $0xc1] sm:$0x1] }
  0x2b   : > { %v5948_v40 = vld [vmem:[#allocation2 + $0xd1] sm:$0x1]  ;;  %v5950_v41 = vld [vmem:[#allocation2 + $0xe1] sm:$0x1]  ;;  %v5958_v45 = vld [vmem:[#allocation2 + $0x190] sm:$0x1] }
  0x2c   : > { %v5956_v44 = vld [vmem:[#allocation2 + $0xf1] sm:$0x1]  ;;  %v944_v49 = vrot.slane %v5942_v37, 6  ;;  %v5969_v55 = vld [vmem:[#allocation2 + $0x1a0] sm:$0x1]  ;;  %v701_v56 = vrot.slane %v5958_v45, 7 }
  0x2d   : > { %v5972_v57 = vld [vmem:[#allocation2 + $0x191] sm:$0x1]  ;;  %v5976_v58 = vld [vmem:[#allocation2 + $0x1b0] sm:$0x1]  ;;  %v5978_v59 = vld [vmem:[#allocation2 + $0x1a1] sm:$0x1] }
  0x2e   : > { %273 = vrot.lane.b32.xlu1 %v300_v3, %s5748_s5  ;;  %384 = vrot.lane.b32.xlu0 %v364_v5, %s5748_s5  ;;  %v5980_v60 = vld [vmem:[#allocation2 + $0x1b1] sm:$0x1]  ;;  %v5982_v61 = vld [vmem:[#allocation2 + $0x12] sm:$0x1]  ;;  %v5984_v62 = vld [vmem:[#allocation2 + $0x22] sm:$0x1] }
  0x2f   : > { %v5986_v63 = vld [vmem:[#allocation2 + $0x32] sm:$0x1]  ;;  %v703_v0 = vrot.slane %v5969_v55, 6  ;;  %v5990_v2 = vld [vmem:[#allocation2 + $0xc2] sm:$0x1] }
  0x30   : > { %v5992_v3 = vld [vmem:[#allocation2 + $0xd2] sm:$0x1]  ;;  %v870_v15 = vld [vmem:[#allocation2 + $0x1] sm:$0x1]  ;;  %v599_v12 = vld [vmem:[#allocation2 + $0x180] sm:$0x1] }
  0x31   : > { %v6030_v54 = vld [vmem:[#allocation2 + $0x1a2] sm:$0x1]  ;;  %v6032_v47 = vld [vmem:[#allocation2 + $0x1b2] sm:$0x1]  ;;  %v6034_v53 = vld [vmem:[#allocation2 + $0x1a3] sm:$0x1] }
  0x32   : > { %388 = vrot.lane.b32.xlu1 %v366_v6, %s5748_s5  ;;  %376 = vrot.lane.b32.xlu0 %v360_v7, %s5748_s5  ;;  %v6041_v43 = vld [vmem:[#allocation2 + $0x1b3] sm:$0x1]  ;;  %v6043_v42 = vld [vmem:[#allocation2 + $0x14] sm:$0x1]  ;;  %v6053_v52 = vld [vmem:[#allocation2 + $0x24] sm:$0x1] }
  0x33   : > { %v6068_v51 = vld [vmem:[#allocation2 + $0xe4] sm:$0x1]  ;;  %v1424_v50 = vld [vmem:[#allocation2 + $0x3] sm:$0x1]  ;;  %v1171_v35 = vld [vmem:[#allocation2 + $0x182] sm:$0x1] }
  0x34   : > { %7742 = vst [vmem:[#allocation14_spill] sm:$0xff] %v6068_v51  ;;  %v6073_v36 = vld [vmem:[#allocation2 + $0x15] sm:$0x1]  ;;  %v6100_v26 = vld [vmem:[#allocation2 + $0x1b4] sm:$0x1] }
  0x35   : > { %v6077_v45 = vld [vmem:[#allocation2 + $0x35] sm:$0x1]  ;;  %v6199_v51 = vld [vmem:[#allocation2 + $0x37] sm:$0x1] }
  0x36   : > { %491 = vrot.lane.b32.xlu1 %v475_v8, %s5748_s5  ;;  %425 = vrot.lane.b32.xlu0 %v360_v7, %s5747_s4  ;;  %v5998_v7 = vld [vmem:[#allocation2 + $0xf2] sm:$0x1]  ;;  %v6094_v1 = vld [vmem:[#allocation2 + $0xf5] sm:$0x1] }
  0x37   : > { %7735 = vst [vmem:[#allocation7_spill] sm:$0xff] %v5998_v7  ;;  %7747 = vst [vmem:[#allocation19_spill] sm:$0xff] %v6094_v1  ;;  %v233_v7 = vld [vmem:[%s5837_s30 + $0x38] sm:$0xff]  ;;  %v1701_v1 = vld [vmem:[#allocation2 + $0x4] sm:$0x1] }
  0x38   : > { %242 = vst.msk [vmem:[#allocation2 + $0x28] sm:$0xff] %vm236_vm0, %v233_v7  ;;  %v6166_v7 = vld [vmem:[#allocation2 + $0xf6] sm:$0x1] }
  0x3a   : > { %495 = vrot.lane.b32.xlu1 %v477_v9, %s5748_s5  ;;  %429 = vrot.lane.b32.xlu0 %v362_v4, %s5747_s4  ;;  %v6055_v4 = vld [vmem:[#allocation2 + $0x34] sm:$0x1] }
  0x3e   : > { %499 = vrot.lane.b32.xlu1 %v479_v10, %s5748_s5  ;;  %433 = vrot.lane.b32.xlu0 %v364_v5, %s5747_s4  ;;  %v894_v5 = vld [vmem:[#allocation2 + $0x181] sm:$0x1] }
  0x42   : > { %503 = vrot.lane.b32.xlu1 %v481_v11, %s5748_s5  ;;  %437 = vrot.lane.b32.xlu0 %v366_v6, %s5747_s4  ;;  %v5996_v6 = vld [vmem:[#allocation2 + $0xe2] sm:$0x1] }
  0x43   : > { %7734 = vst [vmem:[#allocation6_spill] sm:$0xff] %v5996_v6  ;;  %v346_v6 = vld [vmem:[%s5837_s30 + $0x21] sm:$0xff] }
  0x44   : > { %355 = vst.msk [vmem:[#allocation2 + $0xd8] sm:$0xff] %vm236_vm0, %v346_v6  ;;  %v7753_v6 = vrot.slane %v5924_v27, 5  ;;  %v7757_v27 = vrot.slane %v5978_v59, 6  ;;  %v6203_v59 = vld [vmem:[#allocation2 + $0xe7] sm:$0x1] }
  0x45   : > { %7761 = vst [vmem:[#allocation23_spill] sm:$0xff] %v6203_v59 }
  0x46   : > { %548 = vrot.lane.b32.xlu1 %v479_v10, %s5747_s4  ;;  %544 = vrot.lane.b32.xlu0 %v477_v9, %s5747_s4 }
  0x4a   : > { %552 = vrot.lane.b32.xlu1 %v481_v11, %s5747_s4  ;;  %540 = vrot.lane.b32.xlu0 %v475_v8, %s5747_s4  ;;  %v6057_v11 = vld [vmem:[#allocation2 + $0xc4] sm:$0x1]  ;;  %v1147_v8 = vld [vmem:[#allocation2 + $0x2] sm:$0x1] }
  0x4b   : > { %7740 = vst [vmem:[#allocation12_spill] sm:$0xff] %v6057_v11  ;;  %v344_v11 = vld [vmem:[%s5837_s30 + $0x9] sm:$0xff] }
  0x4c   : > { %353 = vst.msk [vmem:[#allocation2 + $0xc8] sm:$0xff] %vm236_vm0, %v344_v11 }
  0x4e   : > { %320 = vrot.lane.b32.xlu1 %v299_v13, %s5747_s4  ;;  %316 = vrot.lane.b32.xlu0 %v297_v14, %s5747_s4 }
  0x52   : > { %324 = vrot.lane.b32.xlu1 %v301_v16, %s5747_s4  ;;  %312 = vrot.lane.b32.xlu0 %v295_v17, %s5747_s4 }
  0x56   : > { %267 = vrot.lane.b32.xlu1 %v297_v14, %s5748_s5  ;;  %263 = vrot.lane.b32.xlu0 %v295_v17, %s5748_s5  ;;  %v6008_v17 = vld [vmem:[#allocation2 + $0x13] sm:$0x1]  ;;  %v943_v14 = vsel %vm653_vm2, %v942_v48, %v870_v15  ;;  %v6075_v15 = vld [vmem:[#allocation2 + $0x25] sm:$0x1]  ;;  %v6081_v48 = vld [vmem:[#allocation2 + $0xd5] sm:$0x1] }
  0x57   : > { %7745 = vst [vmem:[#allocation17_spill] sm:$0xff] %v6081_v48  ;;  %v945_v25 = vsel %vm656_vm3, %v944_v49, %v943_v14  ;;  %v6110_v14 = vld [vmem:[#allocation2 + $0x1a5] sm:$0x1]  ;;  %v6135_v49 = vld [vmem:[#allocation2 + $0x1b5] sm:$0x1] }
  0x58   : > { %v6183_v48 = vld [vmem:[#allocation2 + $0x27] sm:$0x1] }
  0x5a   : > { %271 = vrot.lane.b32.xlu1 %v299_v13, %s5748_s5  ;;  %382 = vrot.lane.b32.xlu0 %v363_v18, %s5748_s5  ;;  %v575_v13 = vld [vmem:[#allocation2] sm:$0x1] }
  0x5b   : > { %v654_v46 = vsel %vm653_vm2, %v652_v33, %v575_v13  ;;  %v6066_v13 = vld [vmem:[#allocation2 + $0xd4] sm:$0x1] }
  0x5c   : > { %7741 = vst [vmem:[#allocation13_spill] sm:$0xff] %v6066_v13  ;;  %v657_v33 = vsel %vm656_vm3, %v655_v34, %v654_v46  ;;  %v7748_v34 = vrot.slane %v5972_v57, 7  ;;  %v7749_v57 = vrot.slane %v5982_v61, 7  ;;  %v235_v46 = vld [vmem:[%s5837_s30 + $0x50] sm:$0xff]  ;;  %v7750_v61 = vrot.slane %v6008_v17, 7 }
  0x5d   : > { %244 = vst.msk [vmem:[#allocation2 + $0x38] sm:$0xff] %vm236_vm0, %v235_v46  ;;  %v6162_v17 = vld [vmem:[#allocation2 + $0xd6] sm:$0x1]  ;;  %v6171_v11 = vsel %vm659_vm4, %v7753_v6, %v657_v33  ;;  %v7760_v6 = vrot.slane %v6030_v54, 6  ;;  %v6201_v13 = vld [vmem:[#allocation2 + $0xd7] sm:$0x1] }
  0x5e   : > { %275 = vrot.lane.b32.xlu1 %v301_v16, %s5748_s5  ;;  %386 = vrot.lane.b32.xlu0 %v365_v19, %s5748_s5  ;;  %v6071_v16 = vld [vmem:[#allocation2 + $0xf4] sm:$0x1]  ;;  %v985_v37 = vsel %vm653_vm2, %v7748_v34, %v894_v5  ;;  %v1220_v5 = vsel %vm653_vm2, %v7749_v57, %v1147_v8  ;;  %v1497_v8 = vsel %vm653_vm2, %v7750_v61, %v1424_v50  ;;  %v6152_v61 = vld [vmem:[#allocation2 + $0x26] sm:$0x1]  ;;  %v6154_v34 = vld [vmem:[#allocation2 + $0x36] sm:$0x1] }
  0x5f   : > { %7743 = vst [vmem:[#allocation15_spill] sm:$0xff] %v6071_v16  ;;  %v6159_v50 = vld [vmem:[#allocation2 + $0xc6] sm:$0x1]  ;;  %7752 = vst [vmem:[#allocation21_spill] sm:$0xff] %v6162_v17  ;;  %v987_v33 = vsel %vm656_vm3, %v7757_v27, %v985_v37  ;;  %v1725_v16 = vld [vmem:[#allocation2 + $0x184] sm:$0x1] }
  0x60   : > { %7751 = vst [vmem:[#allocation20_spill] sm:$0xff] %v6159_v50  ;;  %v2255_v27 = vld [vmem:[#allocation2 + $0x6] sm:$0x1]  ;;  %v6232_v54 = vld [vmem:[#allocation2 + $0x196] sm:$0x1] }
  0x61   : > { %v6234_v17 = vld [vmem:[#allocation2 + $0x1a6] sm:$0x1] }
  0x62   : > { %390 = vrot.lane.b32.xlu1 %v367_v20, %s5748_s5  ;;  %378 = vrot.lane.b32.xlu0 %v361_v21, %s5748_s5 }
  0x66   : > { %493 = vrot.lane.b32.xlu1 %v476_v22, %s5748_s5  ;;  %427 = vrot.lane.b32.xlu0 %v361_v21, %s5747_s4  ;;  %v6014_v21 = vld [vmem:[#allocation2 + $0x33] sm:$0x1] }
  0x6a   : > { %497 = vrot.lane.b32.xlu1 %v478_v23, %s5748_s5  ;;  %431 = vrot.lane.b32.xlu0 %v363_v18, %s5747_s4  ;;  %v6010_v18 = vld [vmem:[#allocation2 + $0x23] sm:$0x1] }
  0x6e   : > { %501 = vrot.lane.b32.xlu1 %v480_v24, %s5748_s5  ;;  %435 = vrot.lane.b32.xlu0 %v365_v19, %s5747_s4  ;;  %v6026_v19 = vld [vmem:[#allocation2 + $0x192] sm:$0x1] }
  0x6f   : > { %v1261_v10 = vrot.slane %v6026_v19, 7  ;;  %v702_v19 = vsel %vm653_vm2, %v701_v56, %v599_v12  ;;  %v6079_v12 = vld [vmem:[#allocation2 + $0xc5] sm:$0x1] }
  0x70   : > { %7744 = vst [vmem:[#allocation16_spill] sm:$0xff] %v6079_v12  ;;  %v6083_v56 = vld [vmem:[#allocation2 + $0xe5] sm:$0x1]  ;;  %v704_v9 = vsel %vm656_vm3, %v703_v0, %v702_v19  ;;  %v6108_v0 = vld [vmem:[#allocation2 + $0x195] sm:$0x1] }
  0x71   : > { %7746 = vst [vmem:[#allocation18_spill] sm:$0xff] %v6083_v56  ;;  %v6112_v19 = vld [vmem:[#allocation2 + $0x16] sm:$0x1]  ;;  %v1262_v57 = vsel %vm653_vm2, %v1261_v10, %v1171_v35  ;;  %v2092_v35 = vrot.slane %v6108_v0, 7  ;;  %v7754_v0 = vrot.slane %v5944_v38, 5  ;;  %v7758_v38 = vrot.slane %v5984_v62, 6 }
  0x72   : > { %505 = vrot.lane.b32.xlu1 %v482_v31, %s5748_s5  ;;  %439 = vrot.lane.b32.xlu0 %v367_v20, %s5747_s4  ;;  %v6028_v20 = vld [vmem:[#allocation2 + $0x193] sm:$0x1]  ;;  %v2533_v56 = vld [vmem:[#allocation2 + $0x17] sm:$0x1]  ;;  %v6185_v12 = vld [vmem:[#allocation2 + $0xc7] sm:$0x1] }
  0x73   : > { %v6176_v10 = vsel %vm659_vm4, %v7754_v0, %v945_v25  ;;  %v1222_v25 = vsel %vm656_vm3, %v7758_v38, %v1220_v5  ;;  %v1978_v0 = vld [vmem:[#allocation2 + $0x5] sm:$0x1]  ;;  %v2606_v5 = vrot.slane %v6183_v48, 6  ;;  %v7765_v48 = vrot.slane %v6043_v42, 7  ;;  %s5667_s5 = scalar_lea.vmem %s7644_s28, 2048 }
  0x74   : > { %v2002_v38 = vld [vmem:[#allocation2 + $0x185] sm:$0x1]  ;;  %p5668_p12 = scmp.ne.s32.totalorder %s7644_s28, %s5667_s5  ;;  %p5675_p2 = scmp.lt.s32.totalorder %s5673_s8, %s5667_s5 }
  0x76   : > { %550 = vrot.lane.b32.xlu1 %v480_v24, %s5747_s4  ;;  %546 = vrot.lane.b32.xlu0 %v478_v23, %s5747_s4  ;;  %v6018_v23 = vld [vmem:[#allocation2 + $0xd3] sm:$0x1]  ;;  %v6020_v24 = vld [vmem:[#allocation2 + $0xe3] sm:$0x1]  ;;  %p5669_p13 = pnand %p5668_p12, %p5817_p4  ;;  %p5676_p3 = por %p5675_p2, %p5674_p1 }
  0x77   : > { %7737 = vst [vmem:[#allocation9_spill] sm:$0xff] %v6018_v23  ;;  %7738 = vst [vmem:[#allocation10_spill] sm:$0xff] %v6020_v24  ;;  %v6098_v24 = vld [vmem:[#allocation2 + $0x1a4] sm:$0x1]  ;;  %v229_v23 = vld [vmem:[%s5837_s30 + $0x8] sm:$0xff] }
  0x78   : > { %238 = vst.msk [vmem:[#allocation2 + $0x8] sm:$0xff] %vm236_vm0, %v229_v23  ;;  %v348_v23 = vld [vmem:[%s5837_s30 + $0x39] sm:$0xff]  ;;  %p5670_p0 = pneg %p5669_p13 }
  0x79   : > { %357 = vst.msk [vmem:[#allocation2 + $0xe8] sm:$0xff] %vm236_vm0, %v348_v23  ;;  %v7755_v23 = vrot.slane %v5976_v58, 5  ;;  %v7759_v58 = vrot.slane %v6010_v18, 6  ;;  %v2532_v18 = vld [vmem:[#allocation2 + $0x7] sm:$0x1] }
  0x7a   : > { %554 = vrot.lane.b32.xlu1 %v482_v31, %s5747_s4  ;;  %542 = vrot.lane.b32.xlu0 %v476_v22, %s5747_s4  ;;  %v6016_v22 = vld [vmem:[#allocation2 + $0xc3] sm:$0x1]  ;;  %v6022_v31 = vld [vmem:[#allocation2 + $0xf3] sm:$0x1]  ;;  %s7642_s4 = scalar_lea.hbm %s7705_s3, %s5198_s27  ;;  %p5677_p5 = pnand %p5676_p3, %p5670_p0 }
  0x7b   : > { %7736 = vst [vmem:[#allocation8_spill] sm:$0xff] %v6016_v22  ;;  %7739 = vst [vmem:[#allocation11_spill] sm:$0xff] %v6022_v31  ;;  %v6096_v31 = vld [vmem:[#allocation2 + $0x194] sm:$0x1]  ;;  %v231_v22 = vld [vmem:[%s5837_s30 + $0x20] sm:$0xff]  ;;  %v6181_v55 = vsel %vm659_vm4, %v7755_v23, %v704_v9  ;;  %v1499_v9 = vsel %vm656_vm3, %v7759_v58, %v1497_v8  ;;  %v1264_v23 = vsel %vm656_vm3, %v7760_v6, %v1262_v57  ;;  %v7764_v58 = vrot.slane %v6028_v20, 7 }
  0x7c   : > { %240 = vst.msk [vmem:[#allocation2 + $0x18] sm:$0xff] %vm236_vm0, %v231_v22  ;;  %v350_v22 = vld [vmem:[%s5837_s30 + $0x51] sm:$0xff]  ;;  %v1815_v46 = vrot.slane %v6096_v31, 7  ;;  %v6164_v31 = vld [vmem:[#allocation2 + $0xe6] sm:$0x1]  ;;  %7756 = vst [vmem:[#allocation22_spill] sm:$0xff] %v6181_v55  ;;  %v1774_v6 = vsel %vm653_vm2, %v7765_v48, %v1701_v1 }
  0x7d   : > { %359 = vst.msk [vmem:[#allocation2 + $0xf8] sm:$0xff] %vm236_vm0, %v350_v22  ;;  %v1448_v22 = vld [vmem:[#allocation2 + $0x183] sm:$0x1]  ;;  %v6209_v57 = vld [vmem:[#allocation2 + $0xf7] sm:$0x1]  ;;  %v2604_v55 = vrot.slane %v2533_v56, 7 }
  0x7e   : > { %7762 = vst [vmem:[#allocation24_spill] sm:$0xff] %v6209_v57  ;;  %v1539_v56 = vsel %vm653_vm2, %v7764_v58, %v1448_v22  ;;  %v7767_v20 = vrot.slane %v6073_v36, 7  ;;  %v1816_v1 = vsel %vm653_vm2, %v1815_v46, %v1725_v16  ;;  %v2093_v22 = vsel %vm653_vm2, %v2092_v35, %v2002_v38  ;;  %v6247_v58 = vld [vmem:[#allocation2 + $0x1b6] sm:$0x1]  ;;  %v6249_v48 = vld [vmem:[#allocation2 + $0x197] sm:$0x1] }
  0x7f   : > { %v6251_v8 = vld [vmem:[#allocation2 + $0x1a7] sm:$0x1]  ;;  %v7769_v36 = vrot.slane %v6032_v47, 5  ;;  %v7770_v46 = vrot.slane %v6112_v19, 7 }
  0x80   : > { %v2051_v42 = vsel %vm653_vm2, %v7767_v20, %v1978_v0  ;;  %v2605_v0 = vsel %vm653_vm2, %v2604_v55, %v2532_v18  ;;  %v461_v18 = vld [vmem:[%s5837_s30 + $0x22] sm:$0xff]  ;;  %v7774_v20 = vrot.slane %v6098_v24, 6  ;;  %v7781_v55 = vrot.slane %v6041_v43, 5 }
  0x81   : > { %v6264_v35 = vsel %vm659_vm4, %v7769_v36, %v1264_v23  ;;  %v2369_v23 = vrot.slane %v6232_v54, 7  ;;  %v2279_v54 = vld [vmem:[#allocation2 + $0x186] sm:$0x1]  ;;  %v6298_v36 = vld [vmem:[#allocation2 + $0xc8] sm:$0x1]  ;;  %470 = vst.msk [vmem:[#allocation2 + $0x198] sm:$0xff] %vm236_vm0, %v461_v18 }
  0x82   : > { %7776 = vst [vmem:[#allocation25_spill] sm:$0xff] %v6298_v36  ;;  %v2809_v36 = vld [vmem:[#allocation2 + $0x8] sm:$0x1] }
  0x83   : > { %v6272_v38 = vld [vmem:[#allocation2 + $0x18] sm:$0x1] }
  0x90   : > { %v315_v37 = vpop.permute.xlu0 %314  ;;  %v311_v62 = vpop.permute.xlu1 %310 }
  0x91   : > { %337 = vst.msk [vmem:[#allocation2 + $0x90] sm:$0xff] %vm236_vm0, %v315_v37  ;;  %335 = vst.msk [vmem:[#allocation2 + $0x80] sm:$0xff] %vm236_vm0, %v311_v62  ;;  %v7763_v62 = vrot.slane %v5980_v60, 5  ;;  %v459_v37 = vld [vmem:[%s5837_s30 + $0xa] sm:$0xff] }
  0x92   : > { %468 = vst.msk [vmem:[#allocation2 + $0x188] sm:$0xff] %vm236_vm0, %v459_v37  ;;  %v6274_v37 = vld [vmem:[#allocation2 + $0x28] sm:$0x1] }
  0x93   : > { %v6223_v50 = vsel %vm659_vm4, %v7763_v62, %v987_v33  ;;  %v7766_v33 = vrot.slane %v5986_v63, 5  ;;  %v7768_v63 = vrot.slane %v6014_v21, 5  ;;  %v7771_v21 = vrot.slane %v6034_v53, 6 }
  0x94   : > { %v319_v59 = vpop.permute.xlu0 %318  ;;  %v323_v60 = vpop.permute.xlu1 %322 }
  0x95   : > { %v6240_v62 = vsel %vm659_vm4, %v7766_v33, %v1222_v25  ;;  %339 = vst.msk [vmem:[#allocation2 + $0xa0] sm:$0xff] %vm236_vm0, %v319_v59  ;;  %341 = vst.msk [vmem:[#allocation2 + $0xb0] sm:$0xff] %vm236_vm0, %v323_v60  ;;  %v6259_v16 = vsel %vm659_vm4, %v7768_v63, %v1499_v9  ;;  %v2328_v25 = vsel %vm653_vm2, %v7770_v46, %v2255_v27  ;;  %v6270_v59 = vld [vmem:[#allocation2 + $0x1b7] sm:$0x1]  ;;  %v7772_v9 = vrot.slane %v6053_v52, 6  ;;  %v463_v60 = vld [vmem:[%s5837_s30 + $0x3a] sm:$0xff] }
  0x96   : > { %v1541_v47 = vsel %vm656_vm3, %v7771_v21, %v1539_v56  ;;  %v6284_v27 = vld [vmem:[#allocation2 + $0x38] sm:$0x1]  ;;  %v7773_v33 = vrot.slane %v6075_v15, 6  ;;  %v1818_v56 = vsel %vm656_vm3, %v7774_v20, %v1816_v1  ;;  %v7775_v52 = vrot.slane %v6110_v14, 6  ;;  %472 = vst.msk [vmem:[#allocation2 + $0x1a8] sm:$0xff] %vm236_vm0, %v463_v60 }
  0x97   : > { %v1776_v19 = vsel %vm656_vm3, %v7772_v9, %v1774_v6  ;;  %v6300_v46 = vld [vmem:[#allocation2 + $0xd8] sm:$0x1]  ;;  %v7778_v1 = vrot.slane %v6152_v61, 6  ;;  %v6311_v20 = vld [vmem:[#allocation2 + $0xe8] sm:$0x1] }
  0x98   : > { %v2053_v53 = vsel %vm656_vm3, %v7773_v33, %v2051_v42  ;;  %v2095_v6 = vsel %vm656_vm3, %v7775_v52, %v2093_v22  ;;  %7777 = vst [vmem:[#allocation26_spill] sm:$0xff] %v6300_v46  ;;  %v465_v21 = vld [vmem:[%s5837_s30 + $0x52] sm:$0xff]  ;;  %v266_v15 = vpop.permute.xlu1 %265  ;;  %v262_v24 = vpop.permute.xlu0 %261  ;;  %v584_v42 = vld [vmem:[#allocation2 + $0x90] sm:$0x1]  ;;  %v2607_v22 = vsel %vm656_vm3, %v2606_v5, %v2605_v0  ;;  %7779 = vst [vmem:[#allocation27_spill] sm:$0xff] %v6311_v20  ;;  %v7782_v5 = vrot.slane %v6055_v4, 5 }
  0x99   : > { %v2330_v14 = vsel %vm656_vm3, %v7778_v1, %v2328_v25  ;;  %474 = vst.msk [vmem:[#allocation2 + $0x1b8] sm:$0xff] %vm236_vm0, %v465_v21  ;;  %288 = vst.msk [vmem:[#allocation2 + $0x50] sm:$0xff] %vm236_vm0, %v266_v15  ;;  %v879_v18 = vld [vmem:[#allocation2 + $0x91] sm:$0x1]  ;;  %v6317_v61 = vld [vmem:[#allocation2 + $0xf8] sm:$0x1]  ;;  %v6329_v25 = vsel %vm659_vm4, %v7781_v55, %v1541_v47 }
  0x9a   : > { %286 = vst.msk [vmem:[#allocation2 + $0x40] sm:$0xff] %vm236_vm0, %v262_v24  ;;  %7780 = vst [vmem:[#allocation28_spill] sm:$0xff] %v6317_v61  ;;  %v673_v52 = vrot.slane %v584_v42, 7  ;;  %v956_v1 = vrot.slane %v879_v18, 7  ;;  %v6324_v63 = vld [vmem:[#allocation2 + $0x19] sm:$0x1]  ;;  %v6334_v0 = vsel %vm659_vm4, %v7782_v5, %v1776_v19 }
  0x9b   : > { %v583_v24 = vld [vmem:[#allocation2 + $0x80] sm:$0x1]  ;;  %v878_v33 = vld [vmem:[#allocation2 + $0x81] sm:$0x1]  ;;  %v1156_v60 = vld [vmem:[#allocation2 + $0x92] sm:$0x1] }
  0x9c   : > { %v7783_v42 = vrot.slane %v6077_v45, 5  ;;  %v7784_v15 = vrot.slane %v6100_v26, 5  ;;  %v6346_v9 = vld [vmem:[#allocation2 + $0x29] sm:$0x1]  ;;  %v270_v43 = vpop.permute.xlu1 %269  ;;  %v381_v47 = vpop.permute.xlu0 %380  ;;  %v585_v55 = vld [vmem:[#allocation2 + $0xa0] sm:$0x1] }
  0x9d   : > { %v586_v46 = vld [vmem:[#allocation2 + $0xb0] sm:$0x1]  ;;  %v880_v4 = vld [vmem:[#allocation2 + $0xa1] sm:$0x1]  ;;  %v7785_v19 = vrot.slane %v6135_v49, 5  ;;  %v7786_v45 = vrot.slane %v6154_v34, 5 }
  0x9e   : > { %v6339_v18 = vsel %vm659_vm4, %v7783_v42, %v2053_v53  ;;  %v6344_v21 = vsel %vm659_vm4, %v7784_v15, %v1818_v56  ;;  %v7787_v26 = vrot.slane %v6199_v51, 5  ;;  %v6364_v15 = vsel %vm653_vm2, %v2369_v23, %v2279_v54  ;;  %v2556_v42 = vld [vmem:[#allocation2 + $0x187] sm:$0x1]  ;;  %290 = vst.msk [vmem:[#allocation2 + $0x60] sm:$0xff] %vm236_vm0, %v270_v43  ;;  %403 = vst.msk [vmem:[#allocation2 + $0x110] sm:$0xff] %vm236_vm0, %v381_v47 }
  0x9f   : > { %v6351_v5 = vsel %vm659_vm4, %v7785_v19, %v2095_v6  ;;  %v6356_v53 = vsel %vm659_vm4, %v7786_v45, %v2330_v14  ;;  %v675_v49 = vrot.slane %v585_v55, 6  ;;  %v677_v6 = vrot.slane %v586_v46, 5  ;;  %v881_v34 = vld [vmem:[#allocation2 + $0xb1] sm:$0x1]  ;;  %v6369_v45 = vld [vmem:[#allocation2 + $0x39] sm:$0x1] }
  0xa0   : > { %v6361_v56 = vsel %vm659_vm4, %v7787_v26, %v2607_v22  ;;  %v958_v19 = vrot.slane %v880_v4, 6  ;;  %v674_v51 = vsel %vm653_vm2, %v673_v52, %v583_v24  ;;  %v957_v22 = vsel %vm653_vm2, %v956_v1, %v878_v33  ;;  %v1157_v54 = vld [vmem:[#allocation2 + $0xa2] sm:$0x1]  ;;  %v6374_v43 = vld [vmem:[#allocation2 + $0xc9] sm:$0x1]  ;;  %v274_v52 = vpop.permute.xlu1 %273  ;;  %v385_v24 = vpop.permute.xlu0 %384 }
  0xa1   : > { %v960_v23 = vrot.slane %v881_v34, 5  ;;  %v676_v47 = vsel %vm656_vm3, %v675_v49, %v674_v51  ;;  %v1158_v55 = vld [vmem:[#allocation2 + $0xb2] sm:$0x1]  ;;  %v1233_v4 = vrot.slane %v1156_v60, 7  ;;  %v6378_v14 = vld [vmem:[#allocation2 + $0xd9] sm:$0x1] }
  0xa2   : > { %v959_v46 = vsel %vm656_vm3, %v958_v19, %v957_v22  ;;  %v579_v33 = vld [vmem:[#allocation2 + $0x40] sm:$0x1]  ;;  %v678_v1 = vsel %vm659_vm4, %v677_v6, %v676_v47  ;;  %v874_v34 = vld [vmem:[#allocation2 + $0x41] sm:$0x1]  ;;  %v1235_v61 = vrot.slane %v1157_v54, 6  ;;  %v3160_v49 = vrot.slane %v6346_v9, 6 }
  0xa3   : > { %v961_v26 = vsel %vm659_vm4, %v960_v23, %v959_v46  ;;  %292 = vst.msk [vmem:[#allocation2 + $0x70] sm:$0xff] %vm236_vm0, %v274_v52  ;;  %405 = vst.msk [vmem:[#allocation2 + $0x120] sm:$0xff] %vm236_vm0, %v385_v24  ;;  %v580_v60 = vld [vmem:[#allocation2 + $0x50] sm:$0x1]  ;;  %v661_v19 = vrot.slane %v579_v33, 4  ;;  %v7788_v51 = vrot.slane %v5928_v28, 4 }
  0xa4   : > { %v875_v20 = vld [vmem:[#allocation2 + $0x51] sm:$0x1]  ;;  %v948_v57 = vrot.slane %v874_v34, 4  ;;  %v7789_v6 = vrot.slane %v6249_v48, 7  ;;  %v7790_v23 = vrot.slane %v5930_v29, 3  ;;  %v7791_v46 = vrot.slane %v5946_v39, 4 }
  0xa5   : > { %v680_v22 = vsel %vm662_vm5, %v7788_v51, %v678_v1  ;;  %v1155_v24 = vld [vmem:[#allocation2 + $0x82] sm:$0x1]  ;;  %v7792_v1 = vrot.slane %v5948_v40, 3  ;;  %v6404_v51 = vld [vmem:[#allocation2 + $0x93] sm:$0x1]  ;;  %v3180_v39 = vrot.slane %v6378_v14, 3 }
  0xa6   : > { %v2647_v47 = vsel %vm653_vm2, %v7789_v6, %v2556_v42  ;;  %v682_v54 = vsel %vm665_vm6, %v7790_v23, %v680_v22  ;;  %v963_v52 = vsel %vm662_vm5, %v7791_v46, %v961_v26  ;;  %v1234_v48 = vsel %vm653_vm2, %v1233_v4, %v1155_v24  ;;  %v6406_v29 = vld [vmem:[#allocation2 + $0xe9] sm:$0x1]  ;;  %v389_v22 = vpop.permute.xlu1 %388  ;;  %v377_v26 = vpop.permute.xlu0 %376  ;;  %v581_v6 = vld [vmem:[#allocation2 + $0x60] sm:$0x1]  ;;  %v876_v46 = vld [vmem:[#allocation2 + $0x61] sm:$0x1] }
  0xa7   : > { %v965_v34 = vsel %vm665_vm6, %v7792_v1, %v963_v52  ;;  %v1237_v42 = vrot.slane %v1158_v55, 5  ;;  %v664_v23 = vrot.slane %v580_v60, 3  ;;  %v950_v33 = vrot.slane %v875_v20, 3  ;;  %407 = vst.msk [vmem:[#allocation2 + $0x130] sm:$0xff] %vm236_vm0, %v389_v22  ;;  %401 = vst.msk [vmem:[#allocation2 + $0x100] sm:$0xff] %vm236_vm0, %v377_v26 }
  0xa8   : > { %v1236_v28 = vsel %vm656_vm3, %v1235_v61, %v1234_v48  ;;  %v7793_v40 = vrot.slane %v6272_v38, 7  ;;  %v663_v55 = vsel %vm662_vm5, %v661_v19, %v6171_v11  ;;  %v7794_v4 = vrot.slane %v5932_v30, 2  ;;  %v592_v1 = vld [vmem:[#allocation2 + $0x110] sm:$0x1]  ;;  %v1151_v48 = vld [vmem:[#allocation2 + $0x42] sm:$0x1] }
  0xa9   : > { %v949_v20 = vsel %vm662_vm5, %v948_v57, %v6176_v10  ;;  %v7795_v61 = vrot.slane %v5950_v41, 2  ;;  %v667_v60 = vrot.slane %v581_v6, 2  ;;  %v7796_v22 = vrot.slane %v6234_v17, 6  ;;  %v6432_v26 = vld [vmem:[#allocation2 + $0x52] sm:$0x1] }
  0xaa   : > { %v2882_v52 = vsel %vm653_vm2, %v7793_v40, %v2809_v36  ;;  %v684_v24 = vsel %vm668_vm7, %v7794_v4, %v682_v54  ;;  %v952_v36 = vrot.slane %v876_v46, 2  ;;  %v7797_v30 = vrot.slane %v6251_v8, 6  ;;  %v887_v54 = vld [vmem:[#allocation2 + $0x111] sm:$0x1]  ;;  %v492_v17 = vpop.permute.xlu1 %491  ;;  %v426_v46 = vpop.permute.xlu0 %425 }
  0xab   : > { %v967_v38 = vsel %vm668_vm7, %v7795_v61, %v965_v34  ;;  %v2372_v11 = vsel %vm656_vm3, %v7796_v22, %v6364_v15  ;;  %v1238_v41 = vsel %vm659_vm4, %v1237_v42, %v1236_v28  ;;  %v1510_v10 = vrot.slane %v6404_v51, 7  ;;  %v582_v15 = vld [vmem:[#allocation2 + $0x70] sm:$0x1]  ;;  %v877_v4 = vld [vmem:[#allocation2 + $0x71] sm:$0x1]  ;;  %516 = vst.msk [vmem:[#allocation2 + $0x1c0] sm:$0xff] %vm236_vm0, %v492_v17 }
  0xac   : > { %v2649_v19 = vsel %vm656_vm3, %v7797_v30, %v2647_v47  ;;  %v7798_v57 = vrot.slane %v6274_v37, 6  ;;  %v666_v8 = vsel %vm665_vm6, %v664_v23, %v663_v55  ;;  %v7799_v47 = vrot.slane %v5935_v32, 1  ;;  %v6448_v61 = vld [vmem:[#allocation2 + $0x43] sm:$0x1]  ;;  %450 = vst.msk [vmem:[#allocation2 + $0x140] sm:$0xff] %vm236_vm0, %v426_v46 }
  0xad   : > { %v951_v28 = vsel %vm665_vm6, %v950_v33, %v949_v20  ;;  %v7800_v42 = vrot.slane %v5956_v44, 1  ;;  %v670_v22 = vrot.slane %v582_v15, 1  ;;  %v954_v23 = vrot.slane %v877_v4, 1  ;;  %v6452_v30 = vld [vmem:[#allocation2 + $0xf9] sm:$0x1] }
  0xae   : > { %v2884_v34 = vsel %vm656_vm3, %v7798_v57, %v2882_v52  ;;  %v686_v40 = vsel %vm671_vm8, %v7799_v47, %v684_v24  ;;  %v3086_v52 = vld [vmem:[#allocation2 + $0x9] sm:$0x1]  ;;  %v687_v55 = vrot.slane %v592_v1, 7  ;;  %v1225_v32 = vrot.slane %v1151_v48, 4  ;;  %v593_v44 = vld [vmem:[#allocation2 + $0x120] sm:$0x1] }
  0xaf   : > { %v969_v37 = vsel %vm671_vm8, %v7800_v42, %v967_v38  ;;  %v669_v24 = vsel %vm668_vm7, %v667_v60, %v666_v8  ;;  %v953_v33 = vsel %vm668_vm7, %v952_v36, %v951_v28  ;;  %v970_v20 = vrot.slane %v887_v54, 7  ;;  %v6456_v38 = vld [vmem:[#allocation2 + $0x62] sm:$0x1]  ;;  %v888_v1 = vld [vmem:[#allocation2 + $0x121] sm:$0x1]  ;;  %v496_v36 = vpop.permute.xlu1 %495  ;;  %v430_v8 = vpop.permute.xlu0 %429 }
  0xb0   : > { %v7801_v57 = vrot.slane %v5990_v2, 4  ;;  %v672_v46 = vsel %vm671_vm8, %v670_v22, %v669_v24  ;;  %v955_v15 = vsel %vm671_vm8, %v954_v23, %v953_v33  ;;  %v6463_v48 = vld [vmem:[#allocation2 + $0x72] sm:$0x1]  ;;  %v1227_v47 = vrot.slane %v6432_v26, 3  ;;  %v591_v28 = vld [vmem:[#allocation2 + $0x100] sm:$0x1] }
  0xb1   : > { %v1502_v60 = vrot.slane %v6448_v61, 4  ;;  %v5504_v54 = vpack.c.bf16 %v686_v40, %v672_v46  ;;  %v5510_v4 = vpack.c.bf16 %v969_v37, %v955_v15  ;;  %v594_v42 = vld [vmem:[#allocation2 + $0x130] sm:$0x1]  ;;  %v886_v2 = vld [vmem:[#allocation2 + $0x101] sm:$0x1]  ;;  %v7803_v23 = vrot.slane %v6270_v59, 5 }
  0xb2   : > { %v1240_v17 = vsel %vm662_vm5, %v7801_v57, %v1238_v41  ;;  %v7802_v41 = vrot.slane %v6247_v58, 5  ;;  %518 = vst.msk [vmem:[#allocation2 + $0x1d0] sm:$0xff] %vm236_vm0, %v496_v36  ;;  %452 = vst.msk [vmem:[#allocation2 + $0x150] sm:$0xff] %vm236_vm0, %v430_v8  ;;  %v1226_v26 = vsel %vm662_vm5, %v1225_v32, %v6240_v62  ;;  %v7804_v40 = vrot.slane %v5992_v3, 3  ;;  %v1429_v58 = vld [vmem:[#allocation2 + $0x53] sm:$0x1] }
  0xb3   : > { %v6475_v24 = vsel %vm659_vm4, %v7803_v23, %v2649_v19  ;;  %v1432_v61 = vld [vmem:[#allocation2 + $0x83] sm:$0x1]  ;;  %v1435_v33 = vld [vmem:[#allocation2 + $0xb3] sm:$0x1]  ;;  %v7805_v59 = vrot.slane %v6284_v27, 5  ;;  %v7806_v57 = vrot.slane %v6324_v63, 7  ;;  %5505 = vmatpush3.bf16.msra.mxu0 %v5504_v54  ;;  %5511 = vmatpush3.bf16.msra.mxu1 %v5510_v4  ;;  %v688_v3 = vsel %vm653_vm2, %v687_v55, %v591_v28  ;;  %v500_v4 = vpop.permute.xlu1 %499  ;;  %v434_v55 = vpop.permute.xlu0 %433 }
  0xb4   : > { %v6470_v22 = vsel %vm659_vm4, %v7802_v41, %v2372_v11  ;;  %v1242_v37 = vsel %vm665_vm6, %v7804_v40, %v1240_v17  ;;  %v1434_v11 = vld [vmem:[#allocation2 + $0xa3] sm:$0x1]  ;;  %v889_v62 = vld [vmem:[#allocation2 + $0x131] sm:$0x1]  ;;  %v971_v32 = vsel %vm653_vm2, %v970_v20, %v886_v2  ;;  %v1229_v17 = vrot.slane %v6456_v38, 2  ;;  %520 = vst.msk [vmem:[#allocation2 + $0x1e0] sm:$0xff] %vm236_vm0, %v500_v4 }
  0xb5   : > { %v6487_v19 = vsel %vm659_vm4, %v7805_v59, %v2884_v34  ;;  %v6492_v46 = vsel %vm653_vm2, %v7806_v57, %v3086_v52  ;;  %v1430_v15 = vld [vmem:[#allocation2 + $0x63] sm:$0x1]  ;;  %v7807_v36 = vmov 0.0|0.0   ;;  %v689_v63 = vrot.slane %v593_v44, 6  ;;  %v1431_v54 = vld [vmem:[#allocation2 + $0x73] sm:$0x1] }
  0xb6   : > { %5506 = vmatprep.subr.bf16.mxu0 %v7807_v36  ;;  %5512 = vmatprep.subr.bf16.mxu1 %v7807_v36  ;;  %v691_v34 = vrot.slane %v594_v42, 5  ;;  %v972_v52 = vrot.slane %v888_v1, 6  ;;  %v1231_v8 = vrot.slane %v6463_v48, 1  ;;  %v595_v28 = vld [vmem:[#allocation2 + $0x140] sm:$0x1]  ;;  %v1228_v38 = vsel %vm665_vm6, %v1227_v47, %v1226_v26  ;;  %454 = vst.msk [vmem:[#allocation2 + $0x160] sm:$0xff] %vm236_vm0, %v434_v55 }
  0xb7   : > { %v603_v41 = vld [vmem:[#allocation2 + $0x1c0] sm:$0x1]  ;;  %v890_v20 = vld [vmem:[#allocation2 + $0x141] sm:$0x1]  ;;  %v1503_v59 = vsel %vm662_vm5, %v1502_v60, %v6259_v16  ;;  %v1511_v44 = vsel %vm653_vm2, %v1510_v10, %v1432_v61  ;;  %v690_v1 = vsel %vm656_vm3, %v689_v63, %v688_v3  ;;  %v974_v47 = vrot.slane %v889_v62, 5  ;;  %v504_v4 = vpop.permute.xlu1 %503  ;;  %v438_v27 = vpop.permute.xlu0 %437  ;;  %v7810_v62 = vld [vmem:[#allocation7_spill] sm:$0xff] }
  0xb8   : > { %v7808_v2 = vld [vmem:[#allocation6_spill] sm:$0xff]  ;;  %v973_v48 = vsel %vm656_vm3, %v972_v52, %v971_v32  ;;  %v1504_v42 = vrot.slane %v1429_v58, 3  ;;  %v693_v26 = vrot.slane %v595_v28, 4  ;;  %v707_v16 = vrot.slane %v603_v41, 4  ;;  %v1164_v61 = vld [vmem:[#allocation2 + $0x112] sm:$0x1] }
  0xb9   : > { %v7809_v23 = vrot.slane %v7808_v2, 2  ;;  %v898_v57 = vld [vmem:[#allocation2 + $0x1c1] sm:$0x1]  ;;  %v1512_v2 = vrot.slane %v1434_v11, 6  ;;  %v976_v60 = vrot.slane %v890_v20, 4  ;;  %v1230_v51 = vsel %vm668_vm7, %v1229_v17, %v1228_v38  ;;  %522 = vst.msk [vmem:[#allocation2 + $0x1f0] sm:$0xff] %vm236_vm0, %v504_v4 }
  0xba   : > { %v1508_v10 = vrot.slane %v1431_v54, 1  ;;  %v596_v55 = vld [vmem:[#allocation2 + $0x150] sm:$0x1]  ;;  %v692_v3 = vsel %vm659_vm4, %v691_v34, %v690_v1  ;;  %v891_v32 = vld [vmem:[#allocation2 + $0x151] sm:$0x1]  ;;  %v6517_v58 = vsel %vm671_vm8, %v1231_v8, %v1230_v51  ;;  %456 = vst.msk [vmem:[#allocation2 + $0x170] sm:$0xff] %vm236_vm0, %v438_v27  ;;  %v975_v63 = vsel %vm659_vm4, %v974_v47, %v973_v48 }
  0xbb   : > { %v1244_v40 = vsel %vm668_vm7, %v7809_v23, %v1242_v37  ;;  %v1506_v37 = vrot.slane %v1430_v15, 2  ;;  %v1514_v23 = vrot.slane %v1435_v33, 5  ;;  %v604_v6 = vld [vmem:[#allocation2 + $0x1d0] sm:$0x1]  ;;  %v7811_v15 = vrot.slane %v7810_v62, 1  ;;  %v7814_v4 = vld [vmem:[#allocation22_spill] sm:$0xff] }
  0xbc   : > { %v1513_v33 = vsel %vm656_vm3, %v1512_v2, %v1511_v44  ;;  %v899_v17 = vld [vmem:[#allocation2 + $0x1d1] sm:$0x1]  ;;  %v990_v52 = vrot.slane %v898_v57, 4  ;;  %v1505_v34 = vsel %vm665_vm6, %v1504_v42, %v1503_v59  ;;  %v694_v54 = vsel %vm662_vm5, %v693_v26, %v692_v3  ;;  %v1163_v44 = vld [vmem:[#allocation2 + $0x102] sm:$0x1]  ;;  %v549_v57 = vpop.permute.xlu1 %548  ;;  %v545_v59 = vpop.permute.xlu0 %544  ;;  %v7815_v62 = vld [vmem:[#allocation9_spill] sm:$0xff] }
  0xbd   : > { %v6522_v11 = vsel %vm671_vm8, %v7811_v15, %v1244_v40  ;;  %v1515_v8 = vsel %vm659_vm4, %v1514_v23, %v1513_v33  ;;  %v695_v28 = vrot.slane %v596_v55, 3  ;;  %v1507_v41 = vsel %vm668_vm7, %v1506_v37, %v1505_v34  ;;  %v7812_v20 = vld [vmem:[#allocation8_spill] sm:$0xff]  ;;  %v1165_v1 = vld [vmem:[#allocation2 + $0x122] sm:$0x1]  ;;  %v597_v42 = vld [vmem:[#allocation2 + $0x160] sm:$0x1] }
  0xbe   : > { %v7813_v38 = vrot.slane %v7812_v20, 4  ;;  %v709_v27 = vrot.slane %v604_v6, 3  ;;  %v978_v2 = vrot.slane %v891_v32, 3  ;;  %v992_v51 = vrot.slane %v899_v17, 3  ;;  %v1166_v48 = vld [vmem:[#allocation2 + $0x132] sm:$0x1] }
  0xbf   : > { %v1247_v47 = vrot.slane %v1164_v61, 7  ;;  %v605_v23 = vld [vmem:[#allocation2 + $0x1e0] sm:$0x1]  ;;  %v708_v26 = vsel %vm662_vm5, %v707_v16, %v7814_v4  ;;  %v892_v55 = vld [vmem:[#allocation2 + $0x161] sm:$0x1]  ;;  %v977_v37 = vsel %vm662_vm5, %v976_v60, %v975_v63  ;;  %v6539_v3 = vsel %vm671_vm8, %v1508_v10, %v1507_v41  ;;  %569 = vst.msk [vmem:[#allocation2 + $0x220] sm:$0xff] %vm236_vm0, %v549_v57 }
  0xc0   : > { %v1517_v40 = vsel %vm662_vm5, %v7813_v38, %v1515_v8  ;;  %v7816_v15 = vrot.slane %v7815_v62, 3  ;;  %567 = vst.msk [vmem:[#allocation2 + $0x210] sm:$0xff] %vm236_vm0, %v545_v59  ;;  %v697_v61 = vrot.slane %v597_v42, 2  ;;  %v711_v32 = vrot.slane %v605_v23, 2  ;;  %v900_v33 = vld [vmem:[#allocation2 + $0x1e1] sm:$0x1]  ;;  %v553_v59 = vpop.permute.xlu1 %552  ;;  %v541_v42 = vpop.permute.xlu0 %540 }
  0xc1   : > { %v980_v17 = vrot.slane %v892_v55, 2  ;;  %v1248_v16 = vsel %vm653_vm2, %v1247_v47, %v1163_v44  ;;  %v696_v34 = vsel %vm665_vm6, %v695_v28, %v694_v54  ;;  %v991_v60 = vsel %vm662_vm5, %v990_v52, %v6223_v50  ;;  %v1167_v38 = vld [vmem:[#allocation2 + $0x142] sm:$0x1]  ;;  %v598_v23 = vld [vmem:[#allocation2 + $0x170] sm:$0x1]  ;;  %571 = vst.msk [vmem:[#allocation2 + $0x230] sm:$0xff] %vm236_vm0, %v553_v59 }
  0xc2   : > { %v1519_v6 = vsel %vm665_vm6, %v7816_v15, %v1517_v40  ;;  %v994_v10 = vrot.slane %v900_v33, 2  ;;  %v1249_v63 = vrot.slane %v1165_v1, 6  ;;  %v710_v8 = vsel %vm665_vm6, %v709_v27, %v708_v26  ;;  %v1168_v40 = vld [vmem:[#allocation2 + $0x152] sm:$0x1]  ;;  %v606_v44 = vld [vmem:[#allocation2 + $0x1f0] sm:$0x1] }
  0xc3   : > { %v979_v41 = vsel %vm665_vm6, %v978_v2, %v977_v37  ;;  %v993_v20 = vsel %vm665_vm6, %v992_v51, %v991_v60  ;;  %v1251_v57 = vrot.slane %v1166_v48, 5  ;;  %v698_v54 = vsel %vm668_vm7, %v697_v61, %v696_v34  ;;  %v893_v50 = vld [vmem:[#allocation2 + $0x171] sm:$0x1]  ;;  %v7817_v52 = vld [vmem:[#allocation10_spill] sm:$0xff]  ;;  %565 = vst.msk [vmem:[#allocation2 + $0x200] sm:$0xff] %vm236_vm0, %v541_v42 }
  0xc4   : > { %v712_v28 = vsel %vm668_vm7, %v711_v32, %v710_v8  ;;  %v7818_v1 = vrot.slane %v7817_v52, 2  ;;  %v1250_v2 = vsel %vm656_vm3, %v1249_v63, %v1248_v16  ;;  %v699_v51 = vrot.slane %v598_v23, 1  ;;  %v901_v47 = vld [vmem:[#allocation2 + $0x1f1] sm:$0x1]  ;;  %v1169_v62 = vld [vmem:[#allocation2 + $0x162] sm:$0x1]  ;;  %v321_v8 = vpop.permute.xlu1 %320 }
  0xc5   : > { %v713_v48 = vrot.slane %v606_v44, 1  ;;  %v981_v4 = vsel %vm668_vm7, %v980_v17, %v979_v41  ;;  %v982_v26 = vrot.slane %v893_v50, 1  ;;  %v995_v55 = vsel %vm668_vm7, %v994_v10, %v993_v20  ;;  %v6563_v15 = vld [vmem:[#allocation2 + $0x1c2] sm:$0x1]  ;;  %v1170_v60 = vld [vmem:[#allocation2 + $0x172] sm:$0x1]  ;;  %v317_v41 = vpop.permute.xlu0 %316 }
  0xc6   : > { %v1521_v27 = vsel %vm668_vm7, %v7818_v1, %v1519_v6  ;;  %v996_v37 = vrot.slane %v901_v47, 1  ;;  %v6565_v6 = vld [vmem:[#allocation2 + $0x1d2] sm:$0x1]  ;;  %v6567_v61 = vld [vmem:[#allocation2 + $0x1e2] sm:$0x1]  ;;  %v1252_v32 = vsel %vm659_vm4, %v1251_v57, %v1250_v2  ;;  %v1253_v33 = vrot.slane %v1167_v38, 4 }
  0xc7   : > { %v700_v16 = vsel %vm671_vm8, %v699_v51, %v698_v54  ;;  %v714_v34 = vsel %vm671_vm8, %v713_v48, %v712_v28  ;;  %v983_v17 = vsel %vm671_vm8, %v982_v26, %v981_v4  ;;  %v6573_v10 = vld [vmem:[#allocation2 + $0x1f2] sm:$0x1]  ;;  %v1255_v63 = vrot.slane %v1168_v40, 3  ;;  %v608_v42 = vld [vmem:[#allocation2 + $0x210] sm:$0x1]  ;;  %v7819_v38 = vld [vmem:[#allocation11_spill] sm:$0xff] }
  0xc8   : > { %v5507_v20 = vpack.c.bf16 %v714_v34, %v700_v16  ;;  %v997_v59 = vsel %vm671_vm8, %v996_v37, %v995_v55  ;;  %v609_v23 = vld [vmem:[#allocation2 + $0x220] sm:$0x1]  ;;  %v903_v57 = vld [vmem:[#allocation2 + $0x211] sm:$0x1]  ;;  %v7820_v44 = vrot.slane %v7819_v38, 1  ;;  %v1254_v28 = vsel %vm662_vm5, %v1253_v33, %v1252_v32  ;;  %340 = vst.msk [vmem:[#allocation2 + $0xa8] sm:$0xff] %vm236_vm0, %v321_v8 }
  0xc9   : > { %338 = vst.msk [vmem:[#allocation2 + $0x98] sm:$0xff] %vm236_vm0, %v317_v41  ;;  %v5513_v40 = vpack.c.bf16 %v997_v59, %v983_v17  ;;  %v715_v50 = vrot.slane %v608_v42, 7  ;;  %v717_v52 = vrot.slane %v609_v23, 6  ;;  %v904_v1 = vld [vmem:[#allocation2 + $0x221] sm:$0x1]  ;;  %v998_v2 = vrot.slane %v903_v57, 7 }
  0xca   : > { %v6579_v54 = vsel %vm671_vm8, %v7820_v44, %v1521_v27  ;;  %5508 = vmatpush3.bf16.msra.mxu0 %v5507_v20  ;;  %v1000_v51 = vrot.slane %v904_v1, 6  ;;  %v1256_v48 = vsel %vm665_vm6, %v1255_v63, %v1254_v28  ;;  %v1257_v47 = vrot.slane %v1169_v62, 2  ;;  %v1441_v26 = vld [vmem:[#allocation2 + $0x113] sm:$0x1]  ;;  %v6585_v27 = vld [vmem:[#allocation2 + $0x123] sm:$0x1]  ;;  %v325_v62 = vpop.permute.xlu1 %324 }
  0xcb   : > { %v1259_v4 = vrot.slane %v1170_v60, 1  ;;  %5514 = vmatpush3.bf16.msra.mxu1 %v5513_v40  ;;  %v7821_v55 = vmov 0.0   ;;  %v1267_v37 = vrot.slane %v6563_v15, 4  ;;  %v1269_v32 = vrot.slane %v6565_v6, 3  ;;  %v6592_v34 = vld [vmem:[#allocation2 + $0x133] sm:$0x1]  ;;  %v313_v60 = vpop.permute.xlu0 %312 }
  0xcc   : > { %5303 = vmatprep.subr.mxu0 %v7821_v55  ;;  %v1271_v33 = vrot.slane %v6567_v61, 2  ;;  %v1273_v16 = vrot.slane %v6573_v10, 1  ;;  %v6594_v17 = vld [vmem:[#allocation2 + $0x143] sm:$0x1]  ;;  %5316 = vmatprep.subr.mxu1 %v7821_v55  ;;  %v607_v63 = vld [vmem:[#allocation2 + $0x200] sm:$0x1]  ;;  %v5516_v15 = vpack.c.bf16 %v6522_v11, %v6517_v58  ;;  %v5522_v6 = vpack.c.bf16 %v6579_v54, %v6539_v3 }
  0xcd   : > { %v610_v8 = vld [vmem:[#allocation2 + $0x230] sm:$0x1]  ;;  %v902_v41 = vld [vmem:[#allocation2 + $0x201] sm:$0x1]  ;;  %v1258_v61 = vsel %vm668_vm7, %v1257_v47, %v1256_v48  ;;  %v1440_v10 = vld [vmem:[#allocation2 + $0x103] sm:$0x1]  ;;  %v6608_v59 = vsel %vm656_vm3, %v3160_v49, %v6492_v46  ;;  %v716_v58 = vsel %vm653_vm2, %v715_v50, %v607_v63  ;;  %v1268_v44 = vsel %vm662_vm5, %v1267_v37, %v6264_v35 }
  0xce   : > { %v6602_v20 = vld [vmem:[#allocation2 + $0x153] sm:$0x1]  ;;  %342 = vst.msk [vmem:[#allocation2 + $0xb8] sm:$0xff] %vm236_vm0, %v325_v62  ;;  %336 = vst.msk [vmem:[#allocation2 + $0x88] sm:$0xff] %vm236_vm0, %v313_v60  ;;  %v719_v11 = vrot.slane %v610_v8, 5  ;;  %v999_v3 = vsel %vm653_vm2, %v998_v2, %v902_v41  ;;  %v6615_v23 = vsel %vm671_vm8, %v1259_v4, %v1258_v61  ;;  %v718_v38 = vsel %vm656_vm3, %v717_v52, %v716_v58  ;;  %v6622_v46 = vld [vmem:[%s7703_s1] sm:$0xff]  ;;  %v268_v47 = vpop.permute.xlu1 %267 }
  0xcf   : > { %v905_v42 = vld [vmem:[#allocation2 + $0x231] sm:$0x1]  ;;  %v1452_v57 = vld [vmem:[#allocation2 + $0x1c3] sm:$0x1]  ;;  %v1001_v9 = vsel %vm656_vm3, %v1000_v51, %v999_v3  ;;  %v1453_v28 = vld [vmem:[#allocation2 + $0x1d3] sm:$0x1]  ;;  %v1270_v52 = vsel %vm665_vm6, %v1269_v32, %v1268_v44  ;;  %v264_v4 = vpop.permute.xlu0 %263 }
  0xd0   : > { %v1002_v49 = vrot.slane %v905_v42, 5  ;;  %v6626_v54 = vld [vmem:[#allocation2 + $0x163] sm:$0x1]  ;;  %v720_v50 = vsel %vm659_vm4, %v719_v11, %v718_v38  ;;  %v6632_v1 = vld [vmem:[#allocation2 + $0x173] sm:$0x1]  ;;  %v1524_v51 = vrot.slane %v1441_v26, 7  ;;  %v1272_v37 = vsel %vm668_vm7, %v1271_v33, %v1270_v52 }
  0xd1   : > { %v6628_v40 = vld [vmem:[#allocation2 + $0x1e3] sm:$0x1]  ;;  %v6634_v2 = vld [vmem:[#allocation2 + $0x1f3] sm:$0x1]  ;;  %v1526_v48 = vrot.slane %v6585_v27, 6  ;;  %5304 = vmatpush3.msk.msra.mxu0 %vm729_vm9, %v720_v50  ;;  %v1528_v62 = vrot.slane %v6592_v34, 5  ;;  %v1274_v26 = vsel %vm671_vm8, %v1273_v16, %v1272_v37 }
  0xd2   : > { %v1003_v35 = vsel %vm659_vm4, %v1002_v49, %v1001_v9  ;;  %v1530_v60 = vrot.slane %v6594_v17, 4  ;;  %v1180_v32 = vld [vmem:[#allocation2 + $0x212] sm:$0x1]  ;;  %v1181_v63 = vld [vmem:[#allocation2 + $0x222] sm:$0x1]  ;;  %289 = vst.msk [vmem:[#allocation2 + $0x58] sm:$0xff] %vm236_vm0, %v268_v47  ;;  %5515 = vmatprep.subr.bf16.mxu0 %v7807_v36  ;;  %v1525_v27 = vsel %vm653_vm2, %v1524_v51, %v1440_v10  ;;  %5306 = vmatmul.mubr.msk.f32.vlgmr.msra.gmra.mrb[0].mxu0 %vm725_vm10, %v6622_v46 }
  0xd3   : > { %287 = vst.msk [vmem:[#allocation2 + $0x48] sm:$0xff] %vm236_vm0, %v264_v4  ;;  %5317 = vmatpush3.msk.msra.mxu1 %vm729_vm9, %v1003_v35  ;;  %v1532_v33 = vrot.slane %v6602_v20, 3  ;;  %v1534_v34 = vrot.slane %v6626_v54, 2  ;;  %v1179_v8 = vld [vmem:[#allocation2 + $0x202] sm:$0x1]  ;;  %v5519_v41 = vpack.c.bf16 %v1274_v26, %v6615_v23  ;;  %v1527_v61 = vsel %vm656_vm3, %v1526_v48, %v1525_v27  ;;  %5517 = vmatpush3.bf16.msra.mxu0 %v5516_v15  ;;  %v272_v23 = vpop.permute.xlu1 %271  ;;  %v383_v49 = vpop.permute.xlu0 %382 }
  0xd4   : > { %v1182_v17 = vld [vmem:[#allocation2 + $0x232] sm:$0x1]  ;;  %5521 = vmatprep.subr.bf16.mxu1 %v7807_v36  ;;  %v1536_v58 = vrot.slane %v6632_v1, 1  ;;  %v1544_v16 = vrot.slane %v1452_v57, 4  ;;  %v1456_v11 = vld [vmem:[#allocation2 + $0x203] sm:$0x1]  ;;  %5319 = vmatmul.mubr.msk.f32.vlgmr.msra.gmra.mrb[0].mxu1 %vm725_vm10, %v6622_v46  ;;  %v1529_v20 = vsel %vm659_vm4, %v1528_v62, %v1527_v61 }
  0xd5   : > { %v1457_v10 = vld [vmem:[#allocation2 + $0x213] sm:$0x1]  ;;  %v1546_v42 = vrot.slane %v1453_v28, 3  ;;  %v1548_v3 = vrot.slane %v6628_v40, 2  ;;  %v1550_v38 = vrot.slane %v6634_v2, 1  ;;  %5523 = vmatpush3.bf16.msra.mxu1 %v5522_v6  ;;  %5518 = vmatprep.subr.bf16.mxu0 %v7807_v36  ;;  %v1531_v57 = vsel %vm662_vm5, %v1530_v60, %v1529_v20  ;;  %291 = vst.msk [vmem:[#allocation2 + $0x68] sm:$0xff] %vm236_vm0, %v272_v23 }
  0xd6   : > { %v1458_v9 = vld [vmem:[#allocation2 + $0x223] sm:$0x1]  ;;  %v1545_v44 = vsel %vm662_vm5, %v1544_v16, %v6329_v25  ;;  %v1275_v54 = vrot.slane %v1180_v32, 7  ;;  %v1277_v15 = vrot.slane %v1181_v63, 6  ;;  %v1459_v50 = vld [vmem:[#allocation2 + $0x233] sm:$0x1]  ;;  %5524 = vmatprep.subr.bf16.mxu1 %v7807_v36  ;;  %v1533_v6 = vsel %vm665_vm6, %v1532_v33, %v1531_v57  ;;  %5331 = vmatprep.mubr.msk.f32.mxu0 %vm5750_vm1, %v7821_v55 }
  0xd7   : > { %v1705_v52 = vld [vmem:[#allocation2 + $0x44] sm:$0x1]  ;;  %v1706_v28 = vld [vmem:[#allocation2 + $0x54] sm:$0x1]  ;;  %404 = vst.msk [vmem:[#allocation2 + $0x118] sm:$0xff] %vm236_vm0, %v383_v49  ;;  %v1547_v40 = vsel %vm665_vm6, %v1546_v42, %v1545_v44  ;;  %v1279_v1 = vrot.slane %v1182_v17, 5  ;;  %v1535_v48 = vsel %vm668_vm7, %v1534_v34, %v1533_v6  ;;  %5344 = vmatprep.mubr.msk.f32.mxu1 %vm5750_vm1, %v7821_v55  ;;  %5520 = vmatpush3.bf16.msra.mxu0 %v5519_v41  ;;  %v387_v61 = vpop.permute.xlu0 %386 }
  0xd8   : > { %v1552_v2 = vrot.slane %v1457_v10, 7  ;;  %v1707_v25 = vld [vmem:[#allocation2 + $0x64] sm:$0x1]  ;;  %v6672_v51 = vld [vmem:[#allocation2 + $0x74] sm:$0x1]  ;;  %v1549_v47 = vsel %vm668_vm7, %v1548_v3, %v1547_v40  ;;  %v1276_v4 = vsel %vm653_vm2, %v1275_v54, %v1179_v8  ;;  %v1554_v35 = vrot.slane %v1458_v9, 6  ;;  %v276_v8 = vpop.permute.xlu1 %275  ;;  %5329 = vmatprep.subr.mxu0 %v7821_v55 }
  0xd9   : > { %v1710_v37 = vld [vmem:[#allocation2 + $0x94] sm:$0x1]  ;;  %v1711_v62 = vld [vmem:[#allocation2 + $0xa4] sm:$0x1]  ;;  %v1537_v60 = vsel %vm671_vm8, %v1536_v58, %v1535_v48  ;;  %v1551_v32 = vsel %vm671_vm8, %v1550_v38, %v1549_v47  ;;  %v1278_v63 = vsel %vm656_vm3, %v1277_v15, %v1276_v4  ;;  %v1982_v33 = vld [vmem:[#allocation2 + $0x45] sm:$0x1] }
  0xda   : > { %v1553_v26 = vsel %vm653_vm2, %v1552_v2, %v1456_v11  ;;  %v1712_v27 = vld [vmem:[#allocation2 + $0xb4] sm:$0x1]  ;;  %v1983_v34 = vld [vmem:[#allocation2 + $0x55] sm:$0x1]  ;;  %v5525_v17 = vpack.c.bf16 %v1551_v32, %v1537_v60  ;;  %v1280_v16 = vsel %vm659_vm4, %v1279_v1, %v1278_v63  ;;  %v1556_v10 = vrot.slane %v1459_v50, 5  ;;  %293 = vst.msk [vmem:[#allocation2 + $0x78] sm:$0xff] %vm236_vm0, %v276_v8 }
  0xdb   : > { %v1555_v41 = vsel %vm656_vm3, %v1554_v35, %v1553_v26  ;;  %v1984_v58 = vld [vmem:[#allocation2 + $0x65] sm:$0x1]  ;;  %v1985_v20 = vld [vmem:[#allocation2 + $0x75] sm:$0x1]  ;;  %406 = vst.msk [vmem:[#allocation2 + $0x128] sm:$0xff] %vm236_vm0, %v387_v61  ;;  %v1779_v11 = vrot.slane %v1705_v52, 4  ;;  %5330 = vmatpush3.msk.msra.mxu0 %vm729_vm9, %v1280_v16  ;;  %v379_v1 = vpop.permute.xlu0 %378 }
  0xdc   : > { %v1781_v42 = vrot.slane %v1706_v28, 3  ;;  %v1783_v3 = vrot.slane %v1707_v25, 2  ;;  %v1785_v38 = vrot.slane %v6672_v51, 1  ;;  %v1987_v9 = vld [vmem:[#allocation2 + $0x95] sm:$0x1]  ;;  %5526 = vmatpush3.bf16.msra.mxu1 %v5525_v17  ;;  %v1557_v23 = vsel %vm659_vm4, %v1556_v10, %v1555_v41  ;;  %5527 = vmatprep.subr.bf16.mxu0 %v7807_v36  ;;  %v391_v40 = vpop.permute.xlu1 %390  ;;  %402 = vst.msk [vmem:[#allocation2 + $0x108] sm:$0xff] %vm236_vm0, %v379_v1 }
  0xdd   : > { %v1787_v49 = vrot.slane %v1710_v37, 7  ;;  %v1789_v57 = vrot.slane %v1711_v62, 6  ;;  %v1791_v44 = vrot.slane %v1712_v27, 5  ;;  %v1988_v54 = vld [vmem:[#allocation2 + $0xa5] sm:$0x1]  ;;  %5342 = vmatprep.subr.mxu1 %v7821_v55  ;;  %v1780_v50 = vsel %vm662_vm5, %v1779_v11, %v6334_v0  ;;  %5332 = vmatmul.mubr.msk.f32.vlgmr.msra.gmra.mrb[2].mxu0 %vm725_vm10, %v6622_v46  ;;  %408 = vst.msk [vmem:[#allocation2 + $0x138] sm:$0xff] %vm236_vm0, %v391_v40 }
  0xde   : > { %v1709_v15 = vld [vmem:[#allocation2 + $0x84] sm:$0x1]  ;;  %v2056_v52 = vrot.slane %v1982_v33, 4  ;;  %v2058_v28 = vrot.slane %v1983_v34, 3  ;;  %v2060_v6 = vrot.slane %v1984_v58, 2  ;;  %v1782_v2 = vsel %vm665_vm6, %v1781_v42, %v1780_v50  ;;  %5357 = vmatprep.mubr.msk.f32.mxu0 %vm5750_vm1, %v7821_v55  ;;  %v7824_v11 = vld [vmem:[#allocation13_spill] sm:$0xff] }
  0xdf   : > { %v1788_v25 = vsel %vm653_vm2, %v1787_v49, %v1709_v15  ;;  %v1986_v51 = vld [vmem:[#allocation2 + $0x85] sm:$0x1]  ;;  %v1989_v48 = vld [vmem:[#allocation2 + $0xb5] sm:$0x1]  ;;  %v2062_v47 = vrot.slane %v1985_v20, 1  ;;  %v2064_v4 = vrot.slane %v1987_v9, 7  ;;  %v1784_v0 = vsel %vm668_vm7, %v1783_v3, %v1782_v2 }
  0xe0   : > { %v1790_v35 = vsel %vm656_vm3, %v1789_v57, %v1788_v25  ;;  %v2057_v37 = vsel %vm662_vm5, %v2056_v52, %v6339_v18  ;;  %v2066_v62 = vrot.slane %v1988_v54, 6  ;;  %v1718_v60 = vld [vmem:[#allocation2 + $0x114] sm:$0x1]  ;;  %v1719_v32 = vld [vmem:[#allocation2 + $0x124] sm:$0x1]  ;;  %5343 = vmatpush3.msk.msra.mxu1 %vm729_vm9, %v1557_v23  ;;  %v1786_v63 = vsel %vm671_vm8, %v1785_v38, %v1784_v0  ;;  %v494_v9 = vpop.permute.xlu1 %493  ;;  %v428_v23 = vpop.permute.xlu0 %427  ;;  %v7828_v25 = vld [vmem:[#allocation15_spill] sm:$0xff] }
  0xe1   : > { %v1792_v26 = vsel %vm659_vm4, %v1791_v44, %v1790_v35  ;;  %v2059_v27 = vsel %vm665_vm6, %v2058_v28, %v2057_v37  ;;  %v2065_v33 = vsel %vm653_vm2, %v2064_v4, %v1986_v51  ;;  %v1720_v34 = vld [vmem:[#allocation2 + $0x134] sm:$0x1]  ;;  %v1721_v17 = vld [vmem:[#allocation2 + $0x144] sm:$0x1]  ;;  %5533 = vmatprep.subr.bf16.mxu1 %v7807_v36  ;;  %5345 = vmatmul.mubr.msk.f32.vlgmr.msra.gmra.mrb[2].mxu1 %vm725_vm10, %v6622_v46  ;;  %v2068_v10 = vrot.slane %v1989_v48, 5 }
  0xe2   : > { %v7822_v18 = vld [vmem:[#allocation12_spill] sm:$0xff]  ;;  %v2061_v16 = vsel %vm668_vm7, %v2060_v6, %v2059_v27  ;;  %v2067_v41 = vsel %vm656_vm3, %v2066_v62, %v2065_v33  ;;  %v1717_v58 = vld [vmem:[#allocation2 + $0x104] sm:$0x1]  ;;  %v7825_v42 = vrot.slane %v7824_v11, 3  ;;  %v1801_v44 = vrot.slane %v1718_v60, 7  ;;  %5370 = vmatprep.mubr.msk.f32.mxu1 %vm5750_vm1, %v7821_v55  ;;  %517 = vst.msk [vmem:[#allocation2 + $0x1c8] sm:$0xff] %vm236_vm0, %v494_v9 }
  0xe3   : > { %v7823_v8 = vrot.slane %v7822_v18, 4  ;;  %v1722_v20 = vld [vmem:[#allocation2 + $0x154] sm:$0x1]  ;;  %v2063_v38 = vsel %vm671_vm8, %v2062_v47, %v2061_v16  ;;  %v1723_v49 = vld [vmem:[#allocation2 + $0x164] sm:$0x1]  ;;  %v1803_v54 = vrot.slane %v1719_v32, 6  ;;  %v2069_v28 = vsel %vm659_vm4, %v2068_v10, %v2067_v41 }
  0xe4   : > { %v1724_v57 = vld [vmem:[#allocation2 + $0x174] sm:$0x1]  ;;  %v7826_v15 = vld [vmem:[#allocation14_spill] sm:$0xff]  ;;  %451 = vst.msk [vmem:[#allocation2 + $0x148] sm:$0xff] %vm236_vm0, %v428_v23  ;;  %v1805_v1 = vrot.slane %v1720_v34, 5  ;;  %v1807_v2 = vrot.slane %v1721_v17, 4  ;;  %v1802_v62 = vsel %vm653_vm2, %v1801_v44, %v1717_v58  ;;  %v432_v9 = vpop.permute.xlu0 %431 }
  0xe5   : > { %v1794_v61 = vsel %vm662_vm5, %v7823_v8, %v1792_v26  ;;  %v7827_v50 = vrot.slane %v7826_v15, 2  ;;  %v1729_v6 = vld [vmem:[#allocation2 + $0x1c4] sm:$0x1]  ;;  %v1730_v40 = vld [vmem:[#allocation2 + $0x1d4] sm:$0x1]  ;;  %v7829_v51 = vrot.slane %v7828_v25, 1  ;;  %v1804_v34 = vsel %vm656_vm3, %v1803_v54, %v1802_v62 }
  0xe6   : > { %v1796_v3 = vsel %vm665_vm6, %v7825_v42, %v1794_v61  ;;  %v7830_v47 = vld [vmem:[#allocation16_spill] sm:$0xff]  ;;  %v1731_v35 = vld [vmem:[#allocation2 + $0x1e4] sm:$0x1]  ;;  %v1809_v60 = vrot.slane %v1722_v20, 3  ;;  %v7832_v26 = vld [vmem:[#allocation17_spill] sm:$0xff]  ;;  %v1811_v17 = vrot.slane %v1723_v49, 2  ;;  %v1806_v10 = vsel %vm659_vm4, %v1805_v1, %v1804_v34 }
  0xe7   : > { %v1798_v52 = vsel %vm668_vm7, %v7827_v50, %v1796_v3  ;;  %v7831_v4 = vrot.slane %v7830_v47, 4  ;;  %v1732_v37 = vld [vmem:[#allocation2 + $0x1f4] sm:$0x1]  ;;  %v7833_v27 = vrot.slane %v7832_v26, 3  ;;  %v1995_v18 = vld [vmem:[#allocation2 + $0x115] sm:$0x1]  ;;  %v498_v3 = vpop.permute.xlu1 %497  ;;  %v1808_v54 = vsel %vm662_vm5, %v1807_v2, %v1806_v10 }
  0xe8   : > { %v1800_v48 = vsel %vm671_vm8, %v7829_v51, %v1798_v52  ;;  %v1996_v8 = vld [vmem:[#allocation2 + $0x125] sm:$0x1]  ;;  %v1813_v11 = vrot.slane %v1724_v57, 1  ;;  %v1821_v42 = vrot.slane %v1729_v6, 4  ;;  %v1997_v20 = vld [vmem:[#allocation2 + $0x135] sm:$0x1]  ;;  %v1810_v6 = vsel %vm665_vm6, %v1809_v60, %v1808_v54 }
  0xe9   : > { %v2071_v0 = vsel %vm662_vm5, %v7831_v4, %v2069_v28  ;;  %v5528_v32 = vpack.c.bf16 %v1800_v48, %v1786_v63  ;;  %v7834_v61 = vld [vmem:[#allocation18_spill] sm:$0xff]  ;;  %v7836_v23 = vld [vmem:[#allocation19_spill] sm:$0xff]  ;;  %v1823_v15 = vrot.slane %v1730_v40, 3  ;;  %v1825_v50 = vrot.slane %v1731_v35, 2  ;;  %v1999_v52 = vld [vmem:[#allocation2 + $0x155] sm:$0x1] }
  0xea   : > { %v2073_v33 = vsel %vm665_vm6, %v7833_v27, %v2071_v0  ;;  %v7835_v16 = vrot.slane %v7834_v61, 2  ;;  %v1994_v58 = vld [vmem:[#allocation2 + $0x105] sm:$0x1]  ;;  %v7837_v44 = vrot.slane %v7836_v23, 1  ;;  %519 = vst.msk [vmem:[#allocation2 + $0x1d8] sm:$0xff] %vm236_vm0, %v498_v3  ;;  %453 = vst.msk [vmem:[#allocation2 + $0x158] sm:$0xff] %vm236_vm0, %v432_v9  ;;  %v1822_v1 = vsel %vm662_vm5, %v1821_v42, %v6344_v21  ;;  %v436_v27 = vpop.permute.xlu0 %435 }
  0xeb   : > { %v1998_v63 = vld [vmem:[#allocation2 + $0x145] sm:$0x1]  ;;  %5529 = vmatpush3.bf16.msra.mxu0 %v5528_v32  ;;  %v1827_v25 = vrot.slane %v1732_v37, 1  ;;  %v6759_v51 = vld [vmem:[#allocation2 + $0x175] sm:$0x1]  ;;  %v1812_v2 = vsel %vm668_vm7, %v1811_v17, %v1810_v6  ;;  %v1824_v48 = vsel %vm665_vm6, %v1823_v15, %v1822_v1  ;;  %v2078_v0 = vrot.slane %v1995_v18, 7  ;;  %v502_v26 = vpop.permute.xlu1 %501 }
  0xec   : > { %v2075_v41 = vsel %vm668_vm7, %v7835_v16, %v2073_v33  ;;  %v6751_v28 = vld [vmem:[#allocation2 + $0x165] sm:$0x1]  ;;  %5530 = vmatprep.subr.bf16.mxu0 %v7807_v36  ;;  %v2007_v47 = vld [vmem:[#allocation2 + $0x1d5] sm:$0x1]  ;;  %v2080_v35 = vrot.slane %v1996_v8, 6  ;;  %v1826_v62 = vsel %vm668_vm7, %v1825_v50, %v1824_v48  ;;  %v2082_v32 = vrot.slane %v1997_v20, 5 }
  0xed   : > { %v2077_v49 = vsel %vm671_vm8, %v7837_v44, %v2075_v41  ;;  %v2006_v40 = vld [vmem:[#allocation2 + $0x1c5] sm:$0x1]  ;;  %v2009_v60 = vld [vmem:[#allocation2 + $0x1f5] sm:$0x1]  ;;  %v2084_v21 = vrot.slane %v1998_v63, 4  ;;  %v1828_v33 = vsel %vm671_vm8, %v1827_v25, %v1826_v62  ;;  %v2079_v34 = vsel %vm653_vm2, %v2078_v0, %v1994_v58  ;;  %521 = vst.msk [vmem:[#allocation2 + $0x1e8] sm:$0xff] %vm236_vm0, %v502_v26 }
  0xee   : > { %v5534_v57 = vpack.c.bf16 %v2077_v49, %v2063_v38  ;;  %v2008_v4 = vld [vmem:[#allocation2 + $0x1e5] sm:$0x1]  ;;  %v1814_v38 = vsel %vm671_vm8, %v1813_v11, %v1812_v2  ;;  %v1734_v37 = vld [vmem:[#allocation2 + $0x214] sm:$0x1]  ;;  %v2086_v17 = vrot.slane %v1999_v52, 3  ;;  %v2088_v18 = vrot.slane %v6751_v28, 2  ;;  %v440_v1 = vpop.permute.xlu0 %439 }
  0xef   : > { %v1733_v8 = vld [vmem:[#allocation2 + $0x204] sm:$0x1]  ;;  %v1736_v16 = vld [vmem:[#allocation2 + $0x234] sm:$0x1]  ;;  %455 = vst.msk [vmem:[#allocation2 + $0x168] sm:$0xff] %vm236_vm0, %v436_v27  ;;  %v5531_v41 = vpack.c.bf16 %v1828_v33, %v1814_v38  ;;  %v2081_v10 = vsel %vm656_vm3, %v2080_v35, %v2079_v34  ;;  %v2090_v11 = vrot.slane %v6759_v51, 1  ;;  %v506_v6 = vpop.permute.xlu1 %505 }
  0xf0   : > { %5535 = vmatpush3.bf16.msra.mxu1 %v5534_v57  ;;  %v1735_v61 = vld [vmem:[#allocation2 + $0x224] sm:$0x1]  ;;  %v2098_v42 = vrot.slane %v2006_v40, 4  ;;  %v2010_v20 = vld [vmem:[#allocation2 + $0x205] sm:$0x1]  ;;  %v2083_v58 = vsel %vm659_vm4, %v2082_v32, %v2081_v10  ;;  %v2100_v9 = vrot.slane %v2007_v47, 3 }
  0xf1   : > { %5536 = vmatprep.subr.bf16.mxu1 %v7807_v36  ;;  %v2011_v63 = vld [vmem:[#allocation2 + $0x215] sm:$0x1]  ;;  %v2012_v3 = vld [vmem:[#allocation2 + $0x225] sm:$0x1]  ;;  %v2102_v23 = vrot.slane %v2008_v4, 2  ;;  %v2104_v44 = vrot.slane %v2009_v60, 1  ;;  %5532 = vmatpush3.bf16.msra.mxu0 %v5531_v41  ;;  %v2085_v54 = vsel %vm662_vm5, %v2084_v21, %v2083_v58 }
  0xf2   : > { %v2013_v49 = vld [vmem:[#allocation2 + $0x235] sm:$0x1]  ;;  %v2099_v15 = vsel %vm662_vm5, %v2098_v42, %v6351_v5  ;;  %v1829_v50 = vrot.slane %v1734_v37, 7  ;;  %v1831_v52 = vrot.slane %v1735_v61, 6  ;;  %v2259_v28 = vld [vmem:[#allocation2 + $0x46] sm:$0x1]  ;;  %v2087_v25 = vsel %vm665_vm6, %v2086_v17, %v2085_v54  ;;  %5355 = vmatprep.subr.mxu0 %v7821_v55  ;;  %v547_v10 = vpop.permute.xlu0 %546 }
  0xf3   : > { %v2260_v57 = vld [vmem:[#allocation2 + $0x56] sm:$0x1]  ;;  %v2101_v51 = vsel %vm665_vm6, %v2100_v9, %v2099_v15  ;;  %v1833_v40 = vrot.slane %v1736_v16, 5  ;;  %v2106_v2 = vrot.slane %v2011_v63, 7  ;;  %v2261_v48 = vld [vmem:[#allocation2 + $0x66] sm:$0x1]  ;;  %v2089_v5 = vsel %vm668_vm7, %v2088_v18, %v2087_v25  ;;  %v551_v41 = vpop.permute.xlu1 %550 }
  0xf4   : > { %v6780_v47 = vld [vmem:[#allocation2 + $0x76] sm:$0x1]  ;;  %523 = vst.msk [vmem:[#allocation2 + $0x1f8] sm:$0xff] %vm236_vm0, %v506_v6  ;;  %457 = vst.msk [vmem:[#allocation2 + $0x178] sm:$0xff] %vm236_vm0, %v440_v1  ;;  %v2103_v4 = vsel %vm668_vm7, %v2102_v23, %v2101_v51  ;;  %v1830_v0 = vsel %vm653_vm2, %v1829_v50, %v1733_v8  ;;  %v2108_v35 = vrot.slane %v2012_v3, 6  ;;  %v2091_v60 = vsel %vm671_vm8, %v2090_v11, %v2089_v5 }
  0xf5   : > { %v2264_v38 = vld [vmem:[#allocation2 + $0x96] sm:$0x1]  ;;  %v2265_v62 = vld [vmem:[#allocation2 + $0xa6] sm:$0x1]  ;;  %v2105_v32 = vsel %vm671_vm8, %v2104_v44, %v2103_v4  ;;  %v1832_v21 = vsel %vm656_vm3, %v1831_v52, %v1830_v0  ;;  %v2107_v37 = vsel %vm653_vm2, %v2106_v2, %v2010_v20  ;;  %v2536_v27 = vld [vmem:[#allocation2 + $0x47] sm:$0x1] }
  0xf6   : > { %v2266_v26 = vld [vmem:[#allocation2 + $0xb6] sm:$0x1]  ;;  %v2537_v33 = vld [vmem:[#allocation2 + $0x57] sm:$0x1]  ;;  %v5537_v34 = vpack.c.bf16 %v2105_v32, %v2091_v60  ;;  %v1834_v17 = vsel %vm659_vm4, %v1833_v40, %v1832_v21  ;;  %v2109_v18 = vsel %vm656_vm3, %v2108_v35, %v2107_v37  ;;  %v2110_v8 = vrot.slane %v2013_v49, 5  ;;  %570 = vst.msk [vmem:[#allocation2 + $0x228] sm:$0xff] %vm236_vm0, %v551_v41 }
  0xf7   : > { %v2538_v61 = vld [vmem:[#allocation2 + $0x67] sm:$0x1]  ;;  %v2539_v16 = vld [vmem:[#allocation2 + $0x77] sm:$0x1]  ;;  %5356 = vmatpush3.msk.msra.mxu0 %vm729_vm9, %v1834_v17  ;;  %v2333_v11 = vrot.slane %v2259_v28, 4  ;;  %v2335_v42 = vrot.slane %v2260_v57, 3  ;;  %v555_v2 = vpop.permute.xlu1 %554 }
  0xf8   : > { %v2337_v63 = vrot.slane %v2261_v48, 2  ;;  %v2339_v20 = vrot.slane %v6780_v47, 1  ;;  %v2541_v3 = vld [vmem:[#allocation2 + $0x97] sm:$0x1]  ;;  %568 = vst.msk [vmem:[#allocation2 + $0x218] sm:$0xff] %vm236_vm0, %v547_v10  ;;  %5538 = vmatpush3.bf16.msra.mxu1 %v5537_v34  ;;  %v2111_v58 = vsel %vm659_vm4, %v2110_v8, %v2109_v18  ;;  %5539 = vmatprep.subr.bf16.mxu0 %v7807_v36  ;;  %v2341_v9 = vrot.slane %v2264_v38, 7  ;;  %v543_v48 = vpop.permute.xlu0 %542 }
  0xf9   : > { %v2343_v23 = vrot.slane %v2265_v62, 6  ;;  %v2345_v44 = vrot.slane %v2266_v26, 5  ;;  %v2542_v49 = vld [vmem:[#allocation2 + $0xa7] sm:$0x1]  ;;  %5368 = vmatprep.subr.mxu1 %v7821_v55  ;;  %5358 = vmatmul.mubr.msk.f32.vlgmr.msra.gmra.mrb[4].mxu0 %vm725_vm10, %v6622_v46  ;;  %v2263_v54 = vld [vmem:[#allocation2 + $0x86] sm:$0x1]  ;;  %v2334_v15 = vsel %vm662_vm5, %v2333_v11, %v6356_v53 }
  0xfa   : > { %v2610_v50 = vrot.slane %v2536_v27, 4  ;;  %v2612_v52 = vrot.slane %v2537_v33, 3  ;;  %v2614_v28 = vrot.slane %v2538_v61, 2  ;;  %v2336_v57 = vsel %vm665_vm6, %v2335_v42, %v2334_v15  ;;  %v2540_v1 = vld [vmem:[#allocation2 + $0x87] sm:$0x1]  ;;  %5383 = vmatprep.mubr.msk.f32.mxu0 %vm5750_vm1, %v7821_v55  ;;  %572 = vst.msk [vmem:[#allocation2 + $0x238] sm:$0xff] %vm236_vm0, %v555_v2 }
  0xfb   : > { %v2342_v6 = vsel %vm653_vm2, %v2341_v9, %v2263_v54  ;;  %v2543_v25 = vld [vmem:[#allocation2 + $0xb7] sm:$0x1]  ;;  %v2616_v51 = vrot.slane %v2539_v16, 1  ;;  %v2618_v40 = vrot.slane %v2541_v3, 7  ;;  %v2338_v47 = vsel %vm668_vm7, %v2337_v63, %v2336_v57  ;;  %v2272_v0 = vld [vmem:[#allocation2 + $0x116] sm:$0x1] }
  0xfc   : > { %v2344_v53 = vsel %vm656_vm3, %v2343_v23, %v2342_v6  ;;  %v2611_v5 = vsel %vm662_vm5, %v2610_v50, %v6361_v56  ;;  %v2620_v4 = vrot.slane %v2542_v49, 6  ;;  %v2273_v35 = vld [vmem:[#allocation2 + $0x126] sm:$0x1]  ;;  %566 = vst.msk [vmem:[#allocation2 + $0x208] sm:$0xff] %vm236_vm0, %v543_v48  ;;  %5369 = vmatpush3.msk.msra.mxu1 %vm729_vm9, %v2111_v58  ;;  %v2340_v38 = vsel %vm671_vm8, %v2339_v20, %v2338_v47  ;;  %v2274_v21 = vld [vmem:[#allocation2 + $0x136] sm:$0x1] }
  0xfd   : > { %v2346_v62 = vsel %vm659_vm4, %v2345_v44, %v2344_v53  ;;  %v2613_v60 = vsel %vm665_vm6, %v2612_v52, %v2611_v5  ;;  %v2619_v32 = vsel %vm653_vm2, %v2618_v40, %v2540_v1  ;;  %v2275_v37 = vld [vmem:[#allocation2 + $0x146] sm:$0x1]  ;;  %5545 = vmatprep.subr.bf16.mxu1 %v7807_v36  ;;  %5371 = vmatmul.mubr.msk.f32.vlgmr.msra.gmra.mrb[4].mxu1 %vm725_vm10, %v6622_v46  ;;  %v7838_v56 = vld [vmem:[#allocation20_spill] sm:$0xff]  ;;  %v2622_v17 = vrot.slane %v2543_v25, 5  ;;  %v7840_v61 = vld [vmem:[#allocation21_spill] sm:$0xff] }
  0xfe   : > { %v7839_v26 = vrot.slane %v7838_v56, 4  ;;  %v2615_v33 = vsel %vm668_vm7, %v2614_v28, %v2613_v60  ;;  %v2621_v34 = vsel %vm656_vm3, %v2620_v4, %v2619_v32  ;;  %v2271_v18 = vld [vmem:[#allocation2 + $0x106] sm:$0x1]  ;;  %v2276_v8 = vld [vmem:[#allocation2 + $0x156] sm:$0x1]  ;;  %v7841_v16 = vrot.slane %v7840_v61, 3  ;;  %5396 = vmatprep.mubr.msk.f32.mxu1 %vm5750_vm1, %v7821_v55 }
  0xff   : > { %v2617_v10 = vsel %vm671_vm8, %v2616_v51, %v2615_v33  ;;  %v2277_v11 = vld [vmem:[#allocation2 + $0x166] sm:$0x1]  ;;  %v2278_v42 = vld [vmem:[#allocation2 + $0x176] sm:$0x1]  ;;  %v2355_v63 = vrot.slane %v2272_v0, 7  ;;  %v2357_v20 = vrot.slane %v2273_v35, 6  ;;  %v2623_v9 = vsel %vm659_vm4, %v2622_v17, %v2621_v34 }
 0x100   : > { %v2348_v27 = vsel %vm662_vm5, %v7839_v26, %v2346_v62  ;;  %v7842_v3 = vrot.slane %v6164_v31, 2  ;;  %v2283_v23 = vld [vmem:[#allocation2 + $0x1c6] sm:$0x1]  ;;  %v2284_v44 = vld [vmem:[#allocation2 + $0x1d6] sm:$0x1]  ;;  %v2359_v49 = vrot.slane %v2274_v21, 5 }
 0x101   : > { %v2350_v41 = vsel %vm665_vm6, %v7841_v16, %v2348_v27  ;;  %v2361_v54 = vrot.slane %v2275_v37, 4  ;;  %v7843_v15 = vrot.slane %v6166_v7, 1  ;;  %v7844_v52 = vrot.slane %v6185_v12, 4  ;;  %v2285_v57 = vld [vmem:[#allocation2 + $0x1e6] sm:$0x1]  ;;  %v7846_v53 = vld [vmem:[#allocation23_spill] sm:$0xff] }
 0x102   : > { %v2352_v58 = vsel %vm668_vm7, %v7842_v3, %v2350_v41  ;;  %v2286_v6 = vld [vmem:[#allocation2 + $0x1f6] sm:$0x1]  ;;  %v2356_v31 = vsel %vm653_vm2, %v2355_v63, %v2271_v18  ;;  %v2363_v1 = vrot.slane %v2276_v8, 3  ;;  %v7845_v51 = vrot.slane %v6201_v13, 3  ;;  %v2549_v7 = vld [vmem:[#allocation2 + $0x117] sm:$0x1] }
 0x103   : > { %v2354_v50 = vsel %vm671_vm8, %v7843_v15, %v2352_v58  ;;  %v2625_v28 = vsel %vm662_vm5, %v7844_v52, %v2623_v9  ;;  %v2358_v2 = vsel %vm656_vm3, %v2357_v20, %v2356_v31  ;;  %v2365_v48 = vrot.slane %v2277_v11, 2  ;;  %v2550_v47 = vld [vmem:[#allocation2 + $0x127] sm:$0x1]  ;;  %v2551_v60 = vld [vmem:[#allocation2 + $0x137] sm:$0x1] }
 0x104   : > { %v5540_v25 = vpack.c.bf16 %v2354_v50, %v2340_v38  ;;  %v2627_v40 = vsel %vm665_vm6, %v7845_v51, %v2625_v28  ;;  %v7847_v5 = vrot.slane %v7846_v53, 2  ;;  %v2360_v4 = vsel %vm659_vm4, %v2359_v49, %v2358_v2  ;;  %v2548_v62 = vld [vmem:[#allocation2 + $0x107] sm:$0x1]  ;;  %v7848_v13 = vld [vmem:[#allocation24_spill] sm:$0xff]  ;;  %v2287_v52 = vld [vmem:[#allocation2 + $0x206] sm:$0x1] }
 0x105   : > { %v2367_v0 = vrot.slane %v2278_v42, 1  ;;  %v2375_v35 = vrot.slane %v2283_v23, 4  ;;  %v2552_v38 = vld [vmem:[#allocation2 + $0x147] sm:$0x1]  ;;  %v7849_v32 = vrot.slane %v7848_v13, 1  ;;  %v2362_v37 = vsel %vm662_vm5, %v2361_v54, %v2360_v4 }
 0x106   : > { %v2629_v12 = vsel %vm668_vm7, %v7847_v5, %v2627_v40  ;;  %5541 = vmatpush3.bf16.msra.mxu0 %v5540_v25  ;;  %v2377_v56 = vrot.slane %v2284_v44, 3  ;;  %v2379_v26 = vrot.slane %v2285_v57, 2  ;;  %v2553_v27 = vld [vmem:[#allocation2 + $0x157] sm:$0x1]  ;;  %v2554_v33 = vld [vmem:[#allocation2 + $0x167] sm:$0x1]  ;;  %v2364_v17 = vsel %vm665_vm6, %v2363_v1, %v2362_v37 }
 0x107   : > { %v2631_v21 = vsel %vm671_vm8, %v7849_v32, %v2629_v12  ;;  %5542 = vmatprep.subr.bf16.mxu0 %v7807_v36  ;;  %v2376_v18 = vsel %vm662_vm5, %v2375_v35, %v6470_v22  ;;  %v2381_v8 = vrot.slane %v2286_v6, 1  ;;  %v2555_v61 = vld [vmem:[#allocation2 + $0x177] sm:$0x1]  ;;  %v2560_v16 = vld [vmem:[#allocation2 + $0x1c7] sm:$0x1]  ;;  %v2366_v41 = vsel %vm668_vm7, %v2365_v48, %v2364_v17 }
 0x108   : > { %v5546_v34 = vpack.c.bf16 %v2631_v21, %v2617_v10  ;;  %v2378_v11 = vsel %vm665_vm6, %v2377_v56, %v2376_v18  ;;  %v2561_v42 = vld [vmem:[#allocation2 + $0x1d7] sm:$0x1]  ;;  %v2562_v63 = vld [vmem:[#allocation2 + $0x1e7] sm:$0x1]  ;;  %v2632_v20 = vrot.slane %v2549_v7, 7  ;;  %v2634_v3 = vrot.slane %v2550_v47, 6 }
 0x109   : > { %v2368_v10 = vsel %vm671_vm8, %v2367_v0, %v2366_v41  ;;  %v2380_v58 = vsel %vm668_vm7, %v2379_v26, %v2378_v11  ;;  %v2563_v9 = vld [vmem:[#allocation2 + $0x1f7] sm:$0x1]  ;;  %v2636_v23 = vrot.slane %v2551_v60, 5  ;;  %v2638_v44 = vrot.slane %v2552_v38, 4  ;;  %v2288_v22 = vld [vmem:[#allocation2 + $0x216] sm:$0x1] }
 0x10a   : > { %5547 = vmatpush3.bf16.msra.mxu1 %v5546_v34  ;;  %v2382_v49 = vsel %vm671_vm8, %v2381_v8, %v2380_v58  ;;  %v2633_v54 = vsel %vm653_vm2, %v2632_v20, %v2548_v62  ;;  %v2640_v15 = vrot.slane %v2553_v27, 3  ;;  %v2642_v50 = vrot.slane %v2554_v33, 2  ;;  %v2289_v28 = vld [vmem:[#allocation2 + $0x226] sm:$0x1]  ;;  %v2290_v57 = vld [vmem:[#allocation2 + $0x236] sm:$0x1] }
 0x10b   : > { %5548 = vmatprep.subr.bf16.mxu1 %v7807_v36  ;;  %v5543_v6 = vpack.c.bf16 %v2382_v49, %v2368_v10  ;;  %v2635_v31 = vsel %vm656_vm3, %v2634_v3, %v2633_v54  ;;  %v2644_v1 = vrot.slane %v2555_v61, 1  ;;  %v2652_v25 = vrot.slane %v2560_v16, 4  ;;  %v2564_v51 = vld [vmem:[#allocation2 + $0x207] sm:$0x1]  ;;  %v2565_v40 = vld [vmem:[#allocation2 + $0x217] sm:$0x1] }
 0x10c   : > { %v2566_v2 = vld [vmem:[#allocation2 + $0x227] sm:$0x1]  ;;  %v2637_v48 = vsel %vm659_vm4, %v2636_v23, %v2635_v31  ;;  %v2654_v7 = vrot.slane %v2561_v42, 3  ;;  %v2656_v47 = vrot.slane %v2562_v63, 2  ;;  %v2658_v53 = vrot.slane %v2563_v9, 1 }
 0x10d   : > { %v2567_v5 = vld [vmem:[#allocation2 + $0x237] sm:$0x1]  ;;  %5544 = vmatpush3.bf16.msra.mxu0 %v5543_v6  ;;  %v2639_v12 = vsel %vm662_vm5, %v2638_v44, %v2637_v48  ;;  %v2653_v4 = vsel %vm662_vm5, %v2652_v25, %v6475_v24  ;;  %v2383_v0 = vrot.slane %v2288_v22, 7  ;;  %v2385_v35 = vrot.slane %v2289_v28, 6  ;;  %v2813_v62 = vld [vmem:[#allocation2 + $0x48] sm:$0x1] }
 0x10e   : > { %v2814_v60 = vld [vmem:[#allocation2 + $0x58] sm:$0x1]  ;;  %v2641_v38 = vsel %vm665_vm6, %v2640_v15, %v2639_v12  ;;  %v2655_v13 = vsel %vm665_vm6, %v2654_v7, %v2653_v4  ;;  %5381 = vmatprep.subr.mxu0 %v7821_v55  ;;  %v2387_v32 = vrot.slane %v2290_v57, 5  ;;  %v2660_v21 = vrot.slane %v2565_v40, 7  ;;  %v2815_v37 = vld [vmem:[#allocation2 + $0x68] sm:$0x1] }
 0x10f   : > { %v6875_v56 = vld [vmem:[#allocation2 + $0x78] sm:$0x1]  ;;  %v2643_v26 = vsel %vm668_vm7, %v2642_v50, %v2641_v38  ;;  %v2657_v27 = vsel %vm668_vm7, %v2656_v47, %v2655_v13  ;;  %v2384_v24 = vsel %vm653_vm2, %v2383_v0, %v2287_v52  ;;  %v2662_v33 = vrot.slane %v2566_v2, 6  ;;  %v2819_v17 = vld [vmem:[#allocation2 + $0xa8] sm:$0x1] }
 0x110   : > { %v2818_v34 = vld [vmem:[#allocation2 + $0x98] sm:$0x1]  ;;  %v2645_v18 = vsel %vm671_vm8, %v2644_v1, %v2643_v26  ;;  %v2659_v8 = vsel %vm671_vm8, %v2658_v53, %v2657_v27  ;;  %v2386_v61 = vsel %vm656_vm3, %v2385_v35, %v2384_v24  ;;  %v2661_v16 = vsel %vm653_vm2, %v2660_v21, %v2564_v51  ;;  %v2817_v41 = vld [vmem:[#allocation2 + $0x88] sm:$0x1]  ;;  %v3090_v42 = vld [vmem:[#allocation2 + $0x49] sm:$0x1] }
 0x111   : > { %v2820_v11 = vld [vmem:[#allocation2 + $0xb8] sm:$0x1]  ;;  %v3091_v63 = vld [vmem:[#allocation2 + $0x59] sm:$0x1]  ;;  %v5549_v20 = vpack.c.bf16 %v2659_v8, %v2645_v18  ;;  %v2388_v3 = vsel %vm659_vm4, %v2387_v32, %v2386_v61  ;;  %v2664_v10 = vrot.slane %v2567_v5, 5  ;;  %v7850_v23 = vrot.slane %v6369_v45, 5 }
 0x112   : > { %v3092_v58 = vld [vmem:[#allocation2 + $0x69] sm:$0x1]  ;;  %v3093_v9 = vld [vmem:[#allocation2 + $0x79] sm:$0x1]  ;;  %5382 = vmatpush3.msk.msra.mxu0 %vm729_vm9, %v2388_v3  ;;  %v2663_v22 = vsel %vm656_vm3, %v2662_v33, %v2661_v16  ;;  %v2887_v49 = vrot.slane %v2813_v62, 4  ;;  %v2889_v54 = vrot.slane %v2814_v60, 3 }
 0x113   : > { %v3163_v44 = vsel %vm659_vm4, %v7850_v23, %v6608_v59  ;;  %v2891_v15 = vrot.slane %v2815_v37, 2  ;;  %v3095_v50 = vld [vmem:[#allocation2 + $0x99] sm:$0x1]  ;;  %5550 = vmatpush3.bf16.msra.mxu1 %v5549_v20  ;;  %5551 = vmatprep.subr.bf16.mxu0 %v7807_v36  ;;  %v2893_v52 = vrot.slane %v6875_v56, 1  ;;  %v2895_v28 = vrot.slane %v2818_v34, 7  ;;  %v7853_v34 = vld [vmem:[#allocation26_spill] sm:$0xff] }
 0x114   : > { %v2897_v57 = vrot.slane %v2819_v17, 6  ;;  %v2899_v6 = vrot.slane %v2820_v11, 5  ;;  %v3096_v31 = vld [vmem:[#allocation2 + $0xa9] sm:$0x1]  ;;  %5394 = vmatprep.subr.mxu1 %v7821_v55  ;;  %5384 = vmatmul.mubr.msk.f32.vlgmr.msra.gmra.mrb[6].mxu0 %vm725_vm10, %v6622_v46  ;;  %v2888_v45 = vsel %vm662_vm5, %v2887_v49, %v6487_v19  ;;  %v3164_v1 = vrot.slane %v3090_v42, 4  ;;  %v7851_v13 = vld [vmem:[#allocation25_spill] sm:$0xff] }
 0x115   : > { %v3094_v59 = vld [vmem:[#allocation2 + $0x89] sm:$0x1]  ;;  %v3166_v25 = vrot.slane %v3091_v63, 3  ;;  %v3168_v51 = vrot.slane %v3092_v58, 2  ;;  %v2665_v40 = vsel %vm659_vm4, %v2664_v10, %v2663_v22  ;;  %v2896_v2 = vsel %vm653_vm2, %v2895_v28, %v2817_v41  ;;  %v3097_v48 = vld [vmem:[#allocation2 + $0xb9] sm:$0x1]  ;;  %5409 = vmatprep.mubr.msk.f32.mxu0 %vm5750_vm1, %v7821_v55 }
 0x116   : > { %v3170_v7 = vrot.slane %v3093_v9, 1  ;;  %v3172_v47 = vrot.slane %v3095_v50, 7  ;;  %v2890_v53 = vsel %vm665_vm6, %v2889_v54, %v2888_v45  ;;  %v2898_v5 = vsel %vm656_vm3, %v2897_v57, %v2896_v2  ;;  %v2826_v60 = vld [vmem:[#allocation2 + $0x118] sm:$0x1]  ;;  %v2827_v38 = vld [vmem:[#allocation2 + $0x128] sm:$0x1] }
 0x117   : > { %v3165_v19 = vsel %vm662_vm5, %v3164_v1, %v3163_v44  ;;  %v3174_v12 = vrot.slane %v3096_v31, 6  ;;  %5395 = vmatpush3.msk.msra.mxu1 %vm729_vm9, %v2665_v40  ;;  %v2892_v4 = vsel %vm668_vm7, %v2891_v15, %v2890_v53  ;;  %v2900_v0 = vsel %vm659_vm4, %v2899_v6, %v2898_v5  ;;  %v2828_v27 = vld [vmem:[#allocation2 + $0x138] sm:$0x1]  ;;  %v2829_v24 = vld [vmem:[#allocation2 + $0x148] sm:$0x1]  ;;  %v7857_v9 = vld [vmem:[#allocation28_spill] sm:$0xff] }
 0x118   : > { %v3167_v35 = vsel %vm665_vm6, %v3166_v25, %v3165_v19  ;;  %v3173_v62 = vsel %vm653_vm2, %v3172_v47, %v3094_v59  ;;  %5557 = vmatprep.subr.bf16.mxu1 %v7807_v36  ;;  %5397 = vmatmul.mubr.msk.f32.vlgmr.msra.gmra.mrb[6].mxu1 %vm725_vm10, %v6622_v46  ;;  %v7852_v32 = vrot.slane %v7851_v13, 4  ;;  %v3176_v26 = vrot.slane %v3097_v48, 5  ;;  %v2825_v46 = vld [vmem:[#allocation2 + $0x108] sm:$0x1]  ;;  %v2830_v61 = vld [vmem:[#allocation2 + $0x158] sm:$0x1] }
 0x119   : > { %v3169_v37 = vsel %vm668_vm7, %v3168_v51, %v3167_v35  ;;  %v3175_v56 = vsel %vm656_vm3, %v3174_v12, %v3173_v62  ;;  %v2894_v33 = vsel %vm671_vm8, %v2893_v52, %v2892_v4  ;;  %v7854_v17 = vrot.slane %v7853_v34, 3  ;;  %v2831_v16 = vld [vmem:[#allocation2 + $0x168] sm:$0x1]  ;;  %5422 = vmatprep.mubr.msk.f32.mxu1 %vm5750_vm1, %v7821_v55  ;;  %v2832_v20 = vld [vmem:[#allocation2 + $0x178] sm:$0x1] }
 0x11a   : > { %v2902_v21 = vsel %vm662_vm5, %v7852_v32, %v2900_v0  ;;  %v3171_v8 = vsel %vm671_vm8, %v3170_v7, %v3169_v37  ;;  %v7855_v41 = vld [vmem:[#allocation27_spill] sm:$0xff]  ;;  %v3177_v63 = vsel %vm659_vm4, %v3176_v26, %v3175_v56  ;;  %v2834_v3 = vld [vmem:[#allocation2 + $0x198] sm:$0x1]  ;;  %v2909_v10 = vrot.slane %v2826_v60, 7  ;;  %v3103_v12 = vld [vmem:[#allocation2 + $0x119] sm:$0x1] }
 0x11b   : > { %v2904_v18 = vsel %vm665_vm6, %v7854_v17, %v2902_v21  ;;  %v7856_v11 = vrot.slane %v7855_v41, 2  ;;  %v2911_v58 = vrot.slane %v2827_v38, 6  ;;  %v7858_v23 = vrot.slane %v7857_v9, 1  ;;  %v2833_v54 = vld [vmem:[#allocation2 + $0x188] sm:$0x1] }
 0x11c   : > { %v7859_v22 = vrot.slane %v6374_v43, 4  ;;  %v2835_v15 = vld [vmem:[#allocation2 + $0x1a8] sm:$0x1]  ;;  %v2836_v50 = vld [vmem:[#allocation2 + $0x1b8] sm:$0x1]  ;;  %v2913_v52 = vrot.slane %v2828_v27, 5  ;;  %v2910_v59 = vsel %vm653_vm2, %v2909_v10, %v2825_v46 }
 0x11d   : > { %v2906_v42 = vsel %vm668_vm7, %v7856_v11, %v2904_v18  ;;  %v2915_v28 = vrot.slane %v2829_v24, 4  ;;  %v2837_v31 = vld [vmem:[#allocation2 + $0x1c8] sm:$0x1]  ;;  %v2838_v45 = vld [vmem:[#allocation2 + $0x1d8] sm:$0x1]  ;;  %v2917_v1 = vrot.slane %v2830_v61, 3  ;;  %v2912_v2 = vsel %vm656_vm3, %v2911_v58, %v2910_v59 }
 0x11e   : > { %v2908_v44 = vsel %vm671_vm8, %v7858_v23, %v2906_v42  ;;  %v3179_v49 = vsel %vm662_vm5, %v7859_v22, %v3177_v63  ;;  %v7860_v25 = vrot.slane %v6406_v29, 2  ;;  %v2839_v51 = vld [vmem:[#allocation2 + $0x1e8] sm:$0x1]  ;;  %v2840_v40 = vld [vmem:[#allocation2 + $0x1f8] sm:$0x1]  ;;  %v2919_v48 = vrot.slane %v2831_v16, 2 }
 0x11f   : > { %v5552_v57 = vpack.c.bf16 %v2908_v44, %v2894_v33  ;;  %v3181_v6 = vsel %vm665_vm6, %v3180_v39, %v3179_v49  ;;  %v2921_v7 = vrot.slane %v2832_v20, 1  ;;  %v7861_v14 = vrot.slane %v6452_v30, 1  ;;  %v3102_v19 = vld [vmem:[#allocation2 + $0x109] sm:$0x1]  ;;  %v3105_v60 = vld [vmem:[#allocation2 + $0x139] sm:$0x1] }
 0x120   : > { %v3183_v43 = vsel %vm668_vm7, %v7860_v25, %v3181_v6  ;;  %v2914_v47 = vsel %vm659_vm4, %v2913_v52, %v2912_v2  ;;  %v2923_v53 = vrot.slane %v2834_v3, 7  ;;  %v2925_v5 = vrot.slane %v2835_v15, 6  ;;  %v3104_v62 = vld [vmem:[#allocation2 + $0x129] sm:$0x1]  ;;  %v3107_v37 = vld [vmem:[#allocation2 + $0x159] sm:$0x1] }
 0x121   : > { %5553 = vmatpush3.bf16.msra.mxu0 %v5552_v57  ;;  %v3185_v39 = vsel %vm671_vm8, %v7861_v14, %v3183_v43  ;;  %v2916_v4 = vsel %vm662_vm5, %v2915_v28, %v2914_v47  ;;  %v2927_v0 = vrot.slane %v2836_v50, 5  ;;  %v2929_v35 = vrot.slane %v2837_v31, 4  ;;  %v3106_v21 = vld [vmem:[#allocation2 + $0x149] sm:$0x1]  ;;  %v3109_v33 = vld [vmem:[#allocation2 + $0x179] sm:$0x1] }
 0x122   : > { %v5558_v29 = vpack.c.bf16 %v3185_v39, %v3171_v8  ;;  %5554 = vmatprep.subr.bf16.mxu0 %v7807_v36  ;;  %v2918_v38 = vsel %vm665_vm6, %v2917_v1, %v2916_v4  ;;  %v2924_v30 = vsel %vm653_vm2, %v2923_v53, %v2833_v54  ;;  %v2931_v13 = vrot.slane %v2838_v45, 3  ;;  %v3108_v24 = vld [vmem:[#allocation2 + $0x169] sm:$0x1]  ;;  %v3111_v46 = vld [vmem:[#allocation2 + $0x199] sm:$0x1] }
 0x123   : > { %v2933_v32 = vrot.slane %v2839_v51, 2  ;;  %v2920_v56 = vsel %vm668_vm7, %v2919_v48, %v2918_v38  ;;  %v2926_v26 = vsel %vm656_vm3, %v2925_v5, %v2924_v30  ;;  %v2935_v27 = vrot.slane %v2840_v40, 1  ;;  %v3110_v8 = vld [vmem:[#allocation2 + $0x189] sm:$0x1]  ;;  %v3113_v42 = vld [vmem:[#allocation2 + $0x1b9] sm:$0x1] }
 0x124   : > { %5559 = vmatpush3.bf16.msra.mxu1 %v5558_v29  ;;  %v3186_v34 = vrot.slane %v3103_v12, 7  ;;  %v2922_v17 = vsel %vm671_vm8, %v2921_v7, %v2920_v56  ;;  %v2928_v18 = vsel %vm659_vm4, %v2927_v0, %v2926_v26  ;;  %v3112_v61 = vld [vmem:[#allocation2 + $0x1a9] sm:$0x1]  ;;  %v3188_v16 = vrot.slane %v3104_v62, 6  ;;  %v3115_v9 = vld [vmem:[#allocation2 + $0x1d9] sm:$0x1] }
 0x125   : > { %5560 = vmatprep.subr.bf16.mxu1 %v7807_v36  ;;  %v3190_v41 = vrot.slane %v3105_v60, 5  ;;  %v2930_v11 = vsel %vm662_vm5, %v2929_v35, %v2928_v18  ;;  %v3114_v63 = vld [vmem:[#allocation2 + $0x1c9] sm:$0x1]  ;;  %v3192_v3 = vrot.slane %v3106_v21, 4  ;;  %v3194_v10 = vrot.slane %v3107_v37, 3 }
 0x126   : > { %v3187_v20 = vsel %vm653_vm2, %v3186_v34, %v3102_v19  ;;  %v2932_v58 = vsel %vm665_vm6, %v2931_v13, %v2930_v11  ;;  %v3116_v23 = vld [vmem:[#allocation2 + $0x1e9] sm:$0x1]  ;;  %v3196_v22 = vrot.slane %v3108_v24, 2  ;;  %v3198_v49 = vrot.slane %v3109_v33, 1  ;;  %v3117_v15 = vld [vmem:[#allocation2 + $0x1f9] sm:$0x1] }
 0x127   : > { %v3189_v44 = vsel %vm656_vm3, %v3188_v16, %v3187_v20  ;;  %v2934_v54 = vsel %vm668_vm7, %v2933_v32, %v2932_v58  ;;  %v3200_v52 = vrot.slane %v3111_v46, 7  ;;  %v3202_v28 = vrot.slane %v3112_v61, 6  ;;  %v2842_v57 = vld [vmem:[#allocation2 + $0x218] sm:$0x1]  ;;  %v2841_v1 = vld [vmem:[#allocation2 + $0x208] sm:$0x1] }
 0x128   : > { %v3191_v50 = vsel %vm659_vm4, %v3190_v41, %v3189_v44  ;;  %v2936_v6 = vsel %vm671_vm8, %v2935_v27, %v2934_v54  ;;  %v3204_v45 = vrot.slane %v3113_v42, 5  ;;  %v3206_v59 = vrot.slane %v3114_v63, 4  ;;  %v2843_v25 = vld [vmem:[#allocation2 + $0x228] sm:$0x1]  ;;  %v2844_v43 = vld [vmem:[#allocation2 + $0x238] sm:$0x1] }
 0x129   : > { %v3193_v31 = vsel %vm662_vm5, %v3192_v3, %v3191_v50  ;;  %v5555_v51 = vpack.c.bf16 %v2936_v6, %v2922_v17  ;;  %v3201_v2 = vsel %vm653_vm2, %v3200_v52, %v3110_v8  ;;  %v3208_v48 = vrot.slane %v3115_v9, 3  ;;  %v3119_v7 = vld [vmem:[#allocation2 + $0x219] sm:$0x1]  ;;  %v3120_v14 = vld [vmem:[#allocation2 + $0x229] sm:$0x1]  ;;  %v6986_v54 = vld [vmem:[%s7703_s1] sm:$0xff] }
 0x12a   : > { %v3195_v40 = vsel %vm665_vm6, %v3194_v10, %v3193_v31  ;;  %v3203_v47 = vsel %vm656_vm3, %v3202_v28, %v3201_v2  ;;  %v3210_v53 = vrot.slane %v3116_v23, 2  ;;  %v3212_v5 = vrot.slane %v3117_v15, 1  ;;  %v3121_v19 = vld [vmem:[#allocation2 + $0x239] sm:$0x1]  ;;  %v3364_v12 = vld [vmem:[#allocation2 + $0x1a] sm:$0x1] }
 0x12b   : > { %v3197_v39 = vsel %vm668_vm7, %v3196_v22, %v3195_v40  ;;  %5556 = vmatpush3.bf16.msra.mxu0 %v5555_v51  ;;  %v3205_v4 = vsel %vm659_vm4, %v3204_v45, %v3203_v47  ;;  %v2937_v0 = vrot.slane %v2842_v57, 7  ;;  %v2939_v35 = vrot.slane %v2843_v25, 6  ;;  %v3118_v62 = vld [vmem:[#allocation2 + $0x209] sm:$0x1]  ;;  %v3363_v60 = vld [vmem:[#allocation2 + $0xa] sm:$0x1] }
 0x12c   : > { %v3199_v29 = vsel %vm671_vm8, %v3198_v49, %v3197_v39  ;;  %v3207_v38 = vsel %vm662_vm5, %v3206_v59, %v3205_v4  ;;  %5407 = vmatprep.subr.mxu0 %v7821_v55  ;;  %v2941_v30 = vrot.slane %v2844_v43, 5  ;;  %v3214_v13 = vrot.slane %v3119_v7, 7  ;;  %v3365_v21 = vld [vmem:[#allocation2 + $0x2a] sm:$0x1]  ;;  %v3366_v27 = vld [vmem:[#allocation2 + $0x3a] sm:$0x1] }
 0x12d   : > { %v3216_v32 = vrot.slane %v3120_v14, 6  ;;  %v3209_v37 = vsel %vm665_vm6, %v3208_v48, %v3207_v38  ;;  %v2938_v56 = vsel %vm653_vm2, %v2937_v0, %v2841_v1  ;;  %v3218_v26 = vrot.slane %v3121_v19, 5  ;;  %v3367_v24 = vld [vmem:[#allocation2 + $0x4a] sm:$0x1]  ;;  %v3368_v8 = vld [vmem:[#allocation2 + $0x5a] sm:$0x1] }
 0x12e   : > { %v3435_v33 = vrot.slane %v3364_v12, 7  ;;  %v3211_v34 = vsel %vm668_vm7, %v3210_v53, %v3209_v37  ;;  %v2940_v17 = vsel %vm656_vm3, %v2939_v35, %v2938_v56  ;;  %v3215_v18 = vsel %vm653_vm2, %v3214_v13, %v3118_v62  ;;  %v3369_v46 = vld [vmem:[#allocation2 + $0x6a] sm:$0x1]  ;;  %v3370_v61 = vld [vmem:[#allocation2 + $0x7a] sm:$0x1] }
 0x12f   : > { %v3213_v16 = vsel %vm671_vm8, %v3212_v5, %v3211_v34  ;;  %v2942_v41 = vsel %vm659_vm4, %v2941_v30, %v2940_v17  ;;  %v3217_v11 = vsel %vm656_vm3, %v3216_v32, %v3215_v18  ;;  %v3371_v42 = vld [vmem:[#allocation2 + $0x8a] sm:$0x1]  ;;  %v3372_v63 = vld [vmem:[#allocation2 + $0x9a] sm:$0x1]  ;;  %v3437_v44 = vrot.slane %v3365_v21, 6 }
 0x130   : > { %v3373_v20 = vld [vmem:[#allocation2 + $0xaa] sm:$0x1]  ;;  %v3374_v3 = vld [vmem:[#allocation2 + $0xba] sm:$0x1]  ;;  %v3436_v10 = vsel %vm653_vm2, %v3435_v33, %v3363_v60  ;;  %v5561_v58 = vpack.c.bf16 %v3213_v16, %v3199_v29  ;;  %5408 = vmatpush3.msk.msra.mxu0 %vm729_vm9, %v2942_v41  ;;  %v3439_v22 = vrot.slane %v3366_v27, 5  ;;  %v3219_v49 = vsel %vm659_vm4, %v3218_v26, %v3217_v11 }
 0x131   : > { %v3375_v9 = vld [vmem:[#allocation2 + $0xca] sm:$0x1]  ;;  %v3376_v23 = vld [vmem:[#allocation2 + $0xda] sm:$0x1]  ;;  %5410 = vmatmul.mubr.msk.f32.vlgmr.msra.gmra.mrb[8].mxu0 %vm725_vm10, %v6986_v54  ;;  %5563 = vmatprep.subr.bf16.mxu0 %v7807_v36  ;;  %v3441_v50 = vrot.slane %v3367_v24, 4  ;;  %v3443_v52 = vrot.slane %v3368_v8, 3  ;;  %v3438_v6 = vsel %vm656_vm3, %v3437_v44, %v3436_v10 }
 0x132   : > { %v3377_v15 = vld [vmem:[#allocation2 + $0xea] sm:$0x1]  ;;  %v3641_v28 = vld [vmem:[#allocation2 + $0x1b] sm:$0x1]  ;;  %5562 = vmatpush3.bf16.msra.mxu1 %v5561_v58  ;;  %v3378_v57 = vld [vmem:[#allocation2 + $0xfa] sm:$0x1]  ;;  %5435 = vmatprep.mubr.msk.f32.mxu0 %vm5750_vm1, %v7821_v55  ;;  %v3440_v1 = vsel %vm659_vm4, %v3439_v22, %v3438_v6 }
 0x133   : > { %v3445_v31 = vrot.slane %v3369_v46, 2  ;;  %v3449_v45 = vrot.slane %v3372_v63, 7  ;;  %v3453_v59 = vrot.slane %v3374_v3, 5  ;;  %5420 = vmatprep.subr.mxu1 %v7821_v55  ;;  %v3447_v25 = vrot.slane %v3370_v61, 1  ;;  %v3640_v40 = vld [vmem:[#allocation2 + $0xb] sm:$0x1] }
 0x134   : > { %v3451_v43 = vrot.slane %v3373_v20, 6  ;;  %v3455_v51 = vrot.slane %v3375_v9, 4  ;;  %v3442_v2 = vsel %vm662_vm5, %v3441_v50, %v3440_v1  ;;  %v3457_v7 = vrot.slane %v3376_v23, 3  ;;  %v3642_v14 = vld [vmem:[#allocation2 + $0x2b] sm:$0x1] }
 0x135   : > { %v3450_v48 = vsel %vm653_vm2, %v3449_v45, %v3371_v42  ;;  %v3643_v39 = vld [vmem:[#allocation2 + $0x3b] sm:$0x1]  ;;  %v3712_v47 = vrot.slane %v3641_v28, 7  ;;  %v3444_v53 = vsel %vm665_vm6, %v3443_v52, %v3442_v2  ;;  %v3459_v19 = vrot.slane %v3377_v15, 2  ;;  %v3644_v29 = vld [vmem:[#allocation2 + $0x4b] sm:$0x1] }
 0x136   : > { %v3452_v5 = vsel %vm656_vm3, %v3451_v43, %v3450_v48  ;;  %v3461_v12 = vrot.slane %v3378_v57, 1  ;;  %v3645_v4 = vld [vmem:[#allocation2 + $0x5b] sm:$0x1]  ;;  %5421 = vmatpush3.msk.msra.mxu1 %vm729_vm9, %v3219_v49  ;;  %v3446_v0 = vsel %vm668_vm7, %v3445_v31, %v3444_v53  ;;  %v3646_v62 = vld [vmem:[#allocation2 + $0x6b] sm:$0x1]  ;;  %v3714_v33 = vrot.slane %v3642_v14, 6 }
 0x137   : > { %v3454_v35 = vsel %vm659_vm4, %v3453_v59, %v3452_v5  ;;  %v3647_v60 = vld [vmem:[#allocation2 + $0x7b] sm:$0x1]  ;;  %5423 = vmatmul.mubr.msk.f32.vlgmr.msra.gmra.mrb[8].mxu1 %vm725_vm10, %v6986_v54  ;;  %5569 = vmatprep.subr.bf16.mxu1 %v7807_v36  ;;  %v3448_v30 = vsel %vm671_vm8, %v3447_v25, %v3446_v0  ;;  %v3648_v32 = vld [vmem:[#allocation2 + $0x8b] sm:$0x1]  ;;  %v3713_v26 = vsel %vm653_vm2, %v3712_v47, %v3640_v40  ;;  %v3716_v34 = vrot.slane %v3643_v39, 5 }
 0x138   : > { %v3649_v38 = vld [vmem:[#allocation2 + $0x9b] sm:$0x1]  ;;  %v3456_v13 = vsel %vm662_vm5, %v3455_v51, %v3454_v35  ;;  %v3650_v21 = vld [vmem:[#allocation2 + $0xab] sm:$0x1]  ;;  %v3718_v17 = vrot.slane %v3644_v29, 4  ;;  %5448 = vmatprep.mubr.msk.f32.mxu1 %vm5750_vm1, %v7821_v55  ;;  %v3720_v46 = vrot.slane %v3645_v4, 3  ;;  %v3715_v42 = vsel %vm656_vm3, %v3714_v33, %v3713_v26 }
 0x139   : > { %v3651_v37 = vld [vmem:[#allocation2 + $0xbb] sm:$0x1]  ;;  %v3652_v56 = vld [vmem:[#allocation2 + $0xcb] sm:$0x1]  ;;  %v3458_v27 = vsel %vm665_vm6, %v3457_v7, %v3456_v13  ;;  %v3722_v61 = vrot.slane %v3646_v62, 2  ;;  %v3724_v16 = vrot.slane %v3647_v60, 1  ;;  %v3717_v58 = vsel %vm659_vm4, %v3716_v34, %v3715_v42 }
 0x13a   : > { %v3653_v24 = vld [vmem:[#allocation2 + $0xdb] sm:$0x1]  ;;  %v3460_v18 = vsel %vm668_vm7, %v3459_v19, %v3458_v27  ;;  %v3654_v8 = vld [vmem:[#allocation2 + $0xeb] sm:$0x1]  ;;  %v3726_v63 = vrot.slane %v3649_v38, 7  ;;  %v3728_v20 = vrot.slane %v3650_v21, 6  ;;  %v3719_v49 = vsel %vm662_vm5, %v3718_v17, %v3717_v58 }
 0x13b   : > { %v3462_v41 = vsel %vm671_vm8, %v3461_v12, %v3460_v18  ;;  %v3655_v11 = vld [vmem:[#allocation2 + $0xfb] sm:$0x1]  ;;  %v3380_v3 = vld [vmem:[#allocation2 + $0x11a] sm:$0x1]  ;;  %v3730_v9 = vrot.slane %v3651_v37, 5  ;;  %v3732_v23 = vrot.slane %v3652_v56, 4  ;;  %v3721_v57 = vsel %vm665_vm6, %v3720_v46, %v3719_v49 }
 0x13c   : > { %v5564_v10 = vpack.c.bf16 %v3462_v41, %v3448_v30  ;;  %v3379_v44 = vld [vmem:[#allocation2 + $0x10a] sm:$0x1]  ;;  %v3727_v15 = vsel %vm653_vm2, %v3726_v63, %v3648_v32  ;;  %v3734_v50 = vrot.slane %v3653_v24, 3  ;;  %v3382_v52 = vld [vmem:[#allocation2 + $0x13a] sm:$0x1]  ;;  %v3736_v31 = vrot.slane %v3654_v8, 2 }
 0x13d   : > { %v3381_v22 = vld [vmem:[#allocation2 + $0x12a] sm:$0x1]  ;;  %v3729_v6 = vsel %vm656_vm3, %v3728_v20, %v3727_v15  ;;  %v3384_v45 = vld [vmem:[#allocation2 + $0x15a] sm:$0x1]  ;;  %v3463_v1 = vrot.slane %v3380_v3, 7  ;;  %v3723_v25 = vsel %vm668_vm7, %v3722_v61, %v3721_v57  ;;  %v3738_v51 = vrot.slane %v3655_v11, 1 }
 0x13e   : > { %v3383_v28 = vld [vmem:[#allocation2 + $0x14a] sm:$0x1]  ;;  %5565 = vmatpush3.bf16.msra.mxu0 %v5564_v10  ;;  %v3731_v43 = vsel %vm659_vm4, %v3730_v9, %v3729_v6  ;;  %v3386_v40 = vld [vmem:[#allocation2 + $0x17a] sm:$0x1]  ;;  %v3725_v48 = vsel %vm671_vm8, %v3724_v16, %v3723_v25  ;;  %v3465_v29 = vrot.slane %v3381_v22, 6  ;;  %v3467_v4 = vrot.slane %v3382_v52, 5 }
 0x13f   : > { %v3385_v59 = vld [vmem:[#allocation2 + $0x16a] sm:$0x1]  ;;  %5566 = vmatprep.subr.bf16.mxu0 %v7807_v36  ;;  %v3388_v2 = vld [vmem:[#allocation2 + $0x19a] sm:$0x1]  ;;  %v3733_v7 = vsel %vm662_vm5, %v3732_v23, %v3731_v43  ;;  %v3464_v5 = vsel %vm653_vm2, %v3463_v1, %v3379_v44  ;;  %v3469_v0 = vrot.slane %v3383_v28, 4  ;;  %v3471_v60 = vrot.slane %v3384_v45, 3 }
 0x140   : > { %v3387_v14 = vld [vmem:[#allocation2 + $0x18a] sm:$0x1]  ;;  %v3390_v47 = vld [vmem:[#allocation2 + $0x1ba] sm:$0x1]  ;;  %v3735_v19 = vsel %vm665_vm6, %v3734_v50, %v3733_v7  ;;  %v3473_v38 = vrot.slane %v3385_v59, 2  ;;  %v3475_v30 = vrot.slane %v3386_v40, 1  ;;  %v3466_v21 = vsel %vm656_vm3, %v3465_v29, %v3464_v5 }
 0x141   : > { %v3389_v39 = vld [vmem:[#allocation2 + $0x1aa] sm:$0x1]  ;;  %v3392_v12 = vld [vmem:[#allocation2 + $0x1da] sm:$0x1]  ;;  %v3737_v35 = vsel %vm668_vm7, %v3736_v31, %v3735_v19  ;;  %v3477_v37 = vrot.slane %v3388_v2, 7  ;;  %v3468_v24 = vsel %vm659_vm4, %v3467_v4, %v3466_v21  ;;  %v3481_v33 = vrot.slane %v3390_v47, 5 }
 0x142   : > { %v3391_v53 = vld [vmem:[#allocation2 + $0x1ca] sm:$0x1]  ;;  %v3739_v13 = vsel %vm671_vm8, %v3738_v51, %v3737_v35  ;;  %v3394_v32 = vld [vmem:[#allocation2 + $0x1fa] sm:$0x1]  ;;  %v3479_v56 = vrot.slane %v3389_v39, 6  ;;  %v3470_v8 = vsel %vm662_vm5, %v3469_v0, %v3468_v24  ;;  %v3485_v61 = vrot.slane %v3392_v12, 3 }
 0x143   : > { %v3393_v62 = vld [vmem:[#allocation2 + $0x1ea] sm:$0x1]  ;;  %v3657_v26 = vld [vmem:[#allocation2 + $0x11b] sm:$0x1]  ;;  %v5570_v27 = vpack.c.bf16 %v3739_v13, %v3725_v48  ;;  %v3483_v34 = vrot.slane %v3391_v53, 4  ;;  %v3478_v46 = vsel %vm653_vm2, %v3477_v37, %v3387_v14  ;;  %v3472_v11 = vsel %vm665_vm6, %v3471_v60, %v3470_v8 }
 0x144   : > { %v3656_v17 = vld [vmem:[#allocation2 + $0x10b] sm:$0x1]  ;;  %v3659_v16 = vld [vmem:[#allocation2 + $0x13b] sm:$0x1]  ;;  %v3480_v42 = vsel %vm656_vm3, %v3479_v56, %v3478_v46  ;;  %v3487_v63 = vrot.slane %v3393_v62, 2  ;;  %v3740_v10 = vrot.slane %v3657_v26, 7  ;;  %v3474_v58 = vsel %vm668_vm7, %v3473_v38, %v3472_v11 }
 0x145   : > { %v3658_v18 = vld [vmem:[#allocation2 + $0x12b] sm:$0x1]  ;;  %5571 = vmatpush3.bf16.msra.mxu1 %v5570_v27  ;;  %v3661_v20 = vld [vmem:[#allocation2 + $0x15b] sm:$0x1]  ;;  %v3482_v9 = vsel %vm659_vm4, %v3481_v33, %v3480_v42  ;;  %v3489_v23 = vrot.slane %v3394_v32, 1  ;;  %v3476_v49 = vsel %vm671_vm8, %v3475_v30, %v3474_v58  ;;  %v3744_v1 = vrot.slane %v3659_v16, 5 }
 0x146   : > { %v3660_v41 = vld [vmem:[#allocation2 + $0x14b] sm:$0x1]  ;;  %5572 = vmatprep.subr.bf16.mxu1 %v7807_v36  ;;  %v3663_v44 = vld [vmem:[#allocation2 + $0x17b] sm:$0x1]  ;;  %v3484_v15 = vsel %vm662_vm5, %v3483_v34, %v3482_v9  ;;  %v3741_v6 = vsel %vm653_vm2, %v3740_v10, %v3656_v17  ;;  %v3742_v59 = vrot.slane %v3658_v18, 6  ;;  %v3748_v40 = vrot.slane %v3661_v20, 3 }
 0x147   : > { %v3662_v3 = vld [vmem:[#allocation2 + $0x16b] sm:$0x1]  ;;  %v3665_v22 = vld [vmem:[#allocation2 + $0x19b] sm:$0x1]  ;;  %v3486_v31 = vsel %vm665_vm6, %v3485_v61, %v3484_v15  ;;  %v3746_v25 = vrot.slane %v3660_v41, 4  ;;  %v3752_v48 = vrot.slane %v3663_v44, 1 }
 0x148   : > { %v3664_v50 = vld [vmem:[#allocation2 + $0x18b] sm:$0x1]  ;;  %v3667_v28 = vld [vmem:[#allocation2 + $0x1bb] sm:$0x1]  ;;  %v3488_v43 = vsel %vm668_vm7, %v3487_v63, %v3486_v31  ;;  %v3750_v2 = vrot.slane %v3662_v3, 2  ;;  %v3743_v39 = vsel %vm656_vm3, %v3742_v59, %v3741_v6  ;;  %v3754_v47 = vrot.slane %v3665_v22, 7 }
 0x149   : > { %v3666_v52 = vld [vmem:[#allocation2 + $0x1ab] sm:$0x1]  ;;  %v3669_v45 = vld [vmem:[#allocation2 + $0x1db] sm:$0x1]  ;;  %v3490_v7 = vsel %vm671_vm8, %v3489_v23, %v3488_v43  ;;  %v3396_v5 = vld [vmem:[#allocation2 + $0x21a] sm:$0x1]  ;;  %v3745_v12 = vsel %vm659_vm4, %v3744_v1, %v3743_v39 }
 0x14a   : > { %v3668_v57 = vld [vmem:[#allocation2 + $0x1cb] sm:$0x1]  ;;  %v3671_v14 = vld [vmem:[#allocation2 + $0x1fb] sm:$0x1]  ;;  %v3756_v53 = vrot.slane %v3666_v52, 6  ;;  %v5567_v19 = vpack.c.bf16 %v3490_v7, %v3476_v49  ;;  %v3758_v29 = vrot.slane %v3667_v28, 5  ;;  %v3747_v62 = vsel %vm662_vm5, %v3746_v25, %v3745_v12 }
 0x14b   : > { %v3670_v51 = vld [vmem:[#allocation2 + $0x1eb] sm:$0x1]  ;;  %v3760_v4 = vrot.slane %v3668_v57, 4  ;;  %v3397_v0 = vld [vmem:[#allocation2 + $0x22a] sm:$0x1]  ;;  %v3755_v60 = vsel %vm653_vm2, %v3754_v47, %v3664_v50  ;;  %v3762_v38 = vrot.slane %v3669_v45, 3  ;;  %v3749_v21 = vsel %vm665_vm6, %v3748_v40, %v3747_v62 }
 0x14c   : > { %v3398_v35 = vld [vmem:[#allocation2 + $0x23a] sm:$0x1]  ;;  %v3764_v30 = vrot.slane %v3670_v51, 2  ;;  %v3395_v13 = vld [vmem:[#allocation2 + $0x20a] sm:$0x1]  ;;  %5568 = vmatpush3.bf16.msra.mxu0 %v5567_v19  ;;  %v3757_v37 = vsel %vm656_vm3, %v3756_v53, %v3755_v60  ;;  %v3766_v56 = vrot.slane %v3671_v14, 1  ;;  %v3751_v33 = vsel %vm668_vm7, %v3750_v2, %v3749_v21 }
 0x14d   : > { %v3673_v32 = vld [vmem:[#allocation2 + $0x21b] sm:$0x1]  ;;  %v3491_v26 = vrot.slane %v3396_v5, 7  ;;  %v3674_v27 = vld [vmem:[#allocation2 + $0x22b] sm:$0x1]  ;;  %v3759_v34 = vsel %vm659_vm4, %v3758_v29, %v3757_v37  ;;  %5433 = vmatprep.subr.mxu0 %v7821_v55  ;;  %v3493_v17 = vrot.slane %v3397_v0, 6  ;;  %v3753_v46 = vsel %vm671_vm8, %v3752_v48, %v3751_v33 }
 0x14e   : > { %v3675_v24 = vld [vmem:[#allocation2 + $0x23b] sm:$0x1]  ;;  %v3495_v18 = vrot.slane %v3398_v35, 5  ;;  %v3672_v8 = vld [vmem:[#allocation2 + $0x20b] sm:$0x1]  ;;  %v3761_v61 = vsel %vm662_vm5, %v3760_v4, %v3759_v34  ;;  %v3768_v41 = vrot.slane %v3673_v32, 7 }
 0x14f   : > { %v3492_v16 = vsel %vm653_vm2, %v3491_v26, %v3395_v13  ;;  %v3918_v11 = vld [vmem:[#allocation2 + $0x1c] sm:$0x1]  ;;  %v3763_v42 = vsel %vm665_vm6, %v3762_v38, %v3761_v61  ;;  %v3770_v20 = vrot.slane %v3674_v27, 6  ;;  %v3772_v3 = vrot.slane %v3675_v24, 5  ;;  %v3919_v10 = vld [vmem:[#allocation2 + $0x2c] sm:$0x1] }
 0x150   : > { %v3494_v63 = vsel %vm656_vm3, %v3493_v17, %v3492_v16  ;;  %v3920_v58 = vld [vmem:[#allocation2 + $0x3c] sm:$0x1]  ;;  %v3765_v9 = vsel %vm668_vm7, %v3764_v30, %v3763_v42  ;;  %v3769_v44 = vsel %vm653_vm2, %v3768_v41, %v3672_v8  ;;  %v3917_v22 = vld [vmem:[#allocation2 + $0xc] sm:$0x1]  ;;  %v3989_v2 = vrot.slane %v3918_v11, 7 }
 0x151   : > { %v3496_v23 = vsel %vm659_vm4, %v3495_v18, %v3494_v63  ;;  %v3921_v49 = vld [vmem:[#allocation2 + $0x4c] sm:$0x1]  ;;  %v3922_v15 = vld [vmem:[#allocation2 + $0x5c] sm:$0x1]  ;;  %v3767_v52 = vsel %vm671_vm8, %v3766_v56, %v3765_v9  ;;  %v3771_v28 = vsel %vm656_vm3, %v3770_v20, %v3769_v44  ;;  %v3991_v48 = vrot.slane %v3919_v10, 6 }
 0x152   : > { %v3923_v50 = vld [vmem:[#allocation2 + $0x6c] sm:$0x1]  ;;  %5434 = vmatpush3.msk.msra.mxu0 %vm729_vm9, %v3496_v23  ;;  %v3924_v57 = vld [vmem:[#allocation2 + $0x7c] sm:$0x1]  ;;  %v5573_v59 = vpack.c.bf16 %v3767_v52, %v3753_v46  ;;  %v3773_v51 = vsel %vm659_vm4, %v3772_v3, %v3771_v28  ;;  %v3993_v7 = vrot.slane %v3920_v58, 5  ;;  %v3995_v14 = vrot.slane %v3921_v49, 4 }
 0x153   : > { %v3925_v6 = vld [vmem:[#allocation2 + $0x8c] sm:$0x1]  ;;  %v3926_v31 = vld [vmem:[#allocation2 + $0x9c] sm:$0x1]  ;;  %5436 = vmatmul.mubr.msk.f32.vlgmr.msra.gmra.mrb[10].mxu0 %vm725_vm10, %v6986_v54  ;;  %5575 = vmatprep.subr.bf16.mxu0 %v7807_v36  ;;  %v3997_v39 = vrot.slane %v3922_v15, 3  ;;  %v3999_v47 = vrot.slane %v3923_v50, 2  ;;  %v3990_v12 = vsel %vm653_vm2, %v3989_v2, %v3917_v22 }
 0x154   : > { %v3927_v45 = vld [vmem:[#allocation2 + $0xac] sm:$0x1]  ;;  %v3928_v1 = vld [vmem:[#allocation2 + $0xbc] sm:$0x1]  ;;  %5461 = vmatprep.mubr.msk.f32.mxu0 %vm5750_vm1, %v7821_v55  ;;  %5574 = vmatpush3.bf16.msra.mxu1 %v5573_v59  ;;  %v4003_v53 = vrot.slane %v3926_v31, 7  ;;  %v3992_v35 = vsel %vm656_vm3, %v3991_v48, %v3990_v12  ;;  %v4001_v62 = vrot.slane %v3924_v57, 1 }
 0x155   : > { %v3929_v25 = vld [vmem:[#allocation2 + $0xcc] sm:$0x1]  ;;  %v3930_v43 = vld [vmem:[#allocation2 + $0xdc] sm:$0x1]  ;;  %v4195_v5 = vld [vmem:[#allocation2 + $0x1d] sm:$0x1]  ;;  %5446 = vmatprep.subr.mxu1 %v7821_v55  ;;  %v3994_v30 = vsel %vm659_vm4, %v3993_v7, %v3992_v35 }
 0x156   : > { %v3931_v40 = vld [vmem:[#allocation2 + $0xec] sm:$0x1]  ;;  %v3932_v19 = vld [vmem:[#allocation2 + $0xfc] sm:$0x1]  ;;  %v4005_v29 = vrot.slane %v3927_v45, 6  ;;  %v4007_v4 = vrot.slane %v3928_v1, 5  ;;  %v4004_v60 = vsel %vm653_vm2, %v4003_v53, %v3925_v6  ;;  %v3996_v26 = vsel %vm662_vm5, %v3995_v14, %v3994_v30 }
 0x157   : > { %v4009_v0 = vrot.slane %v3929_v25, 4  ;;  %v4011_v38 = vrot.slane %v3930_v43, 3  ;;  %v4013_v32 = vrot.slane %v3931_v40, 2  ;;  %v4194_v21 = vld [vmem:[#allocation2 + $0xd] sm:$0x1]  ;;  %v4266_v56 = vrot.slane %v4195_v5, 7 }
 0x158   : > { %v4006_v13 = vsel %vm656_vm3, %v4005_v29, %v4004_v60  ;;  %v4196_v37 = vld [vmem:[#allocation2 + $0x2d] sm:$0x1]  ;;  %5447 = vmatpush3.msk.msra.mxu1 %vm729_vm9, %v3773_v51  ;;  %v4015_v24 = vrot.slane %v3932_v19, 1  ;;  %v4197_v33 = vld [vmem:[#allocation2 + $0x3d] sm:$0x1]  ;;  %v3998_v17 = vsel %vm665_vm6, %v3997_v39, %v3996_v26 }
 0x159   : > { %v4008_v27 = vsel %vm659_vm4, %v4007_v4, %v4006_v13  ;;  %v4198_v34 = vld [vmem:[#allocation2 + $0x4d] sm:$0x1]  ;;  %5449 = vmatmul.mubr.msk.f32.vlgmr.msra.gmra.mrb[10].mxu1 %vm725_vm10, %v6986_v54  ;;  %5581 = vmatprep.subr.bf16.mxu1 %v7807_v36  ;;  %v4199_v8 = vld [vmem:[#allocation2 + $0x5d] sm:$0x1]  ;;  %v4000_v16 = vsel %vm668_vm7, %v3999_v47, %v3998_v17  ;;  %v4267_v3 = vsel %vm653_vm2, %v4266_v56, %v4194_v21  ;;  %v4268_v44 = vrot.slane %v4196_v37, 6 }
 0x15a   : > { %v4010_v18 = vsel %vm662_vm5, %v4009_v0, %v4008_v27  ;;  %v4200_v46 = vld [vmem:[#allocation2 + $0x6d] sm:$0x1]  ;;  %v4201_v61 = vld [vmem:[#allocation2 + $0x7d] sm:$0x1]  ;;  %5474 = vmatprep.mubr.msk.f32.mxu1 %vm5750_vm1, %v7821_v55  ;;  %v4002_v10 = vsel %vm671_vm8, %v4001_v62, %v4000_v16  ;;  %v4270_v22 = vrot.slane %v4197_v33, 5  ;;  %v4272_v50 = vrot.slane %v4198_v34, 4 }
 0x15b   : > { %v4012_v41 = vsel %vm665_vm6, %v4011_v38, %v4010_v18  ;;  %v4202_v11 = vld [vmem:[#allocation2 + $0x8d] sm:$0x1]  ;;  %v4203_v42 = vld [vmem:[#allocation2 + $0x9d] sm:$0x1]  ;;  %v4274_v52 = vrot.slane %v4199_v8, 3  ;;  %v4276_v28 = vrot.slane %v4200_v46, 2  ;;  %v4269_v31 = vsel %vm656_vm3, %v4268_v44, %v4267_v3 }
 0x15c   : > { %v4204_v63 = vld [vmem:[#allocation2 + $0xad] sm:$0x1]  ;;  %v4205_v20 = vld [vmem:[#allocation2 + $0xbd] sm:$0x1]  ;;  %v4014_v58 = vsel %vm668_vm7, %v4013_v32, %v4012_v41  ;;  %v4278_v45 = vrot.slane %v4201_v61, 1  ;;  %v4280_v59 = vrot.slane %v4203_v42, 7  ;;  %v4271_v25 = vsel %vm659_vm4, %v4270_v22, %v4269_v31 }
 0x15d   : > { %v4206_v9 = vld [vmem:[#allocation2 + $0xcd] sm:$0x1]  ;;  %v4207_v23 = vld [vmem:[#allocation2 + $0xdd] sm:$0x1]  ;;  %v4016_v49 = vsel %vm671_vm8, %v4015_v24, %v4014_v58  ;;  %v3934_v1 = vld [vmem:[#allocation2 + $0x11c] sm:$0x1]  ;;  %v4273_v48 = vsel %vm662_vm5, %v4272_v50, %v4271_v25 }
 0x15e   : > { %v4208_v15 = vld [vmem:[#allocation2 + $0xed] sm:$0x1]  ;;  %v5576_v57 = vpack.c.bf16 %v4016_v49, %v4002_v10  ;;  %v4209_v6 = vld [vmem:[#allocation2 + $0xfd] sm:$0x1]  ;;  %v4282_v43 = vrot.slane %v4204_v63, 6  ;;  %v4284_v51 = vrot.slane %v4205_v20, 5  ;;  %v4281_v7 = vsel %vm653_vm2, %v4280_v59, %v4202_v11 }
 0x15f   : > { %v4286_v40 = vrot.slane %v4206_v9, 4  ;;  %v3933_v2 = vld [vmem:[#allocation2 + $0x10c] sm:$0x1]  ;;  %v4288_v14 = vrot.slane %v4207_v23, 3  ;;  %v3936_v47 = vld [vmem:[#allocation2 + $0x13c] sm:$0x1]  ;;  %v4275_v53 = vsel %vm665_vm6, %v4274_v52, %v4273_v48 }
 0x160   : > { %5577 = vmatpush3.bf16.msra.mxu0 %v5576_v57  ;;  %v3935_v39 = vld [vmem:[#allocation2 + $0x12c] sm:$0x1]  ;;  %v4283_v5 = vsel %vm656_vm3, %v4282_v43, %v4281_v7  ;;  %v4290_v19 = vrot.slane %v4208_v15, 2  ;;  %v3938_v29 = vld [vmem:[#allocation2 + $0x15c] sm:$0x1]  ;;  %v4017_v4 = vrot.slane %v3934_v1, 7  ;;  %v4277_v0 = vsel %vm668_vm7, %v4276_v28, %v4275_v53 }
 0x161   : > { %5578 = vmatprep.subr.bf16.mxu0 %v7807_v36  ;;  %v3937_v12 = vld [vmem:[#allocation2 + $0x14c] sm:$0x1]  ;;  %v4285_v35 = vsel %vm659_vm4, %v4284_v51, %v4283_v5  ;;  %v4292_v62 = vrot.slane %v4209_v6, 1  ;;  %v3940_v38 = vld [vmem:[#allocation2 + $0x17c] sm:$0x1]  ;;  %v4279_v30 = vsel %vm671_vm8, %v4278_v45, %v4277_v0  ;;  %v4019_v33 = vrot.slane %v3935_v39, 6 }
 0x162   : > { %v3939_v60 = vld [vmem:[#allocation2 + $0x16c] sm:$0x1]  ;;  %v4287_v13 = vsel %vm662_vm5, %v4286_v40, %v4285_v35  ;;  %v3942_v21 = vld [vmem:[#allocation2 + $0x19c] sm:$0x1]  ;;  %v4018_v26 = vsel %vm653_vm2, %v4017_v4, %v3933_v2  ;;  %v4021_v34 = vrot.slane %v3936_v47, 5  ;;  %v4023_v17 = vrot.slane %v3937_v12, 4 }
 0x163   : > { %v3941_v32 = vld [vmem:[#allocation2 + $0x18c] sm:$0x1]  ;;  %v3944_v56 = vld [vmem:[#allocation2 + $0x1bc] sm:$0x1]  ;;  %v4289_v27 = vsel %vm665_vm6, %v4288_v14, %v4287_v13  ;;  %v4025_v46 = vrot.slane %v3938_v29, 3  ;;  %v4027_v61 = vrot.slane %v3939_v60, 2  ;;  %v4020_v42 = vsel %vm656_vm3, %v4019_v33, %v4018_v26 }
 0x164   : > { %v3943_v37 = vld [vmem:[#allocation2 + $0x1ac] sm:$0x1]  ;;  %v4291_v18 = vsel %vm668_vm7, %v4290_v19, %v4289_v27  ;;  %v3946_v8 = vld [vmem:[#allocation2 + $0x1dc] sm:$0x1]  ;;  %v4029_v16 = vrot.slane %v3940_v38, 1  ;;  %v4031_v63 = vrot.slane %v3942_v21, 7  ;;  %v4022_v9 = vsel %vm659_vm4, %v4021_v34, %v4020_v42 }
 0x165   : > { %v3945_v24 = vld [vmem:[#allocation2 + $0x1cc] sm:$0x1]  ;;  %v4293_v41 = vsel %vm671_vm8, %v4292_v62, %v4291_v18  ;;  %v4033_v20 = vrot.slane %v3943_v37, 6  ;;  %v4211_v3 = vld [vmem:[#allocation2 + $0x11d] sm:$0x1]  ;;  %v4035_v23 = vrot.slane %v3944_v56, 5  ;;  %v4024_v22 = vsel %vm662_vm5, %v4023_v17, %v4022_v9 }
 0x166   : > { %v3947_v11 = vld [vmem:[#allocation2 + $0x1ec] sm:$0x1]  ;;  %v5582_v10 = vpack.c.bf16 %v4293_v41, %v4279_v30  ;;  %v3948_v58 = vld [vmem:[#allocation2 + $0x1fc] sm:$0x1]  ;;  %v4037_v44 = vrot.slane %v3945_v24, 4  ;;  %v4032_v49 = vsel %vm653_vm2, %v4031_v63, %v3941_v32  ;;  %v4039_v15 = vrot.slane %v3946_v8, 3 }
 0x167   : > { %v4210_v50 = vld [vmem:[#allocation2 + $0x10d] sm:$0x1]  ;;  %v4026_v28 = vsel %vm665_vm6, %v4025_v46, %v4024_v22  ;;  %v4034_v57 = vsel %vm656_vm3, %v4033_v20, %v4032_v49  ;;  %v4041_v6 = vrot.slane %v3947_v11, 2  ;;  %v4213_v31 = vld [vmem:[#allocation2 + $0x13d] sm:$0x1]  ;;  %v4294_v59 = vrot.slane %v4211_v3, 7 }
 0x168   : > { %v4212_v52 = vld [vmem:[#allocation2 + $0x12d] sm:$0x1]  ;;  %5583 = vmatpush3.bf16.msra.mxu1 %v5582_v10  ;;  %v4028_v1 = vsel %vm668_vm7, %v4027_v61, %v4026_v28  ;;  %v4036_v25 = vsel %vm659_vm4, %v4035_v23, %v4034_v57  ;;  %v4043_v43 = vrot.slane %v3948_v58, 1  ;;  %v4215_v51 = vld [vmem:[#allocation2 + $0x15d] sm:$0x1]  ;;  %v4298_v4 = vrot.slane %v4213_v31, 5 }
 0x169   : > { %v4214_v45 = vld [vmem:[#allocation2 + $0x14d] sm:$0x1]  ;;  %5584 = vmatprep.subr.bf16.mxu1 %v7807_v36  ;;  %v4030_v2 = vsel %vm671_vm8, %v4029_v16, %v4028_v1  ;;  %v4038_v48 = vsel %vm662_vm5, %v4037_v44, %v4036_v25  ;;  %v4217_v7 = vld [vmem:[#allocation2 + $0x17d] sm:$0x1]  ;;  %v4295_v5 = vsel %vm653_vm2, %v4294_v59, %v4210_v50  ;;  %v4296_v29 = vrot.slane %v4212_v52, 6 }
 0x16a   : > { %v4216_v40 = vld [vmem:[#allocation2 + $0x16d] sm:$0x1]  ;;  %v4219_v39 = vld [vmem:[#allocation2 + $0x19d] sm:$0x1]  ;;  %v4040_v19 = vsel %vm665_vm6, %v4039_v15, %v4038_v48  ;;  %v4300_v0 = vrot.slane %v4214_v45, 4  ;;  %v4302_v38 = vrot.slane %v4215_v51, 3 }
 0x16b   : > { %v4218_v14 = vld [vmem:[#allocation2 + $0x18d] sm:$0x1]  ;;  %v4221_v53 = vld [vmem:[#allocation2 + $0x1bd] sm:$0x1]  ;;  %v4042_v35 = vsel %vm668_vm7, %v4041_v6, %v4040_v19  ;;  %v4304_v30 = vrot.slane %v4216_v40, 2  ;;  %v4297_v21 = vsel %vm656_vm3, %v4296_v29, %v4295_v5  ;;  %v4308_v37 = vrot.slane %v4219_v39, 7 }
 0x16c   : > { %v4220_v47 = vld [vmem:[#allocation2 + $0x1ad] sm:$0x1]  ;;  %v4223_v62 = vld [vmem:[#allocation2 + $0x1dd] sm:$0x1]  ;;  %v4044_v13 = vsel %vm671_vm8, %v4043_v43, %v4042_v35  ;;  %v3950_v26 = vld [vmem:[#allocation2 + $0x21c] sm:$0x1]  ;;  %v4299_v24 = vsel %vm659_vm4, %v4298_v4, %v4297_v21 }
 0x16d   : > { %v4222_v12 = vld [vmem:[#allocation2 + $0x1cd] sm:$0x1]  ;;  %v4225_v32 = vld [vmem:[#allocation2 + $0x1fd] sm:$0x1]  ;;  %v4310_v56 = vrot.slane %v4220_v47, 6  ;;  %v5579_v27 = vpack.c.bf16 %v4044_v13, %v4030_v2  ;;  %v4312_v33 = vrot.slane %v4221_v53, 5  ;;  %v4301_v8 = vsel %vm662_vm5, %v4300_v0, %v4299_v24 }
 0x16e   : > { %v4224_v60 = vld [vmem:[#allocation2 + $0x1ed] sm:$0x1]  ;;  %v4314_v34 = vrot.slane %v4222_v12, 4  ;;  %v3951_v17 = vld [vmem:[#allocation2 + $0x22c] sm:$0x1]  ;;  %v4306_v46 = vrot.slane %v4217_v7, 1  ;;  %v4309_v61 = vsel %vm653_vm2, %v4308_v37, %v4218_v14  ;;  %v4303_v42 = vsel %vm665_vm6, %v4302_v38, %v4301_v8 }
 0x16f   : > { %v3952_v18 = vld [vmem:[#allocation2 + $0x23c] sm:$0x1]  ;;  %v4316_v16 = vrot.slane %v4223_v62, 3  ;;  %v3949_v41 = vld [vmem:[#allocation2 + $0x20c] sm:$0x1]  ;;  %5580 = vmatpush3.bf16.msra.mxu0 %v5579_v27  ;;  %v4311_v63 = vsel %vm656_vm3, %v4310_v56, %v4309_v61  ;;  %v4318_v20 = vrot.slane %v4224_v60, 2  ;;  %v4305_v15 = vsel %vm668_vm7, %v4304_v30, %v4303_v42 }
 0x170   : > { %v4227_v11 = vld [vmem:[#allocation2 + $0x21d] sm:$0x1]  ;;  %v4045_v3 = vrot.slane %v3950_v26, 7  ;;  %v4226_v10 = vld [vmem:[#allocation2 + $0x20d] sm:$0x1]  ;;  %v4313_v9 = vsel %vm659_vm4, %v4312_v33, %v4311_v63  ;;  %v4320_v23 = vrot.slane %v4225_v32, 1  ;;  %5459 = vmatprep.subr.mxu0 %v7821_v55  ;;  %v4307_v31 = vsel %vm671_vm8, %v4306_v46, %v4305_v15 }
 0x171   : > { %v4228_v58 = vld [vmem:[#allocation2 + $0x22d] sm:$0x1]  ;;  %v4047_v44 = vrot.slane %v3951_v17, 6  ;;  %v4049_v22 = vrot.slane %v3952_v18, 5  ;;  %v4229_v49 = vld [vmem:[#allocation2 + $0x23d] sm:$0x1]  ;;  %v4315_v50 = vsel %vm662_vm5, %v4314_v34, %v4313_v9 }
 0x172   : > { %v4046_v52 = vsel %vm653_vm2, %v4045_v3, %v3949_v41  ;;  %v4322_v28 = vrot.slane %v4227_v11, 7  ;;  %v4472_v57 = vld [vmem:[#allocation2 + $0x1e] sm:$0x1]  ;;  %v4473_v6 = vld [vmem:[#allocation2 + $0x2e] sm:$0x1]  ;;  %v4317_v45 = vsel %vm665_vm6, %v4316_v16, %v4315_v50  ;;  %v4324_v1 = vrot.slane %v4228_v58, 6 }
 0x173   : > { %v4048_v59 = vsel %vm656_vm3, %v4047_v44, %v4046_v52  ;;  %v4471_v25 = vld [vmem:[#allocation2 + $0xe] sm:$0x1]  ;;  %v4474_v43 = vld [vmem:[#allocation2 + $0x3e] sm:$0x1]  ;;  %v4319_v40 = vsel %vm668_vm7, %v4318_v20, %v4317_v45  ;;  %v4326_v7 = vrot.slane %v4229_v49, 5  ;;  %v4543_v0 = vrot.slane %v4472_v57, 7 }
 0x174   : > { %v4475_v51 = vld [vmem:[#allocation2 + $0x4e] sm:$0x1]  ;;  %v4050_v2 = vsel %vm659_vm4, %v4049_v22, %v4048_v59  ;;  %v4323_v48 = vsel %vm653_vm2, %v4322_v28, %v4226_v10  ;;  %v4476_v14 = vld [vmem:[#allocation2 + $0x5e] sm:$0x1]  ;;  %v4321_v47 = vsel %vm671_vm8, %v4320_v23, %v4319_v40  ;;  %v4545_v35 = vrot.slane %v4473_v6, 6 }
 0x175   : > { %v4477_v39 = vld [vmem:[#allocation2 + $0x6e] sm:$0x1]  ;;  %5460 = vmatpush3.msk.msra.mxu0 %vm729_vm9, %v4050_v2  ;;  %v4478_v53 = vld [vmem:[#allocation2 + $0x7e] sm:$0x1]  ;;  %v5585_v12 = vpack.c.bf16 %v4321_v47, %v4307_v31  ;;  %v4325_v62 = vsel %vm656_vm3, %v4324_v1, %v4323_v48  ;;  %v4547_v30 = vrot.slane %v4474_v43, 5  ;;  %v4549_v13 = vrot.slane %v4475_v51, 4 }
 0x176   : > { %v4480_v5 = vld [vmem:[#allocation2 + $0x9e] sm:$0x1]  ;;  %v4481_v19 = vld [vmem:[#allocation2 + $0xae] sm:$0x1]  ;;  %5462 = vmatmul.mubr.msk.f32.vlgmr.msra.gmra.mrb[12].mxu0 %vm725_vm10, %v6986_v54  ;;  %5587 = vmatprep.subr.bf16.mxu0 %v7807_v36  ;;  %v4544_v21 = vsel %vm653_vm2, %v4543_v0, %v4471_v25  ;;  %v4551_v37 = vrot.slane %v4476_v14, 3  ;;  %v4553_v56 = vrot.slane %v4477_v39, 2  ;;  %v4327_v16 = vsel %vm659_vm4, %v4326_v7, %v4325_v62 }
 0x177   : > { %v4482_v29 = vld [vmem:[#allocation2 + $0xbe] sm:$0x1]  ;;  %v4483_v4 = vld [vmem:[#allocation2 + $0xce] sm:$0x1]  ;;  %5487 = vmatprep.mubr.msk.f32.mxu0 %vm5750_vm1, %v7821_v55  ;;  %5586 = vmatpush3.bf16.msra.mxu1 %v5585_v12  ;;  %v4557_v26 = vrot.slane %v4480_v5, 7  ;;  %v4546_v24 = vsel %vm656_vm3, %v4545_v35, %v4544_v21  ;;  %v4559_v33 = vrot.slane %v4481_v19, 6 }
 0x178   : > { %v4479_v60 = vld [vmem:[#allocation2 + $0x8e] sm:$0x1]  ;;  %v4484_v38 = vld [vmem:[#allocation2 + $0xde] sm:$0x1]  ;;  %5472 = vmatprep.subr.mxu1 %v7821_v55  ;;  %v4561_v34 = vrot.slane %v4482_v29, 5  ;;  %v4563_v17 = vrot.slane %v4483_v4, 4  ;;  %v4548_v18 = vsel %vm659_vm4, %v4547_v30, %v4546_v24 }
 0x179   : > { %v4485_v32 = vld [vmem:[#allocation2 + $0xee] sm:$0x1]  ;;  %v4486_v27 = vld [vmem:[#allocation2 + $0xfe] sm:$0x1]  ;;  %v4555_v8 = vrot.slane %v4478_v53, 1  ;;  %v4558_v46 = vsel %vm653_vm2, %v4557_v26, %v4479_v60  ;;  %v4565_v61 = vrot.slane %v4484_v38, 3  ;;  %v4550_v41 = vsel %vm662_vm5, %v4549_v13, %v4548_v18 }
 0x17a   : > { %v4560_v11 = vsel %vm656_vm3, %v4559_v33, %v4558_v46  ;;  %v4567_v42 = vrot.slane %v4485_v32, 2  ;;  %v4748_v63 = vld [vmem:[#allocation2 + $0xf] sm:$0x1]  ;;  %v4749_v20 = vld [vmem:[#allocation2 + $0x1f] sm:$0x1]  ;;  %v4552_v10 = vsel %vm665_vm6, %v4551_v37, %v4550_v41  ;;  %v4569_v9 = vrot.slane %v4486_v27, 1 }
 0x17b   : > { %v4750_v3 = vld [vmem:[#allocation2 + $0x2f] sm:$0x1]  ;;  %5473 = vmatpush3.msk.msra.mxu1 %vm729_vm9, %v4327_v16  ;;  %v4562_v58 = vsel %vm659_vm4, %v4561_v34, %v4560_v11  ;;  %v4751_v23 = vld [vmem:[#allocation2 + $0x3f] sm:$0x1]  ;;  %v4554_v22 = vsel %vm668_vm7, %v4553_v56, %v4552_v10  ;;  %v4820_v45 = vrot.slane %v4749_v20, 7 }
 0x17c   : > { %v4752_v44 = vld [vmem:[#allocation2 + $0x4f] sm:$0x1]  ;;  %5475 = vmatmul.mubr.msk.f32.vlgmr.msra.gmra.mrb[12].mxu1 %vm725_vm10, %v6986_v54  ;;  %5593 = vmatprep.subr.bf16.mxu1 %v7807_v36  ;;  %v4564_v49 = vsel %vm662_vm5, %v4563_v17, %v4562_v58  ;;  %v4753_v15 = vld [vmem:[#allocation2 + $0x5f] sm:$0x1]  ;;  %v4556_v28 = vsel %vm671_vm8, %v4555_v8, %v4554_v22  ;;  %v4822_v59 = vrot.slane %v4750_v3, 6  ;;  %v4824_v43 = vrot.slane %v4751_v23, 5 }
 0x17d   : > { %v4754_v50 = vld [vmem:[#allocation2 + $0x6f] sm:$0x1]  ;;  %v4755_v52 = vld [vmem:[#allocation2 + $0x7f] sm:$0x1]  ;;  %v4566_v57 = vsel %vm665_vm6, %v4565_v61, %v4564_v49  ;;  %5500 = vmatprep.mubr.msk.f32.mxu1 %vm5750_vm1, %v7821_v55  ;;  %v4826_v51 = vrot.slane %v4752_v44, 4  ;;  %v4821_v7 = vsel %vm653_vm2, %v4820_v45, %v4748_v63  ;;  %v4828_v14 = vrot.slane %v4753_v15, 3 }
 0x17e   : > { %v4757_v6 = vld [vmem:[#allocation2 + $0x9f] sm:$0x1]  ;;  %v4758_v31 = vld [vmem:[#allocation2 + $0xaf] sm:$0x1]  ;;  %v4568_v54 = vsel %vm668_vm7, %v4567_v42, %v4566_v57  ;;  %v4830_v39 = vrot.slane %v4754_v50, 2  ;;  %v4823_v19 = vsel %vm656_vm3, %v4822_v59, %v4821_v7  ;;  %v4832_v12 = vrot.slane %v4755_v52, 1 }
 0x17f   : > { %v4759_v1 = vld [vmem:[#allocation2 + $0xbf] sm:$0x1]  ;;  %v4760_v25 = vld [vmem:[#allocation2 + $0xcf] sm:$0x1]  ;;  %v4570_v40 = vsel %vm671_vm8, %v4569_v9, %v4568_v54  ;;  %v4834_v29 = vrot.slane %v4757_v6, 7  ;;  %v4825_v4 = vsel %vm659_vm4, %v4824_v43, %v4823_v19  ;;  %v4836_v0 = vrot.slane %v4758_v31, 6 }
 0x180   : > { %v4756_v2 = vld [vmem:[#allocation2 + $0x8f] sm:$0x1]  ;;  %v4761_v48 = vld [vmem:[#allocation2 + $0xdf] sm:$0x1]  ;;  %v5588_v47 = vpack.c.bf16 %v4570_v40, %v4556_v28  ;;  %v4838_v35 = vrot.slane %v4759_v1, 5  ;;  %v4840_v62 = vrot.slane %v4760_v25, 4  ;;  %v4827_v38 = vsel %vm662_vm5, %v4826_v51, %v4825_v4 }
 0x181   : > { %v4762_v53 = vld [vmem:[#allocation2 + $0xef] sm:$0x1]  ;;  %v4763_v5 = vld [vmem:[#allocation2 + $0xff] sm:$0x1]  ;;  %v4488_v60 = vld [vmem:[#allocation2 + $0x11e] sm:$0x1]  ;;  %v4835_v30 = vsel %vm653_vm2, %v4834_v29, %v4756_v2  ;;  %v4829_v56 = vsel %vm665_vm6, %v4828_v14, %v4827_v38 }
 0x182   : > { %5589 = vmatpush3.bf16.msra.mxu0 %v5588_v47  ;;  %v4842_v13 = vrot.slane %v4761_v48, 3  ;;  %v4487_v32 = vld [vmem:[#allocation2 + $0x10e] sm:$0x1]  ;;  %v4490_v37 = vld [vmem:[#allocation2 + $0x13e] sm:$0x1]  ;;  %v4837_v26 = vsel %vm656_vm3, %v4836_v0, %v4835_v30  ;;  %v4844_v27 = vrot.slane %v4762_v53, 2  ;;  %v4831_v17 = vsel %vm668_vm7, %v4830_v39, %v4829_v56 }
 0x183   : > { %v4489_v21 = vld [vmem:[#allocation2 + $0x12e] sm:$0x1]  ;;  %v4846_v24 = vrot.slane %v4763_v5, 1  ;;  %5590 = vmatprep.subr.bf16.mxu0 %v7807_v36  ;;  %v4492_v34 = vld [vmem:[#allocation2 + $0x15e] sm:$0x1]  ;;  %v4839_v18 = vsel %vm659_vm4, %v4838_v35, %v4837_v26  ;;  %v4833_v16 = vsel %vm671_vm8, %v4832_v12, %v4831_v17  ;;  %v4571_v20 = vrot.slane %v4488_v60, 7 }
 0x184   : > { %v4491_v33 = vld [vmem:[#allocation2 + $0x14e] sm:$0x1]  ;;  %v4494_v46 = vld [vmem:[#allocation2 + $0x17e] sm:$0x1]  ;;  %v4841_v41 = vsel %vm662_vm5, %v4840_v62, %v4839_v18  ;;  %v4573_v3 = vrot.slane %v4489_v21, 6  ;;  %v4575_v9 = vrot.slane %v4490_v37, 5 }
 0x185   : > { %v4493_v8 = vld [vmem:[#allocation2 + $0x16e] sm:$0x1]  ;;  %v4496_v61 = vld [vmem:[#allocation2 + $0x19e] sm:$0x1]  ;;  %v4843_v10 = vsel %vm665_vm6, %v4842_v13, %v4841_v41  ;;  %v4577_v23 = vrot.slane %v4491_v33, 4  ;;  %v4579_v44 = vrot.slane %v4492_v34, 3  ;;  %v4572_v50 = vsel %vm653_vm2, %v4571_v20, %v4487_v32 }
 0x186   : > { %v4495_v11 = vld [vmem:[#allocation2 + $0x18e] sm:$0x1]  ;;  %v4498_v63 = vld [vmem:[#allocation2 + $0x1be] sm:$0x1]  ;;  %v4845_v22 = vsel %vm668_vm7, %v4844_v27, %v4843_v10  ;;  %v4581_v52 = vrot.slane %v4493_v8, 2  ;;  %v4583_v28 = vrot.slane %v4494_v46, 1  ;;  %v4574_v31 = vsel %vm656_vm3, %v4573_v3, %v4572_v50 }
 0x187   : > { %v4497_v42 = vld [vmem:[#allocation2 + $0x1ae] sm:$0x1]  ;;  %v4500_v49 = vld [vmem:[#allocation2 + $0x1de] sm:$0x1]  ;;  %v4847_v57 = vsel %vm671_vm8, %v4846_v24, %v4845_v22  ;;  %v4585_v45 = vrot.slane %v4496_v61, 7  ;;  %v4576_v25 = vsel %vm659_vm4, %v4575_v9, %v4574_v31  ;;  %v4589_v43 = vrot.slane %v4498_v63, 5 }
 0x188   : > { %v4499_v58 = vld [vmem:[#allocation2 + $0x1ce] sm:$0x1]  ;;  %v4502_v6 = vld [vmem:[#allocation2 + $0x1fe] sm:$0x1]  ;;  %v4587_v59 = vrot.slane %v4497_v42, 6  ;;  %v5594_v1 = vpack.c.bf16 %v4847_v57, %v4833_v16  ;;  %v4578_v48 = vsel %vm662_vm5, %v4577_v23, %v4576_v25  ;;  %v4593_v14 = vrot.slane %v4500_v49, 3 }
 0x189   : > { %v4501_v15 = vld [vmem:[#allocation2 + $0x1ee] sm:$0x1]  ;;  %v4765_v54 = vld [vmem:[#allocation2 + $0x11f] sm:$0x1]  ;;  %v4591_v51 = vrot.slane %v4499_v58, 4  ;;  %v4586_v7 = vsel %vm653_vm2, %v4585_v45, %v4495_v11  ;;  %v4580_v53 = vsel %vm665_vm6, %v4579_v44, %v4578_v48  ;;  %v4597_v62 = vrot.slane %v4502_v6, 1 }
 0x18a   : > { %v4764_v40 = vld [vmem:[#allocation2 + $0x10f] sm:$0x1]  ;;  %v4767_v39 = vld [vmem:[#allocation2 + $0x13f] sm:$0x1]  ;;  %5595 = vmatpush3.bf16.msra.mxu1 %v5594_v1  ;;  %v4588_v5 = vsel %vm656_vm3, %v4587_v59, %v4586_v7  ;;  %v4595_v19 = vrot.slane %v4501_v15, 2  ;;  %v4848_v4 = vrot.slane %v4765_v54, 7  ;;  %v4582_v0 = vsel %vm668_vm7, %v4581_v52, %v4580_v53 }
 0x18b   : > { %v4766_v2 = vld [vmem:[#allocation2 + $0x12f] sm:$0x1]  ;;  %v4769_v12 = vld [vmem:[#allocation2 + $0x15f] sm:$0x1]  ;;  %5596 = vmatprep.subr.bf16.mxu1 %v7807_v36  ;;  %v4590_v35 = vsel %vm659_vm4, %v4589_v43, %v4588_v5  ;;  %v4584_v30 = vsel %vm671_vm8, %v4583_v28, %v4582_v0  ;;  %v4852_v24 = vrot.slane %v4767_v39, 5  ;;  %v574_v48 = vld [vmem:[%s7704_s2] sm:$0xff] }
 0x18c   : > { %v4768_v47 = vld [vmem:[#allocation2 + $0x14f] sm:$0x1]  ;;  %v4771_v60 = vld [vmem:[#allocation2 + $0x17f] sm:$0x1]  ;;  %v4592_v13 = vsel %vm662_vm5, %v4591_v51, %v4590_v35  ;;  %v4849_v56 = vsel %vm653_vm2, %v4848_v4, %v4764_v40  ;;  %v4850_v26 = vrot.slane %v4766_v2, 6  ;;  %v4856_v34 = vrot.slane %v4769_v12, 3 }
 0x18d   : > { %v4770_v29 = vld [vmem:[#allocation2 + $0x16f] sm:$0x1]  ;;  %v4773_v38 = vld [vmem:[#allocation2 + $0x19f] sm:$0x1]  ;;  %v4594_v27 = vsel %vm665_vm6, %v4593_v14, %v4592_v13  ;;  %v4854_v33 = vrot.slane %v4768_v47, 4  ;;  %v4860_v16 = vrot.slane %v4771_v60, 1 }
 0x18e   : > { %v4772_v32 = vld [vmem:[#allocation2 + $0x18f] sm:$0x1]  ;;  %v4775_v37 = vld [vmem:[#allocation2 + $0x1bf] sm:$0x1]  ;;  %v4596_v17 = vsel %vm668_vm7, %v4595_v19, %v4594_v27  ;;  %v4851_v46 = vsel %vm656_vm3, %v4850_v26, %v4849_v56  ;;  %v4858_v61 = vrot.slane %v4770_v29, 2  ;;  %v4862_v63 = vrot.slane %v4773_v38, 7 }
 0x18f   : > { %v4774_v21 = vld [vmem:[#allocation2 + $0x1af] sm:$0x1]  ;;  %v4777_v18 = vld [vmem:[#allocation2 + $0x1df] sm:$0x1]  ;;  %v4598_v41 = vsel %vm671_vm8, %v4597_v62, %v4596_v17  ;;  %v4853_v42 = vsel %vm659_vm4, %v4852_v24, %v4851_v46  ;;  %v4504_v3 = vld [vmem:[#allocation2 + $0x21e] sm:$0x1] }
 0x190   : > { %v4776_v36 = vld [vmem:[#allocation2 + $0x1cf] sm:$0x1]  ;;  %v4779_v11 = vld [vmem:[#allocation2 + $0x1ff] sm:$0x1]  ;;  %v4864_v20 = vrot.slane %v4774_v21, 6  ;;  %v5591_v10 = vpack.c.bf16 %v4598_v41, %v4584_v30  ;;  %v4855_v58 = vsel %vm662_vm5, %v4854_v33, %v4853_v42  ;;  %v4866_v9 = vrot.slane %v4775_v37, 5 }
 0x191   : > { %v4778_v8 = vld [vmem:[#allocation2 + $0x1ef] sm:$0x1]  ;;  %v4868_v23 = vrot.slane %v4776_v36, 4  ;;  %v4505_v44 = vld [vmem:[#allocation2 + $0x22e] sm:$0x1]  ;;  %v4857_v49 = vsel %vm665_vm6, %v4856_v34, %v4855_v58  ;;  %v4863_v15 = vsel %vm653_vm2, %v4862_v63, %v4772_v32  ;;  %v4870_v50 = vrot.slane %v4777_v18, 3 }
 0x192   : > { %v4506_v22 = vld [vmem:[#allocation2 + $0x23e] sm:$0x1]  ;;  %v4503_v52 = vld [vmem:[#allocation2 + $0x20e] sm:$0x1]  ;;  %5592 = vmatpush3.bf16.msra.mxu0 %v5591_v10  ;;  %v4859_v28 = vsel %vm668_vm7, %v4858_v61, %v4857_v49  ;;  %v4865_v57 = vsel %vm656_vm3, %v4864_v20, %v4863_v15  ;;  %v4872_v6 = vrot.slane %v4778_v8, 2  ;;  %v4599_v31 = vrot.slane %v4504_v3, 7 }
 0x193   : > { %v4781_v45 = vld [vmem:[#allocation2 + $0x21f] sm:$0x1]  ;;  %v4867_v59 = vsel %vm659_vm4, %v4866_v9, %v4865_v57  ;;  %v4874_v54 = vrot.slane %v4779_v11, 1  ;;  %5485 = vmatprep.subr.mxu0 %v7821_v55  ;;  %v4601_v1 = vrot.slane %v4505_v44, 6  ;;  %v4603_v25 = vrot.slane %v4506_v22, 5  ;;  %v5666_v62 = vld [vmem:[%s7703_s1] sm:$0xff] }
 0x194   : > { %v4861_v43 = vsel %vm671_vm8, %v4860_v16, %v4859_v28  ;;  %v4869_v51 = vsel %vm662_vm5, %v4868_v23, %v4867_v59  ;;  %v4600_v40 = vsel %vm653_vm2, %v4599_v31, %v4503_v52  ;;  %v4780_v2 = vld [vmem:[#allocation2 + $0x20f] sm:$0x1]  ;;  %v4876_v47 = vrot.slane %v4781_v45, 7  ;;  %v4783_v19 = vld [vmem:[#allocation2 + $0x23f] sm:$0x1] }
 0x195   : > { %v4871_v7 = vsel %vm665_vm6, %v4870_v50, %v4869_v51  ;;  %v4602_v14 = vsel %vm656_vm3, %v4601_v1, %v4600_v40  ;;  %v4782_v39 = vld [vmem:[#allocation2 + $0x22f] sm:$0x1]  ;;  %v5752_v12 = vmov 0   ;;  %v4880_v60 = vrot.slane %v4783_v19, 5 }
 0x196   : > { %v4873_v53 = vsel %vm668_vm7, %v4872_v6, %v4871_v7  ;;  %v4604_v5 = vsel %vm659_vm4, %v4603_v25, %v4602_v14  ;;  %5664 = vset.pattern.permute.xlu0 %v5752_v12  ;;  %v4877_v4 = vsel %vm653_vm2, %v4876_v47, %v4780_v2  ;;  %v4878_v35 = vrot.slane %v4782_v39, 6 }
 0x197   : > { %v4875_v29 = vsel %vm671_vm8, %v4874_v54, %v4873_v53  ;;  %5486 = vmatpush3.msk.msra.mxu0 %vm729_vm9, %v4604_v5  ;;  %613 = vperm.xlu0 %5664, %v574_v48   ;;  %v5753_v42 = vmov 1966171168   ;;  %v808_v20 = vlaneseq }
 0x198   : > { %v5597_v0 = vpack.c.bf16 %v4875_v29, %v4861_v43  ;;  %5488 = vmatmul.mubr.msk.f32.vlgmr.msra.gmra.mrb[14].mxu0 %vm725_vm10, %v5666_v62  ;;  %v4879_v38 = vsel %vm656_vm3, %v4878_v35, %v4877_v4  ;;  %v806_v63 = vunpack.c.l.s4 %v5753_v42 }
 0x199   : > { %v4881_v30 = vsel %vm659_vm4, %v4880_v60, %v4879_v38  ;;  %v809_v10 = vshrl.u32 %v808_v20, 7 }
 0x19a   : > { %5598 = vmatpush3.bf16.msra.mxu1 %v5597_v0  ;;  %v807_v3 = vunpack.c.0.s8 %v806_v63 }
 0x19b   : > { %5498 = vmatprep.subr.mxu1 %v7821_v55 }
 0x19c   : > { %v7235_v58 = vsub.s32 %v807_v3, %v809_v10 }
 0x19e   : > { %5499 = vmatpush3.msk.msra.mxu1 %vm729_vm9, %v4881_v30 }
 0x19f   : > { %5501 = vmatmul.mubr.msk.f32.vlgmr.msra.gmra.mrb[14].mxu1 %vm725_vm10, %v5666_v62 }
 0x1a5   : > { %v798_v13 = vpop.f32.mrb[0].mxu0 }
 0x1a6   : > { %v5307_v21 = vpop.f32.mrb[1].mxu0 }
 0x1a7   : > { %v1076_v32 = vpop.f32.mrb[0].mxu1 }
 0x1a8   : > { %v5320_v37 = vpop.f32.mrb[1].mxu1 }
 0x1b0   : > { %v1353_v56 = vpop.f32.mrb[2].mxu0 }
 0x1b1   : > { %v5333_v26 = vpop.f32.mrb[3].mxu0 }
 0x1b4   : > { %v1630_v27 = vpop.f32.mrb[2].mxu1 }
 0x1b5   : > { %v5346_v36 = vpop.f32.mrb[3].mxu1 }
 0x1cc   : > { %v1907_v24 = vpop.f32.mrb[4].mxu0 }
 0x1cd   : > { %v5359_v33 = vpop.f32.mrb[5].mxu0 }
 0x1d0   : > { %v2184_v34 = vpop.f32.mrb[4].mxu1 }
 0x1d1   : > { %v5372_v17 = vpop.f32.mrb[5].mxu1 }
 0x1e7   : > { %v2461_v18 = vpop.f32.mrb[6].mxu0 }
 0x1e8   : > { %v5385_v55 = vpop.f32.mrb[7].mxu0 }
 0x1eb   : > { %v2738_v8 = vpop.f32.mrb[6].mxu1 }
 0x1ec   : > { %v5398_v46 = vpop.f32.mrb[7].mxu1 }
 0x204   : > { %v7231_v61 = vpop.f32.mrb[8].mxu0 }
 0x205   : > { %v5411_v16 = vpop.f32.mrb[9].mxu0 }
 0x20a   : > { %v7233_v41 = vpop.f32.mrb[8].mxu1 }
 0x20b   : > { %v5424_v11 = vpop.f32.mrb[9].mxu1 }
 0x216   : > { %v7237_v9 = vpop.permute.xlu0 %613 }
 0x217   : > { %v799_v23 = vadd.f32 %v798_v13, %v7237_v9  ;;  %v1077_v44 = vadd.f32 %v1076_v32, %v7237_v9  ;;  %v1354_v22 = vadd.f32 %v1353_v56, %v7237_v9  ;;  %v1631_v49 = vadd.f32 %v1630_v27, %v7237_v9 }
 0x218   : > { %v1908_v15 = vadd.f32 %v1907_v24, %v7237_v9  ;;  %v2185_v50 = vadd.f32 %v2184_v34, %v7237_v9  ;;  %v2462_v52 = vadd.f32 %v2461_v18, %v7237_v9  ;;  %v2739_v28 = vadd.f32 %v2738_v8, %v7237_v9 }
 0x219   : > { %v802_v57 = vmax.f32 %v799_v23, 0.0  ;;  %v1080_v6 = vmax.f32 %v1077_v44, 0.0  ;;  %v1357_v31 = vmax.f32 %v1354_v22, 0.0  ;;  %v1634_v45 = vmax.f32 %v1631_v49, 0.0 }
 0x21a   : > { %v7250_v59 = vmax.f32 %v1908_v15, 0.0  ;;  %v7252_v54 = vmax.f32 %v2185_v50, 0.0  ;;  %v7254_v1 = vmax.f32 %v2462_v52, 0.0  ;;  %v7256_v25 = vmax.f32 %v2739_v28, 0.0 }
 0x21b   : > { %v804_v43 = vcombine.high %v802_v57, %v802_v57  ;;  %v811_v51 = vrot.slane %v802_v57, %v7235_v58  ;;  %v1082_v40 = vcombine.high %v1080_v6, %v1080_v6  ;;  %v1089_v2 = vrot.slane %v1080_v6, %v7235_v58 }
 0x21c   : > { %v1359_v48 = vcombine.high %v1357_v31, %v1357_v31  ;;  %v1366_v7 = vrot.slane %v1357_v31, %v7235_v58  ;;  %v1636_v14 = vcombine.high %v1634_v45, %v1634_v45  ;;  %v7262_v39 = vrot.slane %v1634_v45, %v7235_v58 }
 0x21d   : > { %v818_v47 = vrot.slane %v804_v43, %v7235_v58  ;;  %v819_v53 = vcombine.high %v811_v51, %v811_v51  ;;  %v827_v5 = vrot.slane %v811_v51, %v7235_v58  ;;  %v1096_v19 = vrot.slane %v1082_v40, %v7235_v58 }
 0x21e   : > { %v1097_v12 = vcombine.high %v1089_v2, %v1089_v2  ;;  %v1105_v29 = vrot.slane %v1089_v2, %v7235_v58  ;;  %v1373_v4 = vrot.slane %v1359_v48, %v7235_v58  ;;  %v1374_v0 = vcombine.high %v1366_v7, %v1366_v7 }
 0x21f   : > { %v820_v35 = vcombine.high %v818_v47, %v818_v47  ;;  %v834_v62 = vrot.slane %v818_v47, %v7235_v58  ;;  %v841_v60 = vrot.slane %v819_v53, %v7235_v58  ;;  %v849_v38 = vcombine.high %v827_v5, %v827_v5  ;;  %862 = vst.msk [vmem:[%s7271_s26] sm:$0x1] %vm861_vm11, %v827_v5 }
 0x220   : > { %v1098_v30 = vcombine.high %v1096_v19, %v1096_v19  ;;  %v1112_v13 = vrot.slane %v1096_v19, %v7235_v58  ;;  %v1119_v32 = vrot.slane %v1097_v12, %v7235_v58  ;;  %v1127_v21 = vcombine.high %v1105_v29, %v1105_v29  ;;  %1139 = vst.msk [vmem:[%s7271_s26 + $0x1] sm:$0x1] %vm861_vm11, %v1105_v29 }
 0x221   : > { %v848_v37 = vrot.slane %v820_v35, %v7235_v58  ;;  %v850_v56 = vcombine.high %v834_v62, %v834_v62  ;;  %v851_v26 = vcombine.high %v841_v60, %v841_v60  ;;  %863 = vst.msk [vmem:[%s7271_s26 + $0x10] sm:$0x1] %vm861_vm11, %v841_v60  ;;  %864 = vst.msk [vmem:[%s7271_s26 + $0x20] sm:$0x1] %vm861_vm11, %v849_v38 }
 0x222   : > { %866 = vst.msk [vmem:[%s7271_s26 + $0x40] sm:$0x1] %vm861_vm11, %v834_v62  ;;  %v1375_v27 = vcombine.high %v1373_v4, %v1373_v4  ;;  %v1126_v36 = vrot.slane %v1098_v30, %v7235_v58  ;;  %v1128_v24 = vcombine.high %v1112_v13, %v1112_v13  ;;  %v1129_v33 = vcombine.high %v1119_v32, %v1119_v32 }
 0x223   : > { %1140 = vst.msk [vmem:[%s7271_s26 + $0x11] sm:$0x1] %vm861_vm11, %v1119_v32  ;;  %1141 = vst.msk [vmem:[%s7271_s26 + $0x21] sm:$0x1] %vm861_vm11, %v1127_v21  ;;  %v1382_v34 = vrot.slane %v1366_v7, %v7235_v58  ;;  %v852_v17 = vcombine.high %v848_v37, %v848_v37  ;;  %v1389_v18 = vrot.slane %v1373_v4, %v7235_v58 }
 0x224   : > { %1143 = vst.msk [vmem:[%s7271_s26 + $0x41] sm:$0x1] %vm861_vm11, %v1112_v13  ;;  %865 = vst.msk [vmem:[%s7271_s26 + $0x30] sm:$0x1] %vm861_vm11, %v851_v26  ;;  %v1396_v55 = vrot.slane %v1374_v0, %v7235_v58  ;;  %v1403_v8 = vrot.slane %v1375_v27, %v7235_v58  ;;  %v1130_v16 = vcombine.high %v1126_v36, %v1126_v36 }
 0x225   : > { %867 = vst.msk [vmem:[%s7271_s26 + $0x50] sm:$0x1] %vm861_vm11, %v848_v37  ;;  %868 = vst.msk [vmem:[%s7271_s26 + $0x60] sm:$0x1] %vm861_vm11, %v850_v56  ;;  %v1404_v11 = vcombine.high %v1382_v34, %v1382_v34  ;;  %v1650_v42 = vrot.slane %v1636_v14, %v7235_v58  ;;  %v1651_v63 = vcombine.high %v7262_v39, %v7262_v39 }
 0x226   : > { %v7303_v46 = vpop.f32.mrb[10].mxu0  ;;  %1142 = vst.msk [vmem:[%s7271_s26 + $0x31] sm:$0x1] %vm861_vm11, %v1129_v33  ;;  %1144 = vst.msk [vmem:[%s7271_s26 + $0x51] sm:$0x1] %vm861_vm11, %v1126_v36  ;;  %v1405_v3 = vcombine.high %v1389_v18, %v1389_v18  ;;  %v1406_v10 = vcombine.high %v1396_v55, %v1396_v55  ;;  %v1407_v23 = vcombine.high %v1403_v8, %v1403_v8 }
 0x227   : > { %1145 = vst.msk [vmem:[%s7271_s26 + $0x61] sm:$0x1] %vm861_vm11, %v1128_v24  ;;  %1416 = vst.msk [vmem:[%s7271_s26 + $0x2] sm:$0x1] %vm861_vm11, %v1382_v34  ;;  %v5437_v20 = vpop.f32.mrb[11].mxu0  ;;  %v1659_v44 = vrot.slane %v7262_v39, %v7235_v58  ;;  %v1652_v22 = vcombine.high %v1650_v42, %v1650_v42  ;;  %v1666_v49 = vrot.slane %v1650_v42, %v7235_v58 }
 0x228   : > { %869 = vst.msk [vmem:[%s7271_s26 + $0x70] sm:$0x1] %vm861_vm11, %v852_v17  ;;  %1417 = vst.msk [vmem:[%s7271_s26 + $0x12] sm:$0x1] %vm861_vm11, %v1396_v55  ;;  %v1673_v15 = vrot.slane %v1651_v63, %v7235_v58  ;;  %v1913_v50 = vcombine.high %v7250_v59, %v7250_v59  ;;  %v1920_v28 = vrot.slane %v7250_v59, %v7235_v58 }
 0x229   : > { %1420 = vst.msk [vmem:[%s7271_s26 + $0x42] sm:$0x1] %vm861_vm11, %v1389_v18  ;;  %1421 = vst.msk [vmem:[%s7271_s26 + $0x52] sm:$0x1] %vm861_vm11, %v1403_v8  ;;  %v1681_v52 = vcombine.high %v1659_v44, %v1659_v44  ;;  %v2190_v57 = vcombine.high %v7252_v54, %v7252_v54  ;;  %v2197_v6 = vrot.slane %v7252_v54, %v7235_v58 }
 0x22a   : > { %1146 = vst.msk [vmem:[%s7271_s26 + $0x71] sm:$0x1] %vm861_vm11, %v1130_v16  ;;  %1418 = vst.msk [vmem:[%s7271_s26 + $0x22] sm:$0x1] %vm861_vm11, %v1404_v11  ;;  %v1680_v31 = vrot.slane %v1652_v22, %v7235_v58  ;;  %v1682_v45 = vcombine.high %v1666_v49, %v1666_v49  ;;  %v1683_v43 = vcombine.high %v1673_v15, %v1673_v15 }
 0x22b   : > { %1419 = vst.msk [vmem:[%s7271_s26 + $0x32] sm:$0x1] %vm861_vm11, %v1406_v10  ;;  %1422 = vst.msk [vmem:[%s7271_s26 + $0x62] sm:$0x1] %vm861_vm11, %v1405_v3  ;;  %v1927_v51 = vrot.slane %v1913_v50, %v7235_v58  ;;  %v1928_v59 = vcombine.high %v1920_v28, %v1920_v28  ;;  %v1936_v40 = vrot.slane %v1920_v28, %v7235_v58 }
 0x22c   : > { %1423 = vst.msk [vmem:[%s7271_s26 + $0x72] sm:$0x1] %vm861_vm11, %v1407_v23  ;;  %1693 = vst.msk [vmem:[%s7271_s26 + $0x3] sm:$0x1] %vm861_vm11, %v1659_v44  ;;  %v2204_v2 = vrot.slane %v2190_v57, %v7235_v58  ;;  %v2205_v54 = vcombine.high %v2197_v6, %v2197_v6  ;;  %v1684_v48 = vcombine.high %v1680_v31, %v1680_v31  ;;  %v7366_v47 = vpop.f32.mrb[10].mxu1 }
 0x22d   : > { %1694 = vst.msk [vmem:[%s7271_s26 + $0x13] sm:$0x1] %vm861_vm11, %v1673_v15  ;;  %1697 = vst.msk [vmem:[%s7271_s26 + $0x43] sm:$0x1] %vm861_vm11, %v1666_v49  ;;  %v1929_v7 = vcombine.high %v1927_v51, %v1927_v51  ;;  %v1943_v14 = vrot.slane %v1927_v51, %v7235_v58  ;;  %v2213_v39 = vrot.slane %v2197_v6, %v7235_v58  ;;  %v5450_v29 = vpop.f32.mrb[11].mxu1 }
 0x22e   : > { %1695 = vst.msk [vmem:[%s7271_s26 + $0x23] sm:$0x1] %vm861_vm11, %v1681_v52  ;;  %1696 = vst.msk [vmem:[%s7271_s26 + $0x33] sm:$0x1] %vm861_vm11, %v1683_v43  ;;  %v1950_v53 = vrot.slane %v1928_v59, %v7235_v58  ;;  %v1958_v5 = vcombine.high %v1936_v40, %v1936_v40  ;;  %v2206_v19 = vcombine.high %v2204_v2, %v2204_v2 }
 0x22f   : > { %1698 = vst.msk [vmem:[%s7271_s26 + $0x53] sm:$0x1] %vm861_vm11, %v1680_v31  ;;  %1699 = vst.msk [vmem:[%s7271_s26 + $0x63] sm:$0x1] %vm861_vm11, %v1682_v45  ;;  %v2220_v12 = vrot.slane %v2204_v2, %v7235_v58  ;;  %v1957_v4 = vrot.slane %v1929_v7, %v7235_v58  ;;  %v1959_v0 = vcombine.high %v1943_v14, %v1943_v14 }
 0x230   : > { %1970 = vst.msk [vmem:[%s7271_s26 + $0x4] sm:$0x1] %vm861_vm11, %v1936_v40  ;;  %1700 = vst.msk [vmem:[%s7271_s26 + $0x73] sm:$0x1] %vm861_vm11, %v1684_v48  ;;  %v2227_v35 = vrot.slane %v2205_v54, %v7235_v58  ;;  %v2235_v62 = vcombine.high %v2213_v39, %v2213_v39  ;;  %v1960_v60 = vcombine.high %v1950_v53, %v1950_v53 }
 0x231   : > { %1974 = vst.msk [vmem:[%s7271_s26 + $0x44] sm:$0x1] %vm861_vm11, %v1943_v14  ;;  %2247 = vst.msk [vmem:[%s7271_s26 + $0x5] sm:$0x1] %vm861_vm11, %v2213_v39  ;;  %v2234_v38 = vrot.slane %v2206_v19, %v7235_v58  ;;  %v2236_v30 = vcombine.high %v2220_v12, %v2220_v12  ;;  %v2467_v13 = vcombine.high %v7254_v1, %v7254_v1 }
 0x232   : > { %1971 = vst.msk [vmem:[%s7271_s26 + $0x14] sm:$0x1] %vm861_vm11, %v1950_v53  ;;  %1972 = vst.msk [vmem:[%s7271_s26 + $0x24] sm:$0x1] %vm861_vm11, %v1958_v5  ;;  %v1961_v32 = vcombine.high %v1957_v4, %v1957_v4  ;;  %v2237_v21 = vcombine.high %v2227_v35, %v2227_v35  ;;  %v2474_v37 = vrot.slane %v7254_v1, %v7235_v58 }
 0x233   : > { %2251 = vst.msk [vmem:[%s7271_s26 + $0x45] sm:$0x1] %vm861_vm11, %v2220_v12  ;;  %1975 = vst.msk [vmem:[%s7271_s26 + $0x54] sm:$0x1] %vm861_vm11, %v1957_v4  ;;  %v2744_v56 = vcombine.high %v7256_v25, %v7256_v25  ;;  %v2238_v26 = vcombine.high %v2234_v38, %v2234_v38  ;;  %v2481_v27 = vrot.slane %v2467_v13, %v7235_v58 }
 0x234   : > { %1976 = vst.msk [vmem:[%s7271_s26 + $0x64] sm:$0x1] %vm861_vm11, %v1959_v0  ;;  %2248 = vst.msk [vmem:[%s7271_s26 + $0x15] sm:$0x1] %vm861_vm11, %v2227_v35  ;;  %v2751_v36 = vrot.slane %v7256_v25, %v7235_v58  ;;  %v3016_v24 = vadd.f32 %v7231_v61, %v7237_v9  ;;  %v2482_v1 = vcombine.high %v2474_v37, %v2474_v37 }
 0x235   : > { %2249 = vst.msk [vmem:[%s7271_s26 + $0x25] sm:$0x1] %vm861_vm11, %v2235_v62  ;;  %1973 = vst.msk [vmem:[%s7271_s26 + $0x34] sm:$0x1] %vm861_vm11, %v1960_v60  ;;  %v2490_v33 = vrot.slane %v2474_v37, %v7235_v58  ;;  %v2758_v34 = vrot.slane %v2744_v56, %v7235_v58  ;;  %v3293_v17 = vadd.f32 %v7233_v41, %v7237_v9 }
 0x236   : > { %2252 = vst.msk [vmem:[%s7271_s26 + $0x55] sm:$0x1] %vm861_vm11, %v2234_v38  ;;  %2253 = vst.msk [vmem:[%s7271_s26 + $0x65] sm:$0x1] %vm861_vm11, %v2236_v30  ;;  %v2483_v25 = vcombine.high %v2481_v27, %v2481_v27  ;;  %v2497_v61 = vrot.slane %v2481_v27, %v7235_v58  ;;  %v2759_v18 = vcombine.high %v2751_v36, %v2751_v36  ;;  %v3019_v22 = vmax.f32 %v3016_v24, 0.0 }
 0x237   : > { %1977 = vst.msk [vmem:[%s7271_s26 + $0x74] sm:$0x1] %vm861_vm11, %v1961_v32  ;;  %2250 = vst.msk [vmem:[%s7271_s26 + $0x35] sm:$0x1] %vm861_vm11, %v2237_v21  ;;  %v2767_v55 = vrot.slane %v2751_v36, %v7235_v58  ;;  %v2504_v8 = vrot.slane %v2482_v1, %v7235_v58  ;;  %v2512_v16 = vcombine.high %v2490_v33, %v2490_v33  ;;  %v3296_v50 = vmax.f32 %v3293_v17, 0.0 }
 0x238   : > { %2254 = vst.msk [vmem:[%s7271_s26 + $0x75] sm:$0x1] %vm861_vm11, %v2238_v26  ;;  %2524 = vst.msk [vmem:[%s7271_s26 + $0x6] sm:$0x1] %vm861_vm11, %v2490_v33  ;;  %v2760_v11 = vcombine.high %v2758_v34, %v2758_v34  ;;  %v2774_v41 = vrot.slane %v2758_v34, %v7235_v58  ;;  %v2511_v42 = vrot.slane %v2483_v25, %v7235_v58 }
 0x239   : > { %v2513_v63 = vcombine.high %v2497_v61, %v2497_v61  ;;  %2528 = vst.msk [vmem:[%s7271_s26 + $0x46] sm:$0x1] %vm861_vm11, %v2497_v61  ;;  %v2781_v20 = vrot.slane %v2759_v18, %v7235_v58  ;;  %v2789_v3 = vcombine.high %v2767_v55, %v2767_v55  ;;  %2801 = vst.msk [vmem:[%s7271_s26 + $0x7] sm:$0x1] %vm861_vm11, %v2767_v55 }
 0x23a   : > { %v2514_v10 = vcombine.high %v2504_v8, %v2504_v8  ;;  %2525 = vst.msk [vmem:[%s7271_s26 + $0x16] sm:$0x1] %vm861_vm11, %v2504_v8  ;;  %2526 = vst.msk [vmem:[%s7271_s26 + $0x26] sm:$0x1] %vm861_vm11, %v2512_v16  ;;  %v2788_v23 = vrot.slane %v2760_v11, %v7235_v58  ;;  %v2790_v44 = vcombine.high %v2774_v41, %v2774_v41 }
 0x23b   : > { %2805 = vst.msk [vmem:[%s7271_s26 + $0x47] sm:$0x1] %vm861_vm11, %v2774_v41  ;;  %v2515_v49 = vcombine.high %v2511_v42, %v2511_v42  ;;  %2529 = vst.msk [vmem:[%s7271_s26 + $0x56] sm:$0x1] %vm861_vm11, %v2511_v42  ;;  %v2791_v15 = vcombine.high %v2781_v20, %v2781_v20  ;;  %v3570_v52 = vadd.f32 %v7303_v46, %v7237_v9 }
 0x23c   : > { %2530 = vst.msk [vmem:[%s7271_s26 + $0x66] sm:$0x1] %vm861_vm11, %v2513_v63  ;;  %2802 = vst.msk [vmem:[%s7271_s26 + $0x17] sm:$0x1] %vm861_vm11, %v2781_v20  ;;  %v2792_v28 = vcombine.high %v2788_v23, %v2788_v23  ;;  %v3021_v57 = vcombine.high %v3019_v22, %v3019_v22  ;;  %v3028_v6 = vrot.slane %v3019_v22, %v7235_v58 }
 0x23d   : > { %2803 = vst.msk [vmem:[%s7271_s26 + $0x27] sm:$0x1] %vm861_vm11, %v2789_v3  ;;  %2527 = vst.msk [vmem:[%s7271_s26 + $0x36] sm:$0x1] %vm861_vm11, %v2514_v10  ;;  %v3847_v31 = vadd.f32 %v7366_v47, %v7237_v9  ;;  %v3298_v45 = vcombine.high %v3296_v50, %v3296_v50  ;;  %v3305_v46 = vrot.slane %v3296_v50, %v7235_v58  ;;  %v3573_v43 = vmax.f32 %v3570_v52, 0.0 }
 0x23e   : > { %2806 = vst.msk [vmem:[%s7271_s26 + $0x57] sm:$0x1] %vm861_vm11, %v2788_v23  ;;  %2807 = vst.msk [vmem:[%s7271_s26 + $0x67] sm:$0x1] %vm861_vm11, %v2790_v44  ;;  %v3035_v51 = vrot.slane %v3021_v57, %v7235_v58  ;;  %v3036_v59 = vcombine.high %v3028_v6, %v3028_v6  ;;  %v3044_v40 = vrot.slane %v3028_v6, %v7235_v58 }
 0x23f   : > { %2531 = vst.msk [vmem:[%s7271_s26 + $0x76] sm:$0x1] %vm861_vm11, %v2515_v49  ;;  %2804 = vst.msk [vmem:[%s7271_s26 + $0x37] sm:$0x1] %vm861_vm11, %v2791_v15  ;;  %v3850_v2 = vmax.f32 %v3847_v31, 0.0  ;;  %v3312_v54 = vrot.slane %v3298_v45, %v7235_v58  ;;  %v3313_v48 = vcombine.high %v3305_v46, %v3305_v46  ;;  %v3321_v7 = vrot.slane %v3305_v46, %v7235_v58 }
 0x240   : > { %2808 = vst.msk [vmem:[%s7271_s26 + $0x77] sm:$0x1] %vm861_vm11, %v2792_v28  ;;  %v3575_v14 = vcombine.high %v3573_v43, %v3573_v43  ;;  %v3037_v39 = vcombine.high %v3035_v51, %v3035_v51  ;;  %v3051_v47 = vrot.slane %v3035_v51, %v7235_v58  ;;  %v3058_v53 = vrot.slane %v3036_v59, %v7235_v58 }
 0x241   : > { %v3066_v5 = vcombine.high %v3044_v40, %v3044_v40  ;;  %3078 = vst.msk [vmem:[%s7271_s26 + $0x8] sm:$0x1] %vm861_vm11, %v3044_v40  ;;  %v3314_v19 = vcombine.high %v3312_v54, %v3312_v54  ;;  %v3328_v12 = vrot.slane %v3312_v54, %v7235_v58  ;;  %v3335_v29 = vrot.slane %v3313_v48, %v7235_v58 }
 0x242   : > { %v3343_v4 = vcombine.high %v3321_v7, %v3321_v7  ;;  %3355 = vst.msk [vmem:[%s7271_s26 + $0x9] sm:$0x1] %vm861_vm11, %v3321_v7  ;;  %v3065_v0 = vrot.slane %v3037_v39, %v7235_v58  ;;  %v3067_v35 = vcombine.high %v3051_v47, %v3051_v47  ;;  %v3068_v62 = vcombine.high %v3058_v53, %v3058_v53 }
 0x243   : > { %3079 = vst.msk [vmem:[%s7271_s26 + $0x18] sm:$0x1] %vm861_vm11, %v3058_v53  ;;  %3080 = vst.msk [vmem:[%s7271_s26 + $0x28] sm:$0x1] %vm861_vm11, %v3066_v5  ;;  %v3582_v60 = vrot.slane %v3573_v43, %v7235_v58  ;;  %v3342_v38 = vrot.slane %v3314_v19, %v7235_v58  ;;  %v3344_v30 = vcombine.high %v3328_v12, %v3328_v12 }
 0x244   : > { %3082 = vst.msk [vmem:[%s7271_s26 + $0x48] sm:$0x1] %vm861_vm11, %v3051_v47  ;;  %v3345_v13 = vcombine.high %v3335_v29, %v3335_v29  ;;  %3356 = vst.msk [vmem:[%s7271_s26 + $0x19] sm:$0x1] %vm861_vm11, %v3335_v29  ;;  %v3589_v32 = vrot.slane %v3575_v14, %v7235_v58  ;;  %v3069_v21 = vcombine.high %v3065_v0, %v3065_v0 }
 0x245   : > { %3357 = vst.msk [vmem:[%s7271_s26 + $0x29] sm:$0x1] %vm861_vm11, %v3343_v4  ;;  %3359 = vst.msk [vmem:[%s7271_s26 + $0x49] sm:$0x1] %vm861_vm11, %v3328_v12  ;;  %v3590_v37 = vcombine.high %v3582_v60, %v3582_v60  ;;  %v3598_v56 = vrot.slane %v3582_v60, %v7235_v58  ;;  %v3852_v26 = vcombine.high %v3850_v2, %v3850_v2 }
 0x246   : > { %3081 = vst.msk [vmem:[%s7271_s26 + $0x38] sm:$0x1] %vm861_vm11, %v3068_v62  ;;  %3083 = vst.msk [vmem:[%s7271_s26 + $0x58] sm:$0x1] %vm861_vm11, %v3065_v0  ;;  %v3346_v27 = vcombine.high %v3342_v38, %v3342_v38  ;;  %v3591_v36 = vcombine.high %v3589_v32, %v3589_v32  ;;  %v3605_v24 = vrot.slane %v3589_v32, %v7235_v58 }
 0x247   : > { %3084 = vst.msk [vmem:[%s7271_s26 + $0x68] sm:$0x1] %vm861_vm11, %v3067_v35  ;;  %3358 = vst.msk [vmem:[%s7271_s26 + $0x39] sm:$0x1] %vm861_vm11, %v3345_v13  ;;  %v3859_v1 = vrot.slane %v3850_v2, %v7235_v58  ;;  %v3612_v33 = vrot.slane %v3590_v37, %v7235_v58  ;;  %v3620_v34 = vcombine.high %v3598_v56, %v3598_v56 }
 0x248   : > { %3360 = vst.msk [vmem:[%s7271_s26 + $0x59] sm:$0x1] %vm861_vm11, %v3342_v38  ;;  %3361 = vst.msk [vmem:[%s7271_s26 + $0x69] sm:$0x1] %vm861_vm11, %v3344_v30  ;;  %v3866_v17 = vrot.slane %v3852_v26, %v7235_v58  ;;  %v3619_v25 = vrot.slane %v3591_v36, %v7235_v58  ;;  %v3621_v61 = vcombine.high %v3605_v24, %v3605_v24 }
 0x249   : > { %3085 = vst.msk [vmem:[%s7271_s26 + $0x78] sm:$0x1] %vm861_vm11, %v3069_v21  ;;  %3632 = vst.msk [vmem:[%s7271_s26 + $0xa] sm:$0x1] %vm861_vm11, %v3598_v56  ;;  %v3867_v18 = vcombine.high %v3859_v1, %v3859_v1  ;;  %v3875_v55 = vrot.slane %v3859_v1, %v7235_v58  ;;  %v3622_v8 = vcombine.high %v3612_v33, %v3612_v33  ;;  %v4123_v44 = vpop.f32.mrb[12].mxu0 }
 0x24a   : > { %3362 = vst.msk [vmem:[%s7271_s26 + $0x79] sm:$0x1] %vm861_vm11, %v3346_v27  ;;  %3636 = vst.msk [vmem:[%s7271_s26 + $0x4a] sm:$0x1] %vm861_vm11, %v3605_v24  ;;  %v3868_v16 = vcombine.high %v3866_v17, %v3866_v17  ;;  %v3882_v11 = vrot.slane %v3866_v17, %v7235_v58  ;;  %v3623_v41 = vcombine.high %v3619_v25, %v3619_v25  ;;  %v5463_v49 = vpop.f32.mrb[13].mxu0 }
 0x24b   : > { %3633 = vst.msk [vmem:[%s7271_s26 + $0x1a] sm:$0x1] %vm861_vm11, %v3612_v33  ;;  %3634 = vst.msk [vmem:[%s7271_s26 + $0x2a] sm:$0x1] %vm861_vm11, %v3620_v34  ;;  %v3889_v42 = vrot.slane %v3867_v18, %v7235_v58  ;;  %v3897_v63 = vcombine.high %v3875_v55, %v3875_v55  ;;  %v4124_v22 = vadd.f32 %v4123_v44, %v7237_v9 }
 0x24c   : > { %3637 = vst.msk [vmem:[%s7271_s26 + $0x5a] sm:$0x1] %vm861_vm11, %v3619_v25  ;;  %3638 = vst.msk [vmem:[%s7271_s26 + $0x6a] sm:$0x1] %vm861_vm11, %v3621_v61  ;;  %v3896_v20 = vrot.slane %v3868_v16, %v7235_v58  ;;  %v3898_v3 = vcombine.high %v3882_v11, %v3882_v11 }
 0x24d   : > { %3909 = vst.msk [vmem:[%s7271_s26 + $0xb] sm:$0x1] %vm861_vm11, %v3875_v55  ;;  %3635 = vst.msk [vmem:[%s7271_s26 + $0x3a] sm:$0x1] %vm861_vm11, %v3622_v8  ;;  %v3899_v10 = vcombine.high %v3889_v42, %v3889_v42  ;;  %v4127_v15 = vmax.f32 %v4124_v22, 0.0 }
 0x24e   : > { %3913 = vst.msk [vmem:[%s7271_s26 + $0x4b] sm:$0x1] %vm861_vm11, %v3882_v11  ;;  %3639 = vst.msk [vmem:[%s7271_s26 + $0x7a] sm:$0x1] %vm861_vm11, %v3623_v41  ;;  %v3900_v23 = vcombine.high %v3896_v20, %v3896_v20 }
 0x24f   : > { %3910 = vst.msk [vmem:[%s7271_s26 + $0x1b] sm:$0x1] %vm861_vm11, %v3889_v42  ;;  %3911 = vst.msk [vmem:[%s7271_s26 + $0x2b] sm:$0x1] %vm861_vm11, %v3897_v63  ;;  %v4129_v50 = vcombine.high %v4127_v15, %v4127_v15  ;;  %v4136_v52 = vrot.slane %v4127_v15, %v7235_v58  ;;  %v4400_v31 = vpop.f32.mrb[12].mxu1 }
 0x250   : > { %3914 = vst.msk [vmem:[%s7271_s26 + $0x5b] sm:$0x1] %vm861_vm11, %v3896_v20  ;;  %3915 = vst.msk [vmem:[%s7271_s26 + $0x6b] sm:$0x1] %vm861_vm11, %v3898_v3  ;;  %v4401_v45 = vadd.f32 %v4400_v31, %v7237_v9  ;;  %v5476_v46 = vpop.f32.mrb[13].mxu1 }
 0x251   : > { %3912 = vst.msk [vmem:[%s7271_s26 + $0x3b] sm:$0x1] %vm861_vm11, %v3899_v10  ;;  %3916 = vst.msk [vmem:[%s7271_s26 + $0x7b] sm:$0x1] %vm861_vm11, %v3900_v23  ;;  %v4143_v28 = vrot.slane %v4129_v50, %v7235_v58  ;;  %v4144_v57 = vcombine.high %v4136_v52, %v4136_v52  ;;  %v4152_v6 = vrot.slane %v4136_v52, %v7235_v58 }
 0x252   : > { %v4404_v2 = vmax.f32 %v4401_v45, 0.0 }
 0x253   : > { %v4145_v43 = vcombine.high %v4143_v28, %v4143_v28  ;;  %v4159_v51 = vrot.slane %v4143_v28, %v7235_v58  ;;  %v4166_v59 = vrot.slane %v4144_v57, %v7235_v58  ;;  %v4174_v40 = vcombine.high %v4152_v6, %v4152_v6  ;;  %4186 = vst.msk [vmem:[%s7271_s26 + $0xc] sm:$0x1] %vm861_vm11, %v4152_v6 }
 0x254   : > { %v4406_v14 = vcombine.high %v4404_v2, %v4404_v2  ;;  %v4413_v39 = vrot.slane %v4404_v2, %v7235_v58 }
 0x255   : > { %v4173_v54 = vrot.slane %v4145_v43, %v7235_v58  ;;  %v4175_v48 = vcombine.high %v4159_v51, %v4159_v51  ;;  %v4176_v7 = vcombine.high %v4166_v59, %v4166_v59  ;;  %4187 = vst.msk [vmem:[%s7271_s26 + $0x1c] sm:$0x1] %vm861_vm11, %v4166_v59  ;;  %4188 = vst.msk [vmem:[%s7271_s26 + $0x2c] sm:$0x1] %vm861_vm11, %v4174_v40 }
 0x256   : > { %4190 = vst.msk [vmem:[%s7271_s26 + $0x4c] sm:$0x1] %vm861_vm11, %v4159_v51  ;;  %v4420_v53 = vrot.slane %v4406_v14, %v7235_v58  ;;  %v4421_v5 = vcombine.high %v4413_v39, %v4413_v39  ;;  %v4429_v19 = vrot.slane %v4413_v39, %v7235_v58 }
 0x257   : > { %v4177_v47 = vcombine.high %v4173_v54, %v4173_v54  ;;  %4189 = vst.msk [vmem:[%s7271_s26 + $0x3c] sm:$0x1] %vm861_vm11, %v4176_v7  ;;  %4191 = vst.msk [vmem:[%s7271_s26 + $0x5c] sm:$0x1] %vm861_vm11, %v4173_v54 }
 0x258   : > { %4192 = vst.msk [vmem:[%s7271_s26 + $0x6c] sm:$0x1] %vm861_vm11, %v4175_v48  ;;  %v4422_v12 = vcombine.high %v4420_v53, %v4420_v53  ;;  %v4436_v29 = vrot.slane %v4420_v53, %v7235_v58  ;;  %v4443_v4 = vrot.slane %v4421_v5, %v7235_v58  ;;  %v4451_v0 = vcombine.high %v4429_v19, %v4429_v19 }
 0x259   : > { %4193 = vst.msk [vmem:[%s7271_s26 + $0x7c] sm:$0x1] %vm861_vm11, %v4177_v47  ;;  %4463 = vst.msk [vmem:[%s7271_s26 + $0xd] sm:$0x1] %vm861_vm11, %v4429_v19 }
 0x25a   : > { %v4450_v35 = vrot.slane %v4422_v12, %v7235_v58  ;;  %v4452_v62 = vcombine.high %v4436_v29, %v4436_v29  ;;  %v4453_v60 = vcombine.high %v4443_v4, %v4443_v4  ;;  %4464 = vst.msk [vmem:[%s7271_s26 + $0x1d] sm:$0x1] %vm861_vm11, %v4443_v4  ;;  %4465 = vst.msk [vmem:[%s7271_s26 + $0x2d] sm:$0x1] %vm861_vm11, %v4451_v0 }
 0x25b   : > { %4467 = vst.msk [vmem:[%s7271_s26 + $0x4d] sm:$0x1] %vm861_vm11, %v4436_v29 }
 0x25c   : > { %v4454_v38 = vcombine.high %v4450_v35, %v4450_v35  ;;  %4466 = vst.msk [vmem:[%s7271_s26 + $0x3d] sm:$0x1] %vm861_vm11, %v4453_v60  ;;  %4468 = vst.msk [vmem:[%s7271_s26 + $0x5d] sm:$0x1] %vm861_vm11, %v4450_v35 }
 0x25d   : > { %4469 = vst.msk [vmem:[%s7271_s26 + $0x6d] sm:$0x1] %vm861_vm11, %v4452_v62 }
 0x25e   : > { %4470 = vst.msk [vmem:[%s7271_s26 + $0x7d] sm:$0x1] %vm861_vm11, %v4454_v38 }
 0x26b   : > { %v4677_v30 = vpop.f32.mrb[14].mxu0 }
 0x26c   : > { %v4678_v13 = vadd.f32 %v4677_v30, %v7237_v9  ;;  %v5489_v32 = vpop.f32.mrb[15].mxu0 }
 0x26e   : > { %v4681_v21 = vmax.f32 %v4678_v13, 0.0 }
 0x270   : > { %v4683_v37 = vcombine.high %v4681_v21, %v4681_v21  ;;  %v4690_v56 = vrot.slane %v4681_v21, %v7235_v58 }
 0x272   : > { %v4697_v26 = vrot.slane %v4683_v37, %v7235_v58  ;;  %v4698_v27 = vcombine.high %v4690_v56, %v4690_v56  ;;  %v4706_v36 = vrot.slane %v4690_v56, %v7235_v58  ;;  %v4954_v24 = vpop.f32.mrb[14].mxu1 }
 0x273   : > { %v4955_v1 = vadd.f32 %v4954_v24, %v7237_v9  ;;  %v5502_v33 = vpop.f32.mrb[15].mxu1 }
 0x274   : > { %v4699_v34 = vcombine.high %v4697_v26, %v4697_v26  ;;  %v4713_v17 = vrot.slane %v4697_v26, %v7235_v58  ;;  %v4720_v25 = vrot.slane %v4698_v27, %v7235_v58  ;;  %v4728_v61 = vcombine.high %v4706_v36, %v4706_v36  ;;  %4740 = vst.msk [vmem:[%s7271_s26 + $0xe] sm:$0x1] %vm861_vm11, %v4706_v36 }
 0x275   : > { %v4958_v18 = vmax.f32 %v4955_v1, 0.0 }
 0x276   : > { %v4727_v55 = vrot.slane %v4699_v34, %v7235_v58  ;;  %v4729_v8 = vcombine.high %v4713_v17, %v4713_v17  ;;  %v4730_v16 = vcombine.high %v4720_v25, %v4720_v25  ;;  %4741 = vst.msk [vmem:[%s7271_s26 + $0x1e] sm:$0x1] %vm861_vm11, %v4720_v25  ;;  %4742 = vst.msk [vmem:[%s7271_s26 + $0x2e] sm:$0x1] %vm861_vm11, %v4728_v61 }
 0x277   : > { %4744 = vst.msk [vmem:[%s7271_s26 + $0x4e] sm:$0x1] %vm861_vm11, %v4713_v17  ;;  %v4960_v9 = vcombine.high %v4958_v18, %v4958_v18  ;;  %v4967_v11 = vrot.slane %v4958_v18, %v7235_v58 }
 0x278   : > { %v4731_v41 = vcombine.high %v4727_v55, %v4727_v55  ;;  %4743 = vst.msk [vmem:[%s7271_s26 + $0x3e] sm:$0x1] %vm861_vm11, %v4730_v16  ;;  %4745 = vst.msk [vmem:[%s7271_s26 + $0x5e] sm:$0x1] %vm861_vm11, %v4727_v55 }
 0x279   : > { %4746 = vst.msk [vmem:[%s7271_s26 + $0x6e] sm:$0x1] %vm861_vm11, %v4729_v8  ;;  %v4974_v42 = vrot.slane %v4960_v9, %v7235_v58  ;;  %v4975_v63 = vcombine.high %v4967_v11, %v4967_v11  ;;  %v4983_v20 = vrot.slane %v4967_v11, %v7235_v58 }
 0x27a   : > { %4747 = vst.msk [vmem:[%s7271_s26 + $0x7e] sm:$0x1] %vm861_vm11, %v4731_v41 }
 0x27b   : > { %v4976_v3 = vcombine.high %v4974_v42, %v4974_v42  ;;  %v4990_v10 = vrot.slane %v4974_v42, %v7235_v58  ;;  %v4997_v23 = vrot.slane %v4975_v63, %v7235_v58  ;;  %v5005_v44 = vcombine.high %v4983_v20, %v4983_v20  ;;  %5017 = vst.msk [vmem:[%s7271_s26 + $0xf] sm:$0x1] %vm861_vm11, %v4983_v20 }
 0x27d   : > { %v5004_v22 = vrot.slane %v4976_v3, %v7235_v58  ;;  %v5006_v49 = vcombine.high %v4990_v10, %v4990_v10  ;;  %v5007_v15 = vcombine.high %v4997_v23, %v4997_v23  ;;  %5018 = vst.msk [vmem:[%s7271_s26 + $0x1f] sm:$0x1] %vm861_vm11, %v4997_v23  ;;  %5019 = vst.msk [vmem:[%s7271_s26 + $0x2f] sm:$0x1] %vm861_vm11, %v5005_v44 }
 0x27e   : > { %5021 = vst.msk [vmem:[%s7271_s26 + $0x4f] sm:$0x1] %vm861_vm11, %v4990_v10 }
 0x27f   : > { %v5008_v58 = vcombine.high %v5004_v22, %v5004_v22  ;;  %5020 = vst.msk [vmem:[%s7271_s26 + $0x3f] sm:$0x1] %vm861_vm11, %v5007_v15  ;;  %5022 = vst.msk [vmem:[%s7271_s26 + $0x5f] sm:$0x1] %vm861_vm11, %v5004_v22 }
 0x280   : > { %5023 = vst.msk [vmem:[%s7271_s26 + $0x6f] sm:$0x1] %vm861_vm11, %v5006_v49 }
 0x281   : > { %5024 = vst.msk [vmem:[%s7271_s26 + $0x7f] sm:$0x1] %vm861_vm11, %v5008_v58 }
 0x282   : > { %5680 = shalt.err (!%p5677_p5)
}
 0x283   : > { %s5681_s9 = scalar_lea.hbm %s7642_s4, 2048  ;;  %s5685_s18 = scalar_lea.hbm %s7705_s3, 4096 }
 0x284   : > { %p5682_p6 = scmp.ne.s32.totalorder %s7642_s4, %s5681_s9  ;;  %p5686_p10 = scmp.lt.u32.totalorder %s7642_s4, %s7705_s3 }
 0x285   : > { %p5687_p11 = scmp.lt.u32.totalorder %s5685_s18, %s5681_s9  ;;  %p5689_p13 = scmp.lt.u32.totalorder %s5681_s9, %s7642_s4 }
 0x286   : > { %p5683_p7 = pnand %p5682_p6, %p5817_p4 }
 0x287   : > { %p5688_p12 = por %p5687_p11, %p5686_p10 }
 0x288   : > { %p5684_p9 = pneg %p5683_p7 }
 0x289   : > { %p5690_p0 = por %p5689_p13, %p5688_p12 }
 0x28b   : > { %p5691_p1 = pnand %p5690_p0, %p5684_p9 }
 0x28d   : > { %5694 = shalt.err (!%p5691_p1)
}
 0x28e   : > { %s5755_s23 = smov 128   ;;  %s5756_s26 = smov 8  }
 0x28f   : > { %5600 = dma.vmem_to_hbm [thread:$0]  (%p5817_p4), %s7644_s28, 2048, %s7642_s4, %s7656_s15, %s5755_s23, %s5755_s23, %s5756_s26  }
 0x290 PF: > { %p5606_p2 = scmp.ge.s32.totalorder %s5745_s17, 2  ;;  %s5059_s27 = sand.u32 1, %s5725_s12  }
 0x291   : > { %s5060_s29 = scalar_lea.sflag [#allocation4], %s5059_s27 }
 0x292   : > { %p5603_p3 = pnand %p5606_p2, %p5824_p8 }
 0x294   : > { %5720 = dma.done.wait (!%p5603_p3), %s5060_s29, 2048  }
 0x295   : > { %5722 = vsyncadd (!%p5603_p3), %s5060_s29, 4294965248  ;;  %s16_s17 = sadd.s32 1, %s5745_s17   ;;  %s7862_s12 = smov %s5729_s13 }
 0x296   : > { %p13_p5 = scmp.ge.s32.totalorder %s16_s17, 4   ;;  %s7863_s13 = smov %s5733_s14 }
 0x297   : > { %s7864_s14 = smov %s5830_s25  ;;  %s7865_s15 = smov %s5741_s16 }
 0x298   : > { %s7866_s16 = smov %s7868_s20  ;;  %15 = sbr.rel (!%p13_p5) target bundleno = 4 (0x4), region = 81 }
 0x29f   :  { %5065 = vsyncpa [#allocation4], 1 }
 0x2a0   :  { %5067 = vsyncpa [#allocation4 + $0x1], 1 }

</bundles_post_ra>
